<compile_context>
chip_gen: v5e
topology: v5e:2x2
jax: 0.10.0
libtpu: 0.0.40
codegen_flags: <defaults>
</compile_context>

<pallas_src>
import functools
import math

import jax
import jax.numpy as jnp
from jax import lax
from jax.experimental import pallas as pl
from jax.experimental.pallas import tpu as pltpu


# ----------------------------------------------------------------------------
# Kernel helpers.
# ----------------------------------------------------------------------------
def _zero_pad_border(ref, pad):
    """Zero only the pad-wide border of a (Hp, Wp, C) VMEM scratch plane."""
    Hp, Wp, C = ref.shape
    zrow = jnp.zeros((pad, Wp, C), ref.dtype)
    zcol = jnp.zeros((Hp, pad, C), ref.dtype)
    ref[pl.ds(0, pad), :, :] = zrow
    ref[pl.ds(Hp - pad, pad), :, :] = zrow
    ref[:, pl.ds(0, pad), :] = zcol
    ref[:, pl.ds(Wp - pad, pad), :] = zcol


# ----------------------------------------------------------------------------
# Fused kernel: per image, conv1+bias+ReLU -> conv2+bias+ReLU, all in VMEM.
# ----------------------------------------------------------------------------
def _block_fused_kernel(x_ref, w1_ref, b1_ref, w2_ref, b2_ref, o_ref,
                        xp_ref, hp_ref, col1_ref, col2_ref, *,
                        H, W, Cin, C1, C2, KH, KW, pad, dil,
                        OH1, OW1, OH2, OW2):
    # x_ref   : (1, Cin, H*W)            one NCHW image, spatial flattened
    # w1_ref  : (KH*KW*Cin, C1) bf16     conv1 weight, K ordered (tap, Cin)
    # b1_ref  : (1, C1) f32
    # w2_ref  : (KH*KW*C1, C2) bf16
    # b2_ref  : (1, C2) f32
    # o_ref   : (1, C2, OH2*OW2)         NCHW-native output, spatial on lanes
    # xp_ref  : VMEM (H+2p,  W+2p,  Cin) f32   zero-padded input plane
    # hp_ref  : VMEM (OH1+2p,OW1+2p, C1) f32   zero-padded intermediate plane
    # col1_ref: VMEM (OH1*OW1, KH*KW*Cin) bf16 im2col operand, conv1
    # col2_ref: VMEM (OH2*OW2, KH*KW*C1)  bf16 im2col operand, conv2
    M1 = OH1 * OW1
    M2 = OH2 * OW2

    # Zero only the thin pad border.  Interior is fully overwritten below.
    # Done every step (not under program_id==0) so it stays correct when the
    # "parallel" batch axis is sharded across TensorCores.
    if pad > 0:
        _zero_pad_border(xp_ref, pad)
        _zero_pad_border(hp_ref, pad)

    # ---- stage 0: NCHW -> channels-last padded plane, entirely in VMEM. ----
    xt = jnp.transpose(x_ref[0])                                # (H*W, Cin)
    xp_ref[pl.ds(pad, H), pl.ds(pad, W), :] = xt.reshape(H, W, Cin)

    # ---- stage 1: conv1 as ONE GEMM with K = KH*KW*Cin (implicit im2col). ---
    for t in range(KH * KW):
        di = (t // KW) * dil
        dj = (t % KW) * dil
        tap = xp_ref[pl.ds(di, OH1), pl.ds(dj, OW1), :]         # (OH1,OW1,Cin)
        col1_ref[:, pl.ds(t * Cin, Cin)] = (
            tap.reshape(M1, Cin).astype(col1_ref.dtype))
    h = jnp.dot(col1_ref[...], w1_ref[...],
                preferred_element_type=jnp.float32)             # (M1, C1)
    h = jnp.maximum(h + b1_ref[...], 0.0)                       # bias + ReLU
    # dropout1: identity (eval mode)

    # ---- stage 2: keep h as a zero-padded plane in VMEM (no HBM trip). -----
    hp_ref[pl.ds(pad, OH1), pl.ds(pad, OW1), :] = h.reshape(OH1, OW1, C1)

    # ---- stage 3: conv2, same single-GEMM scheme. ---------------------------
    for t in range(KH * KW):
        di = (t // KW) * dil
        dj = (t % KW) * dil
        tap = hp_ref[pl.ds(di, OH2), pl.ds(dj, OW2), :]         # (OH2,OW2,C1)
        col2_ref[:, pl.ds(t * C1, C1)] = (
            tap.reshape(M2, C1).astype(col2_ref.dtype))
    out = jnp.dot(col2_ref[...], w2_ref[...],
                  preferred_element_type=jnp.float32)           # (M2, C2)
    out = jnp.maximum(out + b2_ref[...], 0.0)                   # bias + ReLU
    # dropout2: identity (eval mode)

    # ---- stage 4: lane-dense, NCHW-native store (spatial on the lane axis). -
    o_ref[...] = jnp.transpose(out).reshape(1, C2, M2).astype(o_ref.dtype)


# ----------------------------------------------------------------------------
# Parameter math (tiny) + wrapper.
# ----------------------------------------------------------------------------
def _weight_norm(v, g):
    """PyTorch weight_norm (dim=0): w = g * v / ||v||, norm over (Cin,kh,kw)."""
    norm = jnp.sqrt(jnp.sum(v * v, axis=(1, 2, 3), keepdims=True))
    return g * v / norm


def _round_up(x, m):
    return -(-x // m) * m


def _padded_vmem_bytes(shape, itemsize):
    """Conservative (tile-padded) VMEM footprint estimate for one buffer."""
    if len(shape) == 1:
        return _round_up(shape[0], 128) * itemsize
    lead = math.prod(shape[:-2]) if len(shape) > 2 else 1
    return lead * _round_up(shape[-2], 32) * _round_up(shape[-1], 128) * itemsize


def _block_forward_impl(x_nchw, params, *, stride, padding, dilation):
    if stride != 1:
        # TODO(synk): stride != 1 needs a strided output-index mapping.
        raise NotImplementedError("fused Block kernel supports stride=1 only")

    x_nchw = x_nchw.astype(jnp.float32)
    N, Cin, H, W = x_nchw.shape

    v1, g1, b1 = params["v1"], params["g1"], params["b1"]
    v2, g2, b2 = params["v2"], params["g2"], params["b2"]
    C1, _, KH, KW = v1.shape
    C2 = v2.shape[0]

    w1 = _weight_norm(v1, g1)                                   # (C1,Cin,KH,KW)
    w2 = _weight_norm(v2, g2)                                   # (C2,C1, KH,KW)
    K1 = KH * KW * Cin
    K2 = KH * KW * C1
    # K laid out as (tap, channel) to match the in-kernel im2col column order.
    w1_mat = jnp.transpose(w1, (2, 3, 1, 0)).reshape(K1, C1).astype(jnp.bfloat16)
    w2_mat = jnp.transpose(w2, (2, 3, 1, 0)).reshape(K2, C2).astype(jnp.bfloat16)

    OH1 = H + 2 * padding - dilation * (KH - 1)
    OW1 = W + 2 * padding - dilation * (KW - 1)
    OH2 = OH1 + 2 * padding - dilation * (KH - 1)
    OW2 = OW1 + 2 * padding - dilation * (KW - 1)
    assert OH1 > 0 and OW1 > 0 and OH2 > 0 and OW2 > 0
    M1, M2 = OH1 * OW1, OH2 * OW2
    Hp1, Wp1 = H + 2 * padding, W + 2 * padding
    Hp2, Wp2 = OH1 + 2 * padding, OW1 + 2 * padding

    # Free reshape (contiguous) — the kernel sees each image as a 2-D
    # (Cin, H*W) tile; no NCHW<->NHWC HBM transpose anywhere.
    x_flat = x_nchw.reshape(N, Cin, H * W)

    kernel = functools.partial(
        _block_fused_kernel,
        H=H, W=W, Cin=Cin, C1=C1, C2=C2, KH=KH, KW=KW,
        pad=padding, dil=dilation, OH1=OH1, OW1=OW1, OH2=OH2, OW2=OW2)

    # Explicit VMEM budget: scratches + double-buffered in/out/weight blocks,
    # with 2x slack; clamped to [16 MiB, 64 MiB] so it is valid on v5e/v6e/v7x.
    scratch_bytes = (_padded_vmem_bytes((Hp1, Wp1, Cin), 4)
                     + _padded_vmem_bytes((Hp2, Wp2, C1), 4)
                     + _padded_vmem_bytes((M1, K1), 2)
                     + _padded_vmem_bytes((M2, K2), 2))
    block_bytes = 2 * (_padded_vmem_bytes((1, Cin, H * W), 4)
                       + _padded_vmem_bytes((1, C2, M2), 4)
                       + _padded_vmem_bytes((K1, C1), 2)
                       + _padded_vmem_bytes((K2, C2), 2)
                       + _padded_vmem_bytes((1, C1), 4)
                       + _padded_vmem_bytes((1, C2), 4))
    vmem_limit = int(min(64 * 2 ** 20,
                         max(16 * 2 ** 20, 2 * (scratch_bytes + block_bytes))))

    out = pl.pallas_call(
        kernel,
        out_shape=jax.ShapeDtypeStruct((N, C2, M2), jnp.float32),
        grid_spec=pltpu.PrefetchScalarGridSpec(
            num_scalar_prefetch=0,
            grid=(N,),
            in_specs=[
                pl.BlockSpec((1, Cin, H * W), lambda n: (n, 0, 0)),
                # Constant index_map -> Pallas keeps the tiny weights resident.
                pl.BlockSpec((K1, C1), lambda n: (0, 0)),
                pl.BlockSpec((1, C1), lambda n: (0, 0)),
                pl.BlockSpec((K2, C2), lambda n: (0, 0)),
                pl.BlockSpec((1, C2), lambda n: (0, 0)),
            ],
            out_specs=pl.BlockSpec((1, C2, M2), lambda n: (n, 0, 0)),
            scratch_shapes=[
                pltpu.VMEM((Hp1, Wp1, Cin), jnp.float32),   # padded input plane
                pltpu.VMEM((Hp2, Wp2, C1), jnp.float32),    # padded hidden plane
                pltpu.VMEM((M1, K1), jnp.bfloat16),         # im2col, conv1
                pltpu.VMEM((M2, K2), jnp.bfloat16),         # im2col, conv2
            ],
        ),
        compiler_params=pltpu.CompilerParams(
            dimension_semantics=("parallel",),
            vmem_limit_bytes=vmem_limit),
    )(x_flat, w1_mat, b1.reshape(1, C1).astype(jnp.float32),
      w2_mat, b2.reshape(1, C2).astype(jnp.float32))

    # Free reshape back to NCHW (spatial already contiguous on the minor dim).
    return out.reshape(N, C2, OH2, OW2)


@functools.partial(jax.jit, static_argnames=("stride", "padding", "dilation"))
def block_forward(x_nchw, params, *, stride, padding, dilation):
    return _block_forward_impl(x_nchw, params, stride=stride,
                               padding=padding, dilation=dilation)


# ----------------------------------------------------------------------------
# Params + pure-JAX reference (for correctness check).
# ----------------------------------------------------------------------------
def make_block_params(key, n_inputs, n_outputs, n_outputs_final, kernel_size):
    k1, k2, k3, k4 = jax.random.split(key, 4)
    v1 = 0.01 * jax.random.normal(
        k1, (n_outputs, n_inputs, kernel_size, kernel_size), jnp.float32)
    g1 = jnp.sqrt(jnp.sum(v1 * v1, axis=(1, 2, 3), keepdims=True))
    b1 = 0.01 * jax.random.normal(k2, (n_outputs,), jnp.float32)

    v2 = 0.01 * jax.random.normal(
        k3, (n_outputs_final, n_outputs, kernel_size, kernel_size), jnp.float32)
    g2 = jnp.sqrt(jnp.sum(v2 * v2, axis=(1, 2, 3), keepdims=True))
    b2 = 0.01 * jax.random.normal(k4, (n_outputs_final,), jnp.float32)
    return dict(v1=v1, g1=g1, b1=b1, v2=v2, g2=g2, b2=b2)


def _reference_block(x, params, *, stride, padding, dilation):
    def conv_relu(x, v, g, b):
        w = _weight_norm(v, g)
        y = lax.conv_general_dilated(
            x, w, window_strides=(stride, stride),
            padding=[(padding, padding), (padding, padding)],
            rhs_dilation=(dilation, dilation),
            dimension_numbers=("NCHW", "OIHW", "NCHW"),
            precision=lax.Precision.HIGHEST)
        return jnp.maximum(y + b.reshape(1, -1, 1, 1), 0.0)

    h = conv_relu(x, params["v1"], params["g1"], params["b1"])
    return conv_relu(h, params["v2"], params["g2"], params["b2"])


if __name__ == "__main__":
    key = jax.random.PRNGKey(0)
    kx, kp = jax.random.split(key)

    N, Cin, H, W = 2, 4, 16, 16
    n_outputs, n_outputs_final, ksize = 8, 8, 3
    stride, padding, dilation = 1, 1, 1

    x = jax.random.normal(kx, (N, Cin, H, W), jnp.float32)
    params = make_block_params(kp, Cin, n_outputs, n_outputs_final, ksize)

    out = block_forward(x, params, stride=stride, padding=padding,
                        dilation=dilation)
    out = jax.block_until_ready(out)

    ref = _reference_block(x, params, stride=stride, padding=padding,
                           dilation=dilation)

    assert out.shape == (N, n_outputs_final, H, W), out.shape
    assert bool(jnp.all(out >= 0.0))                    # ReLU output
    err = float(jnp.max(jnp.abs(out - ref)))
    assert err < 2e-3, f"max abs diff vs reference: {err}"
    print("KERNEL_OK")
</pallas_src>

<mosaic_0001>
module attributes {stable_mosaic.version = 11 : i64} {
  func.func @_block_fused_kernel(%arg0: i32, %arg1: memref<1x4x256xf32, #tpu.memory_space<vmem>>, %arg2: memref<36x8xbf16, #tpu.memory_space<vmem>>, %arg3: memref<1x8xf32, #tpu.memory_space<vmem>>, %arg4: memref<72x8xbf16, #tpu.memory_space<vmem>>, %arg5: memref<1x8xf32, #tpu.memory_space<vmem>>, %arg6: memref<1x8x256xf32, #tpu.memory_space<vmem>>, %arg7: memref<18x18x4xf32, #tpu.memory_space<vmem>>, %arg8: memref<18x18x8xf32, #tpu.memory_space<vmem>>, %arg9: memref<256x36xbf16, #tpu.memory_space<vmem>>, %arg10: memref<256x72xbf16, #tpu.memory_space<vmem>>) attributes {dimension_semantics = [#tpu.dimension_semantics<parallel>], iteration_bounds = array<i64: 2>, scalar_prefetch = 0 : i64, scratch_operands = 4 : i64, tpu.core_type = #tpu.core_type<tc>, window_params = [{transform_indices = @transform_0, window_bounds = array<i64: 1, 4, 256>}, {pipeline_mode = #tpu.pipeline_mode<synchronous>, transform_indices = @transform_1, window_bounds = array<i64: 36, 8>}, {pipeline_mode = #tpu.pipeline_mode<synchronous>, transform_indices = @transform_2, window_bounds = array<i64: 1, 8>}, {pipeline_mode = #tpu.pipeline_mode<synchronous>, transform_indices = @transform_3, window_bounds = array<i64: 72, 8>}, {pipeline_mode = #tpu.pipeline_mode<synchronous>, transform_indices = @transform_4, window_bounds = array<i64: 1, 8>}, {transform_indices = @transform_5, window_bounds = array<i64: 1, 8, 256>}]} {
    %cst = arith.constant 0.000000e+00 : f32
    %0 = vector.broadcast %cst : f32 to vector<1x18x4xf32>
    %cst_0 = arith.constant 0.000000e+00 : f32
    %1 = vector.broadcast %cst_0 : f32 to vector<18x1x4xf32>
    %c0 = arith.constant 0 : index
    %c0_1 = arith.constant 0 : index
    %c0_2 = arith.constant 0 : index
    %2 = vector.load %arg7[%c0, %c0_1, %c0_2] : memref<18x18x4xf32, #tpu.memory_space<vmem>>, vector<1x18x4xf32>
    tpu.vector_store %arg7[%c0, %c0_1, %c0_2], %0 {strides = array<i32>} : memref<18x18x4xf32, #tpu.memory_space<vmem>>, vector<1x18x4xf32>,
    %c17 = arith.constant 17 : index
    %c0_3 = arith.constant 0 : index
    %c0_4 = arith.constant 0 : index
    %3 = vector.load %arg7[%c17, %c0_3, %c0_4] : memref<18x18x4xf32, #tpu.memory_space<vmem>>, vector<1x18x4xf32>
    tpu.vector_store %arg7[%c17, %c0_3, %c0_4], %0 {strides = array<i32>} : memref<18x18x4xf32, #tpu.memory_space<vmem>>, vector<1x18x4xf32>,
    %c0_5 = arith.constant 0 : index
    %c0_6 = arith.constant 0 : index
    %c0_7 = arith.constant 0 : index
    %4 = vector.load %arg7[%c0_5, %c0_6, %c0_7] : memref<18x18x4xf32, #tpu.memory_space<vmem>>, vector<18x1x4xf32>
    tpu.vector_store %arg7[%c0_5, %c0_6, %c0_7], %1 {strides = array<i32>} : memref<18x18x4xf32, #tpu.memory_space<vmem>>, vector<18x1x4xf32>,
    %c0_8 = arith.constant 0 : index
    %c17_9 = arith.constant 17 : index
    %c0_10 = arith.constant 0 : index
    %5 = vector.load %arg7[%c0_8, %c17_9, %c0_10] : memref<18x18x4xf32, #tpu.memory_space<vmem>>, vector<18x1x4xf32>
    tpu.vector_store %arg7[%c0_8, %c17_9, %c0_10], %1 {strides = array<i32>} : memref<18x18x4xf32, #tpu.memory_space<vmem>>, vector<18x1x4xf32>,
    %cst_11 = arith.constant 0.000000e+00 : f32
    %6 = vector.broadcast %cst_11 : f32 to vector<1x18x8xf32>
    %cst_12 = arith.constant 0.000000e+00 : f32
    %7 = vector.broadcast %cst_12 : f32 to vector<18x1x8xf32>
    %c0_13 = arith.constant 0 : index
    %c0_14 = arith.constant 0 : index
    %c0_15 = arith.constant 0 : index
    %8 = vector.load %arg8[%c0_13, %c0_14, %c0_15] : memref<18x18x8xf32, #tpu.memory_space<vmem>>, vector<1x18x8xf32>
    tpu.vector_store %arg8[%c0_13, %c0_14, %c0_15], %6 {strides = array<i32>} : memref<18x18x8xf32, #tpu.memory_space<vmem>>, vector<1x18x8xf32>,
    %c17_16 = arith.constant 17 : index
    %c0_17 = arith.constant 0 : index
    %c0_18 = arith.constant 0 : index
    %9 = vector.load %arg8[%c17_16, %c0_17, %c0_18] : memref<18x18x8xf32, #tpu.memory_space<vmem>>, vector<1x18x8xf32>
    tpu.vector_store %arg8[%c17_16, %c0_17, %c0_18], %6 {strides = array<i32>} : memref<18x18x8xf32, #tpu.memory_space<vmem>>, vector<1x18x8xf32>,
    %c0_19 = arith.constant 0 : index
    %c0_20 = arith.constant 0 : index
    %c0_21 = arith.constant 0 : index
    %10 = vector.load %arg8[%c0_19, %c0_20, %c0_21] : memref<18x18x8xf32, #tpu.memory_space<vmem>>, vector<18x1x8xf32>
    tpu.vector_store %arg8[%c0_19, %c0_20, %c0_21], %7 {strides = array<i32>} : memref<18x18x8xf32, #tpu.memory_space<vmem>>, vector<18x1x8xf32>,
    %c0_22 = arith.constant 0 : index
    %c17_23 = arith.constant 17 : index
    %c0_24 = arith.constant 0 : index
    %11 = vector.load %arg8[%c0_22, %c17_23, %c0_24] : memref<18x18x8xf32, #tpu.memory_space<vmem>>, vector<18x1x8xf32>
    tpu.vector_store %arg8[%c0_22, %c17_23, %c0_24], %7 {strides = array<i32>} : memref<18x18x8xf32, #tpu.memory_space<vmem>>, vector<18x1x8xf32>,
    %c0_25 = arith.constant 0 : index
    %c0_26 = arith.constant 0 : index
    %c0_27 = arith.constant 0 : index
    %12 = vector.load %arg1[%c0_25, %c0_26, %c0_27] : memref<1x4x256xf32, #tpu.memory_space<vmem>>, vector<1x4x256xf32>
    %13 = vector.shape_cast %12 : vector<1x4x256xf32> to vector<4x256xf32>
    %14 = tpu.transpose %13, [1, 0] : vector<4x256xf32> -> vector<256x4xf32>
    %15 = vector.shape_cast %14 : vector<256x4xf32> to vector<16x16x4xf32>
    %c1 = arith.constant 1 : index
    %c1_28 = arith.constant 1 : index
    %c0_29 = arith.constant 0 : index
    %16 = vector.load %arg7[%c1, %c1_28, %c0_29] : memref<18x18x4xf32, #tpu.memory_space<vmem>>, vector<16x16x4xf32>
    tpu.vector_store %arg7[%c1, %c1_28, %c0_29], %15 {strides = array<i32>} : memref<18x18x4xf32, #tpu.memory_space<vmem>>, vector<16x16x4xf32>,
    %c0_30 = arith.constant 0 : index
    %c0_31 = arith.constant 0 : index
    %c0_32 = arith.constant 0 : index
    %17 = vector.load %arg7[%c0_30, %c0_31, %c0_32] : memref<18x18x4xf32, #tpu.memory_space<vmem>>, vector<16x16x4xf32>
    %18 = vector.shape_cast %17 : vector<16x16x4xf32> to vector<256x4xf32>
    %19 = arith.truncf %18 : vector<256x4xf32> to vector<256x4xbf16>
    %c0_33 = arith.constant 0 : index
    %c0_34 = arith.constant 0 : index
    %20 = vector.load %arg9[%c0_33, %c0_34] : memref<256x36xbf16, #tpu.memory_space<vmem>>, vector<256x4xbf16>
    tpu.vector_store %arg9[%c0_33, %c0_34], %19 {strides = array<i32>} : memref<256x36xbf16, #tpu.memory_space<vmem>>, vector<256x4xbf16>,
    %c0_35 = arith.constant 0 : index
    %c1_36 = arith.constant 1 : index
    %c0_37 = arith.constant 0 : index
    %21 = vector.load %arg7[%c0_35, %c1_36, %c0_37] : memref<18x18x4xf32, #tpu.memory_space<vmem>>, vector<16x16x4xf32>
    %22 = vector.shape_cast %21 : vector<16x16x4xf32> to vector<256x4xf32>
    %23 = arith.truncf %22 : vector<256x4xf32> to vector<256x4xbf16>
    %c0_38 = arith.constant 0 : index
    %c4 = arith.constant 4 : index
    %24 = vector.load %arg9[%c0_38, %c4] : memref<256x36xbf16, #tpu.memory_space<vmem>>, vector<256x4xbf16>
    tpu.vector_store %arg9[%c0_38, %c4], %23 {strides = array<i32>} : memref<256x36xbf16, #tpu.memory_space<vmem>>, vector<256x4xbf16>,
    %c0_39 = arith.constant 0 : index
    %c2 = arith.constant 2 : index
    %c0_40 = arith.constant 0 : index
    %25 = vector.load %arg7[%c0_39, %c2, %c0_40] : memref<18x18x4xf32, #tpu.memory_space<vmem>>, vector<16x16x4xf32>
    %26 = vector.shape_cast %25 : vector<16x16x4xf32> to vector<256x4xf32>
    %27 = arith.truncf %26 : vector<256x4xf32> to vector<256x4xbf16>
    %c0_41 = arith.constant 0 : index
    %c8 = arith.constant 8 : index
    %28 = vector.load %arg9[%c0_41, %c8] : memref<256x36xbf16, #tpu.memory_space<vmem>>, vector<256x4xbf16>
    tpu.vector_store %arg9[%c0_41, %c8], %27 {strides = array<i32>} : memref<256x36xbf16, #tpu.memory_space<vmem>>, vector<256x4xbf16>,
    %c1_42 = arith.constant 1 : index
    %c0_43 = arith.constant 0 : index
    %c0_44 = arith.constant 0 : index
    %29 = vector.load %arg7[%c1_42, %c0_43, %c0_44] : memref<18x18x4xf32, #tpu.memory_space<vmem>>, vector<16x16x4xf32>
    %30 = vector.shape_cast %29 : vector<16x16x4xf32> to vector<256x4xf32>
    %31 = arith.truncf %30 : vector<256x4xf32> to vector<256x4xbf16>
    %c0_45 = arith.constant 0 : index
    %c12 = arith.constant 12 : index
    %32 = vector.load %arg9[%c0_45, %c12] : memref<256x36xbf16, #tpu.memory_space<vmem>>, vector<256x4xbf16>
    tpu.vector_store %arg9[%c0_45, %c12], %31 {strides = array<i32>} : memref<256x36xbf16, #tpu.memory_space<vmem>>, vector<256x4xbf16>,
    %c1_46 = arith.constant 1 : index
    %c1_47 = arith.constant 1 : index
    %c0_48 = arith.constant 0 : index
    %33 = vector.load %arg7[%c1_46, %c1_47, %c0_48] : memref<18x18x4xf32, #tpu.memory_space<vmem>>, vector<16x16x4xf32>
    %34 = vector.shape_cast %33 : vector<16x16x4xf32> to vector<256x4xf32>
    %35 = arith.truncf %34 : vector<256x4xf32> to vector<256x4xbf16>
    %c0_49 = arith.constant 0 : index
    %c16 = arith.constant 16 : index
    %36 = vector.load %arg9[%c0_49, %c16] : memref<256x36xbf16, #tpu.memory_space<vmem>>, vector<256x4xbf16>
    tpu.vector_store %arg9[%c0_49, %c16], %35 {strides = array<i32>} : memref<256x36xbf16, #tpu.memory_space<vmem>>, vector<256x4xbf16>,
    %c1_50 = arith.constant 1 : index
    %c2_51 = arith.constant 2 : index
    %c0_52 = arith.constant 0 : index
    %37 = vector.load %arg7[%c1_50, %c2_51, %c0_52] : memref<18x18x4xf32, #tpu.memory_space<vmem>>, vector<16x16x4xf32>
    %38 = vector.shape_cast %37 : vector<16x16x4xf32> to vector<256x4xf32>
    %39 = arith.truncf %38 : vector<256x4xf32> to vector<256x4xbf16>
    %c0_53 = arith.constant 0 : index
    %c20 = arith.constant 20 : index
    %40 = vector.load %arg9[%c0_53, %c20] : memref<256x36xbf16, #tpu.memory_space<vmem>>, vector<256x4xbf16>
    tpu.vector_store %arg9[%c0_53, %c20], %39 {strides = array<i32>} : memref<256x36xbf16, #tpu.memory_space<vmem>>, vector<256x4xbf16>,
    %c2_54 = arith.constant 2 : index
    %c0_55 = arith.constant 0 : index
    %c0_56 = arith.constant 0 : index
    %41 = vector.load %arg7[%c2_54, %c0_55, %c0_56] : memref<18x18x4xf32, #tpu.memory_space<vmem>>, vector<16x16x4xf32>
    %42 = vector.shape_cast %41 : vector<16x16x4xf32> to vector<256x4xf32>
    %43 = arith.truncf %42 : vector<256x4xf32> to vector<256x4xbf16>
    %c0_57 = arith.constant 0 : index
    %c24 = arith.constant 24 : index
    %44 = vector.load %arg9[%c0_57, %c24] : memref<256x36xbf16, #tpu.memory_space<vmem>>, vector<256x4xbf16>
    tpu.vector_store %arg9[%c0_57, %c24], %43 {strides = array<i32>} : memref<256x36xbf16, #tpu.memory_space<vmem>>, vector<256x4xbf16>,
    %c2_58 = arith.constant 2 : index
    %c1_59 = arith.constant 1 : index
    %c0_60 = arith.constant 0 : index
    %45 = vector.load %arg7[%c2_58, %c1_59, %c0_60] : memref<18x18x4xf32, #tpu.memory_space<vmem>>, vector<16x16x4xf32>
    %46 = vector.shape_cast %45 : vector<16x16x4xf32> to vector<256x4xf32>
    %47 = arith.truncf %46 : vector<256x4xf32> to vector<256x4xbf16>
    %c0_61 = arith.constant 0 : index
    %c28 = arith.constant 28 : index
    %48 = vector.load %arg9[%c0_61, %c28] : memref<256x36xbf16, #tpu.memory_space<vmem>>, vector<256x4xbf16>
    tpu.vector_store %arg9[%c0_61, %c28], %47 {strides = array<i32>} : memref<256x36xbf16, #tpu.memory_space<vmem>>, vector<256x4xbf16>,
    %c2_62 = arith.constant 2 : index
    %c2_63 = arith.constant 2 : index
    %c0_64 = arith.constant 0 : index
    %49 = vector.load %arg7[%c2_62, %c2_63, %c0_64] : memref<18x18x4xf32, #tpu.memory_space<vmem>>, vector<16x16x4xf32>
    %50 = vector.shape_cast %49 : vector<16x16x4xf32> to vector<256x4xf32>
    %51 = arith.truncf %50 : vector<256x4xf32> to vector<256x4xbf16>
    %c0_65 = arith.constant 0 : index
    %c32 = arith.constant 32 : index
    %52 = vector.load %arg9[%c0_65, %c32] : memref<256x36xbf16, #tpu.memory_space<vmem>>, vector<256x4xbf16>
    tpu.vector_store %arg9[%c0_65, %c32], %51 {strides = array<i32>} : memref<256x36xbf16, #tpu.memory_space<vmem>>, vector<256x4xbf16>,
    %c0_66 = arith.constant 0 : index
    %c0_67 = arith.constant 0 : index
    %53 = vector.load %arg9[%c0_66, %c0_67] : memref<256x36xbf16, #tpu.memory_space<vmem>>, vector<256x36xbf16>
    %c0_68 = arith.constant 0 : index
    %c0_69 = arith.constant 0 : index
    %54 = vector.load %arg2[%c0_68, %c0_69] : memref<36x8xbf16, #tpu.memory_space<vmem>>, vector<36x8xbf16>
    %cst_70 = arith.constant dense<0.000000e+00> : vector<256x8xf32>
    %55 = tpu.matmul %53, %54, %cst_70 {dimension_numbers = #tpu.dot_dimension_numbers<[1], [0], [0], [1], [0, 0, 1, 1], [], []>} : vector<256x36xbf16>, vector<36x8xbf16>, vector<256x8xf32> -> vector<256x8xf32>
    %c0_71 = arith.constant 0 : index
    %c0_72 = arith.constant 0 : index
    %56 = vector.load %arg3[%c0_71, %c0_72] : memref<1x8xf32, #tpu.memory_space<vmem>>, vector<1x8xf32>
    %57 = vector.broadcast %56 : vector<1x8xf32> to vector<256x8xf32>
    %58 = arith.addf %55, %57 : vector<256x8xf32>
    %cst_73 = arith.constant 0.000000e+00 : f32
    %59 = vector.broadcast %cst_73 : f32 to vector<256x8xf32>
    %60 = arith.maximumf %58, %59 : vector<256x8xf32>
    %61 = vector.shape_cast %60 : vector<256x8xf32> to vector<16x16x8xf32>
    %c1_74 = arith.constant 1 : index
    %c1_75 = arith.constant 1 : index
    %c0_76 = arith.constant 0 : index
    %62 = vector.load %arg8[%c1_74, %c1_75, %c0_76] : memref<18x18x8xf32, #tpu.memory_space<vmem>>, vector<16x16x8xf32>
    tpu.vector_store %arg8[%c1_74, %c1_75, %c0_76], %61 {strides = array<i32>} : memref<18x18x8xf32, #tpu.memory_space<vmem>>, vector<16x16x8xf32>,
    %c0_77 = arith.constant 0 : index
    %c0_78 = arith.constant 0 : index
    %c0_79 = arith.constant 0 : index
    %63 = vector.load %arg8[%c0_77, %c0_78, %c0_79] : memref<18x18x8xf32, #tpu.memory_space<vmem>>, vector<16x16x8xf32>
    %64 = vector.shape_cast %63 : vector<16x16x8xf32> to vector<256x8xf32>
    %65 = arith.truncf %64 : vector<256x8xf32> to vector<256x8xbf16>
    %c0_80 = arith.constant 0 : index
    %c0_81 = arith.constant 0 : index
    %66 = vector.load %arg10[%c0_80, %c0_81] : memref<256x72xbf16, #tpu.memory_space<vmem>>, vector<256x8xbf16>
    tpu.vector_store %arg10[%c0_80, %c0_81], %65 {strides = array<i32>} : memref<256x72xbf16, #tpu.memory_space<vmem>>, vector<256x8xbf16>,
    %c0_82 = arith.constant 0 : index
    %c1_83 = arith.constant 1 : index
    %c0_84 = arith.constant 0 : index
    %67 = vector.load %arg8[%c0_82, %c1_83, %c0_84] : memref<18x18x8xf32, #tpu.memory_space<vmem>>, vector<16x16x8xf32>
    %68 = vector.shape_cast %67 : vector<16x16x8xf32> to vector<256x8xf32>
    %69 = arith.truncf %68 : vector<256x8xf32> to vector<256x8xbf16>
    %c0_85 = arith.constant 0 : index
    %c8_86 = arith.constant 8 : index
    %70 = vector.load %arg10[%c0_85, %c8_86] : memref<256x72xbf16, #tpu.memory_space<vmem>>, vector<256x8xbf16>
    tpu.vector_store %arg10[%c0_85, %c8_86], %69 {strides = array<i32>} : memref<256x72xbf16, #tpu.memory_space<vmem>>, vector<256x8xbf16>,
    %c0_87 = arith.constant 0 : index
    %c2_88 = arith.constant 2 : index
    %c0_89 = arith.constant 0 : index
    %71 = vector.load %arg8[%c0_87, %c2_88, %c0_89] : memref<18x18x8xf32, #tpu.memory_space<vmem>>, vector<16x16x8xf32>
    %72 = vector.shape_cast %71 : vector<16x16x8xf32> to vector<256x8xf32>
    %73 = arith.truncf %72 : vector<256x8xf32> to vector<256x8xbf16>
    %c0_90 = arith.constant 0 : index
    %c16_91 = arith.constant 16 : index
    %74 = vector.load %arg10[%c0_90, %c16_91] : memref<256x72xbf16, #tpu.memory_space<vmem>>, vector<256x8xbf16>
    tpu.vector_store %arg10[%c0_90, %c16_91], %73 {strides = array<i32>} : memref<256x72xbf16, #tpu.memory_space<vmem>>, vector<256x8xbf16>,
    %c1_92 = arith.constant 1 : index
    %c0_93 = arith.constant 0 : index
    %c0_94 = arith.constant 0 : index
    %75 = vector.load %arg8[%c1_92, %c0_93, %c0_94] : memref<18x18x8xf32, #tpu.memory_space<vmem>>, vector<16x16x8xf32>
    %76 = vector.shape_cast %75 : vector<16x16x8xf32> to vector<256x8xf32>
    %77 = arith.truncf %76 : vector<256x8xf32> to vector<256x8xbf16>
    %c0_95 = arith.constant 0 : index
    %c24_96 = arith.constant 24 : index
    %78 = vector.load %arg10[%c0_95, %c24_96] : memref<256x72xbf16, #tpu.memory_space<vmem>>, vector<256x8xbf16>
    tpu.vector_store %arg10[%c0_95, %c24_96], %77 {strides = array<i32>} : memref<256x72xbf16, #tpu.memory_space<vmem>>, vector<256x8xbf16>,
    %c1_97 = arith.constant 1 : index
    %c1_98 = arith.constant 1 : index
    %c0_99 = arith.constant 0 : index
    %79 = vector.load %arg8[%c1_97, %c1_98, %c0_99] : memref<18x18x8xf32, #tpu.memory_space<vmem>>, vector<16x16x8xf32>
    %80 = vector.shape_cast %79 : vector<16x16x8xf32> to vector<256x8xf32>
    %81 = arith.truncf %80 : vector<256x8xf32> to vector<256x8xbf16>
    %c0_100 = arith.constant 0 : index
    %c32_101 = arith.constant 32 : index
    %82 = vector.load %arg10[%c0_100, %c32_101] : memref<256x72xbf16, #tpu.memory_space<vmem>>, vector<256x8xbf16>
    tpu.vector_store %arg10[%c0_100, %c32_101], %81 {strides = array<i32>} : memref<256x72xbf16, #tpu.memory_space<vmem>>, vector<256x8xbf16>,
    %c1_102 = arith.constant 1 : index
    %c2_103 = arith.constant 2 : index
    %c0_104 = arith.constant 0 : index
    %83 = vector.load %arg8[%c1_102, %c2_103, %c0_104] : memref<18x18x8xf32, #tpu.memory_space<vmem>>, vector<16x16x8xf32>
    %84 = vector.shape_cast %83 : vector<16x16x8xf32> to vector<256x8xf32>
    %85 = arith.truncf %84 : vector<256x8xf32> to vector<256x8xbf16>
    %c0_105 = arith.constant 0 : index
    %c40 = arith.constant 40 : index
    %86 = vector.load %arg10[%c0_105, %c40] : memref<256x72xbf16, #tpu.memory_space<vmem>>, vector<256x8xbf16>
    tpu.vector_store %arg10[%c0_105, %c40], %85 {strides = array<i32>} : memref<256x72xbf16, #tpu.memory_space<vmem>>, vector<256x8xbf16>,
    %c2_106 = arith.constant 2 : index
    %c0_107 = arith.constant 0 : index
    %c0_108 = arith.constant 0 : index
    %87 = vector.load %arg8[%c2_106, %c0_107, %c0_108] : memref<18x18x8xf32, #tpu.memory_space<vmem>>, vector<16x16x8xf32>
    %88 = vector.shape_cast %87 : vector<16x16x8xf32> to vector<256x8xf32>
    %89 = arith.truncf %88 : vector<256x8xf32> to vector<256x8xbf16>
    %c0_109 = arith.constant 0 : index
    %c48 = arith.constant 48 : index
    %90 = vector.load %arg10[%c0_109, %c48] : memref<256x72xbf16, #tpu.memory_space<vmem>>, vector<256x8xbf16>
    tpu.vector_store %arg10[%c0_109, %c48], %89 {strides = array<i32>} : memref<256x72xbf16, #tpu.memory_space<vmem>>, vector<256x8xbf16>,
    %c2_110 = arith.constant 2 : index
    %c1_111 = arith.constant 1 : index
    %c0_112 = arith.constant 0 : index
    %91 = vector.load %arg8[%c2_110, %c1_111, %c0_112] : memref<18x18x8xf32, #tpu.memory_space<vmem>>, vector<16x16x8xf32>
    %92 = vector.shape_cast %91 : vector<16x16x8xf32> to vector<256x8xf32>
    %93 = arith.truncf %92 : vector<256x8xf32> to vector<256x8xbf16>
    %c0_113 = arith.constant 0 : index
    %c56 = arith.constant 56 : index
    %94 = vector.load %arg10[%c0_113, %c56] : memref<256x72xbf16, #tpu.memory_space<vmem>>, vector<256x8xbf16>
    tpu.vector_store %arg10[%c0_113, %c56], %93 {strides = array<i32>} : memref<256x72xbf16, #tpu.memory_space<vmem>>, vector<256x8xbf16>,
    %c2_114 = arith.constant 2 : index
    %c2_115 = arith.constant 2 : index
    %c0_116 = arith.constant 0 : index
    %95 = vector.load %arg8[%c2_114, %c2_115, %c0_116] : memref<18x18x8xf32, #tpu.memory_space<vmem>>, vector<16x16x8xf32>
    %96 = vector.shape_cast %95 : vector<16x16x8xf32> to vector<256x8xf32>
    %97 = arith.truncf %96 : vector<256x8xf32> to vector<256x8xbf16>
    %c0_117 = arith.constant 0 : index
    %c64 = arith.constant 64 : index
    %98 = vector.load %arg10[%c0_117, %c64] : memref<256x72xbf16, #tpu.memory_space<vmem>>, vector<256x8xbf16>
    tpu.vector_store %arg10[%c0_117, %c64], %97 {strides = array<i32>} : memref<256x72xbf16, #tpu.memory_space<vmem>>, vector<256x8xbf16>,
    %c0_118 = arith.constant 0 : index
    %c0_119 = arith.constant 0 : index
    %99 = vector.load %arg10[%c0_118, %c0_119] : memref<256x72xbf16, #tpu.memory_space<vmem>>, vector<256x72xbf16>
    %c0_120 = arith.constant 0 : index
    %c0_121 = arith.constant 0 : index
    %100 = vector.load %arg4[%c0_120, %c0_121] : memref<72x8xbf16, #tpu.memory_space<vmem>>, vector<72x8xbf16>
    %cst_122 = arith.constant dense<0.000000e+00> : vector<256x8xf32>
    %101 = tpu.matmul %99, %100, %cst_122 {dimension_numbers = #tpu.dot_dimension_numbers<[1], [0], [0], [1], [0, 0, 1, 1], [], []>} : vector<256x72xbf16>, vector<72x8xbf16>, vector<256x8xf32> -> vector<256x8xf32>
    %c0_123 = arith.constant 0 : index
    %c0_124 = arith.constant 0 : index
    %102 = vector.load %arg5[%c0_123, %c0_124] : memref<1x8xf32, #tpu.memory_space<vmem>>, vector<1x8xf32>
    %103 = vector.broadcast %102 : vector<1x8xf32> to vector<256x8xf32>
    %104 = arith.addf %101, %103 : vector<256x8xf32>
    %cst_125 = arith.constant 0.000000e+00 : f32
    %105 = vector.broadcast %cst_125 : f32 to vector<256x8xf32>
    %106 = arith.maximumf %104, %105 : vector<256x8xf32>
    %107 = tpu.transpose %106, [1, 0] : vector<256x8xf32> -> vector<8x256xf32>
    %108 = vector.shape_cast %107 : vector<8x256xf32> to vector<1x8x256xf32>
    %c0_126 = arith.constant 0 : index
    %c0_127 = arith.constant 0 : index
    %c0_128 = arith.constant 0 : index
    %109 = vector.load %arg6[%c0_126, %c0_127, %c0_128] : memref<1x8x256xf32, #tpu.memory_space<vmem>>, vector<1x8x256xf32>
    tpu.vector_store %arg6[%c0_126, %c0_127, %c0_128], %108 {strides = array<i32>} : memref<1x8x256xf32, #tpu.memory_space<vmem>>, vector<1x8x256xf32>,
    return
  }
  func.func @transform_0(%arg0: i32) -> (i32, i32, i32) {
    %c0_i32 = arith.constant 0 : i32
    %c0_i32_0 = arith.constant 0 : i32
    %c0_i32_1 = arith.constant 0 : i32
    return %arg0, %c0_i32, %c0_i32_0 : i32, i32, i32
  }
  func.func @transform_1(%arg0: i32) -> (i32, i32) {
    %c0_i32 = arith.constant 0 : i32
    %c0_i32_0 = arith.constant 0 : i32
    %c0_i32_1 = arith.constant 0 : i32
    return %c0_i32, %c0_i32_0 : i32, i32
  }
  func.func @transform_2(%arg0: i32) -> (i32, i32) {
    %c0_i32 = arith.constant 0 : i32
    %c0_i32_0 = arith.constant 0 : i32
    %c0_i32_1 = arith.constant 0 : i32
    return %c0_i32, %c0_i32_0 : i32, i32
  }
  func.func @transform_3(%arg0: i32) -> (i32, i32) {
    %c0_i32 = arith.constant 0 : i32
    %c0_i32_0 = arith.constant 0 : i32
    %c0_i32_1 = arith.constant 0 : i32
    return %c0_i32, %c0_i32_0 : i32, i32
  }
  func.func @transform_4(%arg0: i32) -> (i32, i32) {
    %c0_i32 = arith.constant 0 : i32
    %c0_i32_0 = arith.constant 0 : i32
    %c0_i32_1 = arith.constant 0 : i32
    return %c0_i32, %c0_i32_0 : i32, i32
  }
  func.func @transform_5(%arg0: i32) -> (i32, i32, i32) {
    %c0_i32 = arith.constant 0 : i32
    %c0_i32_0 = arith.constant 0 : i32
    %c0_i32_1 = arith.constant 0 : i32
    return %arg0, %c0_i32, %c0_i32_0 : i32, i32, i32
  }
}

</mosaic_0001>

<bundles_post_ra>
// kernel: block_forward.1
= control target key start
LH: loop header
LB: loop body
LE: loop exit
PB: predicated region body
PF: predicated region fallthrough
CT: control target
= control target key end

     0   :  { %s5326_s18 = smov 0   ;;  %s7461_s0 = inlined_call_operand.vmem [shape: f32[2,4,256], index: 0, kind: input, shape index: {}]   ;;  %s7462_s1 = inlined_call_operand.vmem [shape: bf16[36,8], index: 1, kind: input, shape index: {}]   ;;  %s7463_s2 = inlined_call_operand.vmem [shape: f32[1,8], index: 2, kind: input, shape index: {}]   ;;  %s7464_s3 = inlined_call_operand.vmem [shape: bf16[72,8], index: 3, kind: input, shape index: {}]   ;;  %s7465_s4 = inlined_call_operand.vmem [shape: f32[1,8], index: 4, kind: input, shape index: {}]   ;;  %s7466_s5 = inlined_call_operand.vmem [shape: f32[2,8,256], index: 5, kind: output, shape index: {}]  }
   0x1 LB: > { %s5008_s19 = sadd.s32 4294967295, %s5281_s18   ;;  %p5012_p0 = scmp.ge.s32.totalorder %s5281_s18, 1  ;;  %s5281_s18 = sphi %s5326_s18, %s15_s18  }
   0x2   : > { %p187_p1 = scmp.lt.s32.totalorder %s5281_s18, 3 }
   0x4   : > { %p188_p2 = pnand %p5012_p0, %p187_p1 }
   0x5   : > { %p215_p3 = scmp.lt.s32.totalorder (!%p188_p2), %s5008_s19, 1  ;;  %s5284_s24 = smov (!%p188_p2), 8  }
   0x6   : > { %191 = sbr.rel (%p188_p2) target bundleno = 2327 (0x917), region = 40  ;;  %s5285_s25 = smov (!%p188_p2), 4  }
   0x7   : > { %s5286_s26 = smov (!%p188_p2), 12   ;;  %s5287_s27 = smov (!%p188_p2), 16  }
   0x8   : > { %s5288_s28 = smov (!%p188_p2), 20   ;;  %s5289_s29 = smov (!%p188_p2), 24  }
   0x9   : > { %s5290_s30 = smov (!%p188_p2), 28   ;;  %s5291_s6 = smov (!%p188_p2), 32  }
   0xa   : > { %s5292_s17 = smov (!%p188_p2), 40   ;;  %s5294_s21 = smov (!%p188_p2), 56  }
   0xb   : > { %s7468_s19 = smov (!%p215_p3, %s5008_s19), 1  ;;  %vm226_vm0 = vcmask 31744   ;;  %vm229_vm1 = vcmask 25600   ;;  %v5283_v2 = vmov 0.0   ;;  %vm235_vm2 = vcmask 24576   ;;  %s5295_s22 = smov 64  }
   0xc   : > { %s5203_s20 = sshll.u32 %s7468_s19, 3  ;;  %228 = vst.msk [vmem:[#allocation2 + $0x8] sm:$0xff] %vm226_vm0, %v5283_v2  ;;  %vm486_vm3 = vcmask 27648   ;;  %vm711_vm4 = vcmask 60448   ;;  %vm936_vm5 = vcmask 93248   ;;  %vm1161_vm6 = vcmask 126048  }
   0xd   : > { %s219_s23 = scalar_lea.vmem %s7461_s0, %s5203_s20  ;;  %230 = vst.msk [vmem:[#allocation2 + $0x10] sm:$0x3] %vm229_vm1, %v5283_v2  ;;  %vm1386_vm7 = vcmask 158848   ;;  %vm1611_vm8 = vcmask 191648   ;;  %vm1837_vm9 = vcmask 224448   ;;  %vm2062_vm10 = vcmask 257248  }
   0xe   : > { %v318_v0 = vld [vmem:[%s219_s23] sm:$0xff]  ;;  %234 = vst.msk [vmem:[#allocation2 + $0x1a8] sm:$0x3] %vm229_vm1, %v5283_v2  ;;  %vm2287_vm11 = vcmask 290048   ;;  %vm2505_vm12 = vcmask 1041408   ;;  %vm2456_vm13 = vcmask 293888  }
   0xf   : > { %320 = vst [vmem:[#allocation1] ss:$2 sm:$0xff] %v318_v0  ;;  %vm272_vm14 = vcmask 64512   ;;  %vm281_vm15 = vcmask 57344   ;;  %vm2727_vm1 = vcmask 60416   ;;  %s5293_s20 = smov 48  }
  0x10   : > { %254 = vst.msk [vmem:[#allocation2 + $0x11] sm:$0x1] %vm235_vm2, %v5283_v2  ;;  %s5204_s10 = sshll.u32 %s7468_s19, 4 }
  0x11   : > { %271 = vst.msk [vmem:[#allocation2 + $0x1a9] sm:$0x1] %vm235_vm2, %v5283_v2  ;;  %s224_s13 = scalar_lea.vmem %s7466_s5, %s5204_s10 }
  0x12   : > { %227 = vst.msk [vmem:[#allocation2] sm:$0xff] %vm226_vm0, %v5283_v2 }
  0x13   : > { %232 = vst.msk [vmem:[#allocation2 + $0x198] sm:$0xff] %vm226_vm0, %v5283_v2 }
  0x14   : > { %233 = vst.msk [vmem:[#allocation2 + $0x1a0] sm:$0xff] %vm226_vm0, %v5283_v2  ;;  %v520_v37 = vld [vmem:[#allocation2 + $0x9] sm:$0xff] }
  0x15   : > { %237 = vst.msk [vmem:[#allocation2 + $0x18] sm:$0x1] %vm235_vm2, %v5283_v2  ;;  %v552_v39 = vpack.c.bf16 %v520_v37, %v520_v37 }
  0x16   : > { %v321_v1 = vld.sshfl [vmem:[#allocation1] sm:$0xff pattern:$0x75316420]  ;;  %v322_v3 = vld.sshfl [vmem:[#allocation1 + $0x8] sm:$0xff pattern:$0x75316420] }
  0x17   : > { %325 = vxpose.xlu0.b32.start.end [1/1] (short) %v321_v1, 128  ;;  %238 = vst.msk [vmem:[#allocation2 + $0x30] sm:$0x1] %vm235_vm2, %v5283_v2  ;;  %v745_v4 = vld [vmem:[#allocation2 + $0xa] sm:$0xff] }
  0x18   : > { %239 = vst.msk [vmem:[#allocation2 + $0x48] sm:$0x1] %vm235_vm2, %v5283_v2  ;;  %v777_v5 = vpack.c.bf16 %v745_v4, %v745_v4 }
  0x19   : > { %240 = vst.msk [vmem:[#allocation2 + $0x60] sm:$0x1] %vm235_vm2, %v5283_v2  ;;  %v519_v32 = vld [vmem:[#allocation2 + $0x1] sm:$0xff] }
  0x1a   : > { %241 = vst.msk [vmem:[#allocation2 + $0x78] sm:$0x1] %vm235_vm2, %v5283_v2  ;;  %842 = vrot.lane.b32.xlu2 %v777_v5, %s5284_s24  ;;  %v551_v34 = vpack.c.bf16 %v519_v32, %v519_v32  ;;  %v744_v50 = vld [vmem:[#allocation2 + $0x2] sm:$0xff] }
  0x1b   : > { %242 = vst.msk [vmem:[#allocation2 + $0x90] sm:$0x1] %vm235_vm2, %v5283_v2  ;;  %v776_v51 = vpack.c.bf16 %v744_v50, %v744_v50 }
  0x1c   : > { %243 = vst.msk [vmem:[#allocation2 + $0xa8] sm:$0x1] %vm235_vm2, %v5283_v2  ;;  %615 = vrot.lane.b32.xlu1 %v551_v34, %s5285_s25 }
  0x1d   : > { %244 = vst.msk [vmem:[#allocation2 + $0xc0] sm:$0x1] %vm235_vm2, %v5283_v2 }
  0x1e   : > { %245 = vst.msk [vmem:[#allocation2 + $0xd8] sm:$0x1] %vm235_vm2, %v5283_v2 }
  0x1f   : > { %246 = vst.msk [vmem:[#allocation2 + $0xf0] sm:$0x1] %vm235_vm2, %v5283_v2 }
  0x20   : > { %247 = vst.msk [vmem:[#allocation2 + $0x108] sm:$0x1] %vm235_vm2, %v5283_v2 }
  0x21   : > { %248 = vst.msk [vmem:[#allocation2 + $0x120] sm:$0x1] %vm235_vm2, %v5283_v2 }
  0x22   : > { %249 = vst.msk [vmem:[#allocation2 + $0x138] sm:$0x1] %vm235_vm2, %v5283_v2 }
  0x23   : > { %250 = vst.msk [vmem:[#allocation2 + $0x150] sm:$0x1] %vm235_vm2, %v5283_v2 }
  0x24   : > { %251 = vst.msk [vmem:[#allocation2 + $0x168] sm:$0x1] %vm235_vm2, %v5283_v2  ;;  %617 = vrot.lane.b32.xlu1 %v552_v39, %s5285_s25 }
  0x25   : > { %252 = vst.msk [vmem:[#allocation2 + $0x180] sm:$0x1] %vm235_vm2, %v5283_v2 }
  0x26   : > { %255 = vst.msk [vmem:[#allocation2 + $0x29] sm:$0x1] %vm235_vm2, %v5283_v2 }
  0x27   : > { %256 = vst.msk [vmem:[#allocation2 + $0x41] sm:$0x1] %vm235_vm2, %v5283_v2 }
  0x28   : > { %257 = vst.msk [vmem:[#allocation2 + $0x59] sm:$0x1] %vm235_vm2, %v5283_v2 }
  0x29   : > { %258 = vst.msk [vmem:[#allocation2 + $0x71] sm:$0x1] %vm235_vm2, %v5283_v2 }
  0x2a   : > { %259 = vst.msk [vmem:[#allocation2 + $0x89] sm:$0x1] %vm235_vm2, %v5283_v2 }
  0x2b   : > { %260 = vst.msk [vmem:[#allocation2 + $0xa1] sm:$0x1] %vm235_vm2, %v5283_v2 }
  0x2c   : > { %261 = vst.msk [vmem:[#allocation2 + $0xb9] sm:$0x1] %vm235_vm2, %v5283_v2  ;;  %840 = vrot.lane.b32.xlu1 %v776_v51, %s5284_s24 }
  0x2d   : > { %262 = vst.msk [vmem:[#allocation2 + $0xd1] sm:$0x1] %vm235_vm2, %v5283_v2 }
  0x2e   : > { %263 = vst.msk [vmem:[#allocation2 + $0xe9] sm:$0x1] %vm235_vm2, %v5283_v2 }
  0x2f   : > { %264 = vst.msk [vmem:[#allocation2 + $0x101] sm:$0x1] %vm235_vm2, %v5283_v2 }
  0x30   : > { %265 = vst.msk [vmem:[#allocation2 + $0x119] sm:$0x1] %vm235_vm2, %v5283_v2 }
  0x31   : > { %266 = vst.msk [vmem:[#allocation2 + $0x131] sm:$0x1] %vm235_vm2, %v5283_v2 }
  0x32   : > { %267 = vst.msk [vmem:[#allocation2 + $0x149] sm:$0x1] %vm235_vm2, %v5283_v2 }
  0x33   : > { %268 = vst.msk [vmem:[#allocation2 + $0x161] sm:$0x1] %vm235_vm2, %v5283_v2 }
  0x34   : > { %269 = vst.msk [vmem:[#allocation2 + $0x179] sm:$0x1] %vm235_vm2, %v5283_v2 }
  0x35   : > { %270 = vst.msk [vmem:[#allocation2 + $0x191] sm:$0x1] %vm235_vm2, %v5283_v2 }
  0x36   : > { %236 = vst.msk [vmem:[#allocation2] sm:$0x1] %vm235_vm2, %v5283_v2 }
  0x37   : > { %253 = vst.msk [vmem:[#allocation2 + $0x198] sm:$0x1] %vm235_vm2, %v5283_v2  ;;  %vm2952_vm2 = vcmask 126016  }
  0x38   : > { %273 = vst.msk [vmem:[#allocation3] sm:$0xff] %vm272_vm14, %v5283_v2 }
  0x39   : > { %274 = vst.msk [vmem:[#allocation3 + $0x8] sm:$0xff] %vm272_vm14, %v5283_v2 }
  0x3a   : > { %278 = vst.msk [vmem:[#allocation3 + $0x198] sm:$0xff] %vm272_vm14, %v5283_v2 }
  0x3b   : > { %279 = vst.msk [vmem:[#allocation3 + $0x1a0] sm:$0xff] %vm272_vm14, %v5283_v2 }
  0x3c   : > { %282 = vst.msk [vmem:[#allocation3] sm:$0x1] %vm281_vm15, %v5283_v2 }
  0x3d   : > { %283 = vst.msk [vmem:[#allocation3 + $0x18] sm:$0x1] %vm281_vm15, %v5283_v2 }
  0x3e   : > { %284 = vst.msk [vmem:[#allocation3 + $0x30] sm:$0x1] %vm281_vm15, %v5283_v2 }
  0x3f   : > { %285 = vst.msk [vmem:[#allocation3 + $0x48] sm:$0x1] %vm281_vm15, %v5283_v2 }
  0x40   : > { %286 = vst.msk [vmem:[#allocation3 + $0x60] sm:$0x1] %vm281_vm15, %v5283_v2 }
  0x41   : > { %287 = vst.msk [vmem:[#allocation3 + $0x78] sm:$0x1] %vm281_vm15, %v5283_v2 }
  0x42   : > { %288 = vst.msk [vmem:[#allocation3 + $0x90] sm:$0x1] %vm281_vm15, %v5283_v2 }
  0x43   : > { %289 = vst.msk [vmem:[#allocation3 + $0xa8] sm:$0x1] %vm281_vm15, %v5283_v2 }
  0x44   : > { %290 = vst.msk [vmem:[#allocation3 + $0xc0] sm:$0x1] %vm281_vm15, %v5283_v2 }
  0x45   : > { %291 = vst.msk [vmem:[#allocation3 + $0xd8] sm:$0x1] %vm281_vm15, %v5283_v2 }
  0x46   : > { %292 = vst.msk [vmem:[#allocation3 + $0xf0] sm:$0x1] %vm281_vm15, %v5283_v2 }
  0x47   : > { %293 = vst.msk [vmem:[#allocation3 + $0x108] sm:$0x1] %vm281_vm15, %v5283_v2 }
  0x48   : > { %294 = vst.msk [vmem:[#allocation3 + $0x120] sm:$0x1] %vm281_vm15, %v5283_v2 }
  0x49   : > { %295 = vst.msk [vmem:[#allocation3 + $0x138] sm:$0x1] %vm281_vm15, %v5283_v2 }
  0x4a   : > { %296 = vst.msk [vmem:[#allocation3 + $0x150] sm:$0x1] %vm281_vm15, %v5283_v2 }
  0x4b   : > { %297 = vst.msk [vmem:[#allocation3 + $0x168] sm:$0x1] %vm281_vm15, %v5283_v2 }
  0x4c   : > { %298 = vst.msk [vmem:[#allocation3 + $0x180] sm:$0x1] %vm281_vm15, %v5283_v2 }
  0x4d   : > { %299 = vst.msk [vmem:[#allocation3 + $0x198] sm:$0x1] %vm281_vm15, %v5283_v2 }
  0x4e   : > { %301 = vst.msk [vmem:[#allocation3 + $0x29] sm:$0x1] %vm281_vm15, %v5283_v2 }
  0x4f   : > { %302 = vst.msk [vmem:[#allocation3 + $0x41] sm:$0x1] %vm281_vm15, %v5283_v2 }
  0x50   : > { %303 = vst.msk [vmem:[#allocation3 + $0x59] sm:$0x1] %vm281_vm15, %v5283_v2 }
  0x51   : > { %304 = vst.msk [vmem:[#allocation3 + $0x71] sm:$0x1] %vm281_vm15, %v5283_v2 }
  0x52   : > { %305 = vst.msk [vmem:[#allocation3 + $0x89] sm:$0x1] %vm281_vm15, %v5283_v2 }
  0x53   : > { %306 = vst.msk [vmem:[#allocation3 + $0xa1] sm:$0x1] %vm281_vm15, %v5283_v2 }
  0x54   : > { %307 = vst.msk [vmem:[#allocation3 + $0xb9] sm:$0x1] %vm281_vm15, %v5283_v2 }
  0x55   : > { %308 = vst.msk [vmem:[#allocation3 + $0xd1] sm:$0x1] %vm281_vm15, %v5283_v2 }
  0x56   : > { %309 = vst.msk [vmem:[#allocation3 + $0xe9] sm:$0x1] %vm281_vm15, %v5283_v2 }
  0x57   : > { %310 = vst.msk [vmem:[#allocation3 + $0x101] sm:$0x1] %vm281_vm15, %v5283_v2 }
  0x58   : > { %311 = vst.msk [vmem:[#allocation3 + $0x119] sm:$0x1] %vm281_vm15, %v5283_v2 }
  0x59   : > { %312 = vst.msk [vmem:[#allocation3 + $0x131] sm:$0x1] %vm281_vm15, %v5283_v2 }
  0x5a   : > { %313 = vst.msk [vmem:[#allocation3 + $0x149] sm:$0x1] %vm281_vm15, %v5283_v2 }
  0x5b   : > { %314 = vst.msk [vmem:[#allocation3 + $0x161] sm:$0x1] %vm281_vm15, %v5283_v2 }
  0x5c   : > { %315 = vst.msk [vmem:[#allocation3 + $0x179] sm:$0x1] %vm281_vm15, %v5283_v2 }
  0x5d   : > { %316 = vst.msk [vmem:[#allocation3 + $0x191] sm:$0x1] %vm281_vm15, %v5283_v2 }
  0x74   : > { %v5484_v48 = vpop.permute.xlu2 %842 }
  0x97   : > { %357 = vxpose.xlu0.b32.start.end [1/1] (short) %v322_v3, 128 }
  0xbb   : > { %v341_v6 = vpop.trf.xlu0 }
  0xbc   : > { %390 = vst.msk [vmem:[#allocation2 + $0x19] sm:$0xff] %vm226_vm0, %v341_v6 }
  0xc3   : > { %v342_v7 = vpop.trf.xlu0  ;;  %v521_v8 = vld [vmem:[#allocation2 + $0x19] sm:$0xff] }
  0xc4   : > { %v424_v9 = vld [vmem:[#allocation2 + $0x18] sm:$0xff]  ;;  %391 = vst.msk [vmem:[#allocation2 + $0x21] sm:$0xff] %vm226_vm0, %v342_v7  ;;  %v5425_v10 = vpack.c.bf16 %v521_v8, %v521_v8 }
  0xc5   : > { %v5427_v11 = vpack.c.bf16 %v424_v9, %v424_v9 }
  0xc6   : > { %619 = vrot.lane.b32.xlu2 %v5425_v10, %s5285_s25 }
  0xc7   : > { %489 = vst.msk [vmem:[#allocation4 + $0x8] sm:$0xf] %vm486_vm3, %v5427_v11 }
  0xcb   : > { %v343_v12 = vpop.trf.xlu0  ;;  %v522_v13 = vld [vmem:[#allocation2 + $0x21] sm:$0xff] }
  0xcc   : > { %v425_v14 = vld [vmem:[#allocation2 + $0x20] sm:$0xff]  ;;  %392 = vst.msk [vmem:[#allocation2 + $0x31] sm:$0xff] %vm226_vm0, %v343_v12  ;;  %v554_v15 = vpack.c.bf16 %v522_v13, %v522_v13 }
  0xcd   : > { %v5434_v16 = vpack.c.bf16 %v425_v14, %v425_v14  ;;  %v747_v12 = vld [vmem:[#allocation2 + $0x22] sm:$0xff] }
  0xce   : > { %621 = vrot.lane.b32.xlu2 %v554_v15, %s5285_s25 }
  0xcf   : > { %490 = vst.msk [vmem:[#allocation4 + $0xc] sm:$0xf] %vm486_vm3, %v5434_v16 }
  0xd3   : > { %v344_v17 = vpop.trf.xlu0  ;;  %v426_v18 = vld [vmem:[#allocation2 + $0x30] sm:$0xff] }
  0xd4   : > { %393 = vst.msk [vmem:[#allocation2 + $0x39] sm:$0xff] %vm226_vm0, %v344_v17  ;;  %v5440_v19 = vpack.c.bf16 %v426_v18, %v426_v18  ;;  %v5523_v17 = vpack.c.bf16 %v747_v12, %v747_v12 }
  0xd6   : > { %491 = vst.msk [vmem:[#allocation4 + $0x10] sm:$0xf] %vm486_vm3, %v5440_v19 }
  0xdb   : > { %v345_v20 = vpop.trf.xlu0  ;;  %v427_v21 = vld [vmem:[#allocation2 + $0x38] sm:$0xff] }
  0xdc   : > { %394 = vst.msk [vmem:[#allocation2 + $0x49] sm:$0xff] %vm226_vm0, %v345_v20  ;;  %v5445_v22 = vpack.c.bf16 %v427_v21, %v427_v21  ;;  %v523_v21 = vld [vmem:[#allocation2 + $0x31] sm:$0xff] }
  0xde   : > { %492 = vst.msk [vmem:[#allocation4 + $0x14] sm:$0xf] %vm486_vm3, %v5445_v22 }
  0xe3   : > { %v346_v23 = vpop.trf.xlu0  ;;  %v428_v24 = vld [vmem:[#allocation2 + $0x48] sm:$0xff] }
  0xe4   : > { %395 = vst.msk [vmem:[#allocation2 + $0x51] sm:$0xff] %vm226_vm0, %v346_v23  ;;  %v5450_v25 = vpack.c.bf16 %v428_v24, %v428_v24  ;;  %v524_v23 = vld [vmem:[#allocation2 + $0x39] sm:$0xff]  ;;  %v525_v51 = vld [vmem:[#allocation2 + $0x49] sm:$0xff] }
  0xe6   : > { %493 = vst.msk [vmem:[#allocation4 + $0x18] sm:$0xf] %vm486_vm3, %v5450_v25 }
  0xeb   : > { %v347_v26 = vpop.trf.xlu0  ;;  %v429_v27 = vld [vmem:[#allocation2 + $0x50] sm:$0xff] }
  0xec   : > { %396 = vst.msk [vmem:[#allocation2 + $0x61] sm:$0xff] %vm226_vm0, %v347_v26  ;;  %v5455_v28 = vpack.c.bf16 %v429_v27, %v429_v27  ;;  %v555_v27 = vpack.c.bf16 %v523_v21, %v523_v21  ;;  %v751_v21 = vld [vmem:[#allocation2 + $0x52] sm:$0xff] }
  0xee   : > { %494 = vst.msk [vmem:[#allocation4 + $0x1c] sm:$0xf] %vm486_vm3, %v5455_v28 }
  0xf3   : > { %v348_v29 = vpop.trf.xlu0  ;;  %v430_v30 = vld [vmem:[#allocation2 + $0x60] sm:$0xff] }
  0xf4   : > { %397 = vst.msk [vmem:[#allocation2 + $0x69] sm:$0xff] %vm226_vm0, %v348_v29  ;;  %v5460_v31 = vpack.c.bf16 %v430_v30, %v430_v30  ;;  %v5533_v29 = vpack.c.bf16 %v524_v23, %v524_v23  ;;  %v750_v23 = vld [vmem:[#allocation2 + $0x4a] sm:$0xff] }
  0xf6   : > { %495 = vst.msk [vmem:[#allocation4 + $0x20] sm:$0xf] %vm486_vm3, %v5460_v31 }
  0xfb   : > { %v349_v33 = vpop.trf.xlu0  ;;  %v431_v35 = vld [vmem:[#allocation2 + $0x68] sm:$0xff] }
  0xfc   : > { %398 = vst.msk [vmem:[#allocation2 + $0x79] sm:$0xff] %vm226_vm0, %v349_v33  ;;  %v5466_v36 = vpack.c.bf16 %v431_v35, %v431_v35 }
  0xfe   : > { %496 = vst.msk [vmem:[#allocation4 + $0x24] sm:$0xf] %vm486_vm3, %v5466_v36 }
 0x103   : > { %v350_v38 = vpop.trf.xlu0  ;;  %v432_v40 = vld [vmem:[#allocation2 + $0x78] sm:$0xff] }
 0x104   : > { %399 = vst.msk [vmem:[#allocation2 + $0x81] sm:$0xff] %vm226_vm0, %v350_v38  ;;  %v5471_v41 = vpack.c.bf16 %v432_v40, %v432_v40  ;;  %v749_v40 = vld [vmem:[#allocation2 + $0x3a] sm:$0xff] }
 0x106   : > { %497 = vst.msk [vmem:[#allocation4 + $0x28] sm:$0xf] %vm486_vm3, %v5471_v41 }
 0x10b   : > { %v351_v42 = vpop.trf.xlu0  ;;  %v433_v43 = vld [vmem:[#allocation2 + $0x80] sm:$0xff] }
 0x10c   : > { %400 = vst.msk [vmem:[#allocation2 + $0x91] sm:$0xff] %vm226_vm0, %v351_v42  ;;  %v5477_v44 = vpack.c.bf16 %v433_v43, %v433_v43  ;;  %v748_v42 = vld [vmem:[#allocation2 + $0x32] sm:$0xff] }
 0x10e   : > { %498 = vst.msk [vmem:[#allocation4 + $0x2c] sm:$0xf] %vm486_vm3, %v5477_v44 }
 0x113   : > { %v352_v45 = vpop.trf.xlu0  ;;  %v434_v46 = vld [vmem:[#allocation2 + $0x90] sm:$0xff] }
 0x114   : > { %401 = vst.msk [vmem:[#allocation2 + $0x99] sm:$0xff] %vm226_vm0, %v352_v45  ;;  %v5482_v47 = vpack.c.bf16 %v434_v46, %v434_v46  ;;  %v781_v46 = vpack.c.bf16 %v749_v40, %v749_v40 }
 0x116   : > { %499 = vst.msk [vmem:[#allocation4 + $0x30] sm:$0xf] %vm486_vm3, %v5482_v47 }
 0x11b   : > { %v353_v49 = vpop.trf.xlu0  ;;  %v435_v52 = vld [vmem:[#allocation2 + $0x98] sm:$0xff] }
 0x11c   : > { %402 = vst.msk [vmem:[#allocation2 + $0xa9] sm:$0xff] %vm226_vm0, %v353_v49  ;;  %v5489_v53 = vpack.c.bf16 %v435_v52, %v435_v52  ;;  %v780_v49 = vpack.c.bf16 %v748_v42, %v748_v42  ;;  %v526_v52 = vld [vmem:[#allocation2 + $0x51] sm:$0xff] }
 0x11e   : > { %500 = vst.msk [vmem:[#allocation4 + $0x34] sm:$0xf] %vm486_vm3, %v5489_v53 }
 0x120   : > { %v620_v54 = vpop.permute.xlu2 %619 }
 0x121   : > { %714 = vst.msk [vmem:[#allocation4 + $0x8] sm:$0xf] %vm711_vm4, %v620_v54 }
 0x123   : > { %v354_v55 = vpop.trf.xlu0  ;;  %v436_v56 = vld [vmem:[#allocation2 + $0xa8] sm:$0xff] }
 0x124   : > { %403 = vst.msk [vmem:[#allocation2 + $0xb1] sm:$0xff] %vm226_vm0, %v354_v55  ;;  %v5496_v57 = vpack.c.bf16 %v436_v56, %v436_v56  ;;  %v557_v56 = vpack.c.bf16 %v525_v51, %v525_v51 }
 0x126   : > { %501 = vst.msk [vmem:[#allocation4 + $0x38] sm:$0xf] %vm486_vm3, %v5496_v57 }
 0x128   : > { %v622_v58 = vpop.permute.xlu2 %621 }
 0x129   : > { %715 = vst.msk [vmem:[#allocation4 + $0xc] sm:$0xf] %vm711_vm4, %v622_v58  ;;  %v558_v58 = vpack.c.bf16 %v526_v52, %v526_v52 }
 0x12b   : > { %v355_v59 = vpop.trf.xlu0  ;;  %v437_v60 = vld [vmem:[#allocation2 + $0xb0] sm:$0xff] }
 0x12c   : > { %404 = vst.msk [vmem:[#allocation2 + $0xc1] sm:$0xff] %vm226_vm0, %v355_v59  ;;  %v5502_v61 = vpack.c.bf16 %v437_v60, %v437_v60  ;;  %v422_v60 = vld [vmem:[#allocation2] sm:$0xff] }
 0x12e   : > { %502 = vst.msk [vmem:[#allocation4 + $0x3c] sm:$0xf] %vm486_vm3, %v5502_v61 }
 0x133   : > { %v356_v62 = vpop.trf.xlu0  ;;  %v438_v63 = vld [vmem:[#allocation2 + $0xc0] sm:$0xff] }
 0x134   : > { %405 = vst.msk [vmem:[#allocation2 + $0xc9] sm:$0xff] %vm226_vm0, %v356_v62  ;;  %v5507_v0 = vpack.c.bf16 %v438_v63, %v438_v63 }
 0x136   : > { %503 = vst.msk [vmem:[#allocation4 + $0x40] sm:$0xf] %vm486_vm3, %v5507_v0 }
 0x13b   : > { %v373_v1 = vpop.trf.xlu0  ;;  %v439_v3 = vld [vmem:[#allocation2 + $0xc8] sm:$0xff] }
 0x13c   : > { %406 = vst.msk [vmem:[#allocation2 + $0xd9] sm:$0xff] %vm226_vm0, %v373_v1  ;;  %v5512_v4 = vpack.c.bf16 %v439_v3, %v439_v3  ;;  %v616_v1 = vpop.permute.xlu1 %615  ;;  %v454_v3 = vpack.c.bf16 %v422_v60, %v422_v60  ;;  %v753_v60 = vld [vmem:[#allocation2 + $0x6a] sm:$0xff] }
 0x13e   : > { %504 = vst.msk [vmem:[#allocation4 + $0x44] sm:$0xf] %vm486_vm3, %v5512_v4 }
 0x13f   : > { %487 = vst.msk [vmem:[#allocation4] sm:$0xf] %vm486_vm3, %v454_v3 }
 0x140   : > { %712 = vst.msk [vmem:[#allocation4] sm:$0xf] %vm711_vm4, %v616_v1  ;;  %v5612_v1 = vpack.c.bf16 %v753_v60, %v753_v60  ;;  %v532_v60 = vld [vmem:[#allocation2 + $0x99] sm:$0xff] }
 0x143   : > { %v374_v5 = vpop.trf.xlu0  ;;  %v537_v6 = vld [vmem:[#allocation2 + $0xd9] sm:$0xff] }
 0x144   : > { %v440_v7 = vld [vmem:[#allocation2 + $0xd8] sm:$0xff]  ;;  %407 = vst.msk [vmem:[#allocation2 + $0xe1] sm:$0xff] %vm226_vm0, %v374_v5  ;;  %v569_v8 = vpack.c.bf16 %v537_v6, %v537_v6 }
 0x145   : > { %v5517_v9 = vpack.c.bf16 %v440_v7, %v440_v7 }
 0x146   : > { %651 = vrot.lane.b32.xlu1 %v569_v8, %s5285_s25 }
 0x147   : > { %505 = vst.msk [vmem:[#allocation4 + $0x48] sm:$0xf] %vm486_vm3, %v5517_v9 }
 0x14b   : > { %v375_v13 = vpop.trf.xlu0  ;;  %v538_v14 = vld [vmem:[#allocation2 + $0xe1] sm:$0xff] }
 0x14c   : > { %v441_v15 = vld [vmem:[#allocation2 + $0xe0] sm:$0xff]  ;;  %408 = vst.msk [vmem:[#allocation2 + $0xf1] sm:$0xff] %vm226_vm0, %v375_v13  ;;  %v570_v18 = vpack.c.bf16 %v538_v14, %v538_v14  ;;  %v423_v13 = vld [vmem:[#allocation2 + $0x8] sm:$0xff] }
 0x14d   : > { %v5525_v20 = vpack.c.bf16 %v441_v15, %v441_v15  ;;  %v455_v14 = vpack.c.bf16 %v423_v13, %v423_v13  ;;  %v618_v15 = vpop.permute.xlu1 %617 }
 0x14e   : > { %846 = vrot.lane.b32.xlu1 %v5523_v17, %s5284_s24  ;;  %653 = vrot.lane.b32.xlu2 %v570_v18, %s5285_s25  ;;  %v746_v18 = vld [vmem:[#allocation2 + $0x1a] sm:$0xff] }
 0x14f   : > { %506 = vst.msk [vmem:[#allocation4 + $0x4c] sm:$0xf] %vm486_vm3, %v5525_v20 }
 0x150   : > { %488 = vst.msk [vmem:[#allocation4 + $0x4] sm:$0xf] %vm486_vm3, %v455_v14 }
 0x151   : > { %713 = vst.msk [vmem:[#allocation4 + $0x4] sm:$0xf] %vm711_vm4, %v618_v15 }
 0x152   : > { %938 = vst.msk [vmem:[#allocation4 + $0x4] sm:$0xf] %vm936_vm5, %v5484_v48  ;;  %v527_v48 = vld [vmem:[#allocation2 + $0x61] sm:$0xff] }
 0x153   : > { %v376_v24 = vpop.trf.xlu0  ;;  %v442_v26 = vld [vmem:[#allocation2 + $0xf0] sm:$0xff]  ;;  %v5594_v40 = vpack.c.bf16 %v527_v48, %v527_v48 }
 0x154   : > { %409 = vst.msk [vmem:[#allocation2 + $0xf9] sm:$0xff] %vm226_vm0, %v376_v24  ;;  %v5535_v30 = vpack.c.bf16 %v442_v26, %v442_v26  ;;  %v539_v32 = vld [vmem:[#allocation2 + $0xf1] sm:$0xff]  ;;  %v778_v26 = vpack.c.bf16 %v746_v18, %v746_v18 }
 0x155   : > { %v5542_v33 = vpack.c.bf16 %v539_v32, %v539_v32  ;;  %v783_v32 = vpack.c.bf16 %v751_v21, %v751_v21 }
 0x156   : > { %623 = vrot.lane.b32.xlu1 %v555_v27, %s5285_s25  ;;  %625 = vrot.lane.b32.xlu2 %v5533_v29, %s5285_s25  ;;  %507 = vst.msk [vmem:[#allocation4 + $0x50] sm:$0xf] %vm486_vm3, %v5535_v30 }
 0x15b   : > { %v377_v34 = vpop.trf.xlu0  ;;  %v540_v35 = vld [vmem:[#allocation2 + $0xf9] sm:$0xff] }
 0x15c   : > { %v443_v37 = vld [vmem:[#allocation2 + $0xf8] sm:$0xff]  ;;  %410 = vst.msk [vmem:[#allocation2 + $0x109] sm:$0xff] %vm226_vm0, %v377_v34  ;;  %v572_v38 = vpack.c.bf16 %v540_v35, %v540_v35  ;;  %v5583_v34 = vpack.c.bf16 %v750_v23, %v750_v23 }
 0x15d   : > { %v5545_v39 = vpack.c.bf16 %v443_v37, %v443_v37  ;;  %v528_v37 = vld [vmem:[#allocation2 + $0x69] sm:$0xff] }
 0x15e   : > { %655 = vrot.lane.b32.xlu1 %v5542_v33, %s5285_s25  ;;  %657 = vrot.lane.b32.xlu2 %v572_v38, %s5285_s25  ;;  %v560_v42 = vpack.c.bf16 %v528_v37, %v528_v37 }
 0x15f   : > { %508 = vst.msk [vmem:[#allocation4 + $0x54] sm:$0xf] %vm486_vm3, %v5545_v39 }
 0x163   : > { %v378_v43 = vpop.trf.xlu0  ;;  %v444_v45 = vld [vmem:[#allocation2 + $0x108] sm:$0xff] }
 0x164   : > { %411 = vst.msk [vmem:[#allocation2 + $0x111] sm:$0xff] %vm226_vm0, %v378_v43  ;;  %v5553_v50 = vpack.c.bf16 %v444_v45, %v444_v45  ;;  %v541_v62 = vld [vmem:[#allocation2 + $0x109] sm:$0xff] }
 0x165   : > { %v573_v5 = vpack.c.bf16 %v541_v62, %v541_v62  ;;  %v752_v62 = vld [vmem:[#allocation2 + $0x62] sm:$0xff] }
 0x166   : > { %850 = vrot.lane.b32.xlu1 %v781_v46, %s5284_s24  ;;  %848 = vrot.lane.b32.xlu2 %v780_v49, %s5284_s24  ;;  %509 = vst.msk [vmem:[#allocation4 + $0x58] sm:$0xf] %vm486_vm3, %v5553_v50  ;;  %v784_v3 = vpack.c.bf16 %v752_v62, %v752_v62 }
 0x16b   : > { %v379_v54 = vpop.trf.xlu0  ;;  %v445_v55 = vld [vmem:[#allocation2 + $0x110] sm:$0xff] }
 0x16c   : > { %412 = vst.msk [vmem:[#allocation2 + $0x121] sm:$0xff] %vm226_vm0, %v379_v54  ;;  %v5560_v59 = vpack.c.bf16 %v445_v55, %v445_v55  ;;  %v542_v63 = vld [vmem:[#allocation2 + $0x111] sm:$0xff] }
 0x16d   : > { %v5567_v6 = vpack.c.bf16 %v542_v63, %v542_v63 }
 0x16e   : > { %627 = vrot.lane.b32.xlu1 %v557_v56, %s5285_s25  ;;  %629 = vrot.lane.b32.xlu2 %v558_v58, %s5285_s25  ;;  %510 = vst.msk [vmem:[#allocation4 + $0x5c] sm:$0xf] %vm486_vm3, %v5560_v59  ;;  %v841_v58 = vpop.permute.xlu1 %840 }
 0x16f   : > { %937 = vst.msk [vmem:[#allocation4] sm:$0xf] %vm936_vm5, %v841_v58  ;;  %v531_v58 = vld [vmem:[#allocation2 + $0x91] sm:$0xff] }
 0x170   : > { %v563_v62 = vpack.c.bf16 %v531_v58, %v531_v58  ;;  %v757_v58 = vld [vmem:[#allocation2 + $0x9a] sm:$0xff] }
 0x173   : > { %v380_v7 = vpop.trf.xlu0  ;;  %v446_v8 = vld [vmem:[#allocation2 + $0x120] sm:$0xff] }
 0x174   : > { %413 = vst.msk [vmem:[#allocation2 + $0x129] sm:$0xff] %vm226_vm0, %v380_v7  ;;  %v5571_v12 = vpack.c.bf16 %v446_v8, %v446_v8  ;;  %v543_v46 = vld [vmem:[#allocation2 + $0x121] sm:$0xff] }
 0x175   : > { %v575_v51 = vpack.c.bf16 %v543_v46, %v543_v46  ;;  %v530_v7 = vld [vmem:[#allocation2 + $0x81] sm:$0xff] }
 0x176   : > { %659 = vrot.lane.b32.xlu1 %v573_v5, %s5285_s25  ;;  %661 = vrot.lane.b32.xlu2 %v5567_v6, %s5285_s25  ;;  %511 = vst.msk [vmem:[#allocation4 + $0x60] sm:$0xf] %vm486_vm3, %v5571_v12  ;;  %v529_v5 = vld [vmem:[#allocation2 + $0x79] sm:$0xff]  ;;  %v5618_v14 = vpack.c.bf16 %v530_v7, %v530_v7 }
 0x177   : > { %v561_v13 = vpack.c.bf16 %v529_v5, %v529_v5 }
 0x17b   : > { %v381_v24 = vpop.trf.xlu0  ;;  %v447_v27 = vld [vmem:[#allocation2 + $0x128] sm:$0xff] }
 0x17c   : > { %414 = vst.msk [vmem:[#allocation2 + $0x139] sm:$0xff] %vm226_vm0, %v381_v24  ;;  %v5585_v35 = vpack.c.bf16 %v447_v27, %v447_v27  ;;  %v544_v49 = vld [vmem:[#allocation2 + $0x129] sm:$0xff] }
 0x17d   : > { %844 = vrot.lane.b32.xlu0 %v778_v26, %s5284_s24  ;;  %v576_v52 = vpack.c.bf16 %v544_v49, %v544_v49 }
 0x17e   : > { %854 = vrot.lane.b32.xlu1 %v783_v32, %s5284_s24  ;;  %852 = vrot.lane.b32.xlu2 %v5583_v34, %s5284_s24  ;;  %512 = vst.msk [vmem:[#allocation4 + $0x64] sm:$0xf] %vm486_vm3, %v5585_v35 }
 0x183   : > { %v382_v38 = vpop.trf.xlu0  ;;  %v448_v43 = vld [vmem:[#allocation2 + $0x138] sm:$0xff] }
 0x184   : > { %415 = vst.msk [vmem:[#allocation2 + $0x141] sm:$0xff] %vm226_vm0, %v382_v38  ;;  %v5599_v45 = vpack.c.bf16 %v448_v43, %v448_v43  ;;  %v545_v24 = vld [vmem:[#allocation2 + $0x139] sm:$0xff]  ;;  %v755_v38 = vld [vmem:[#allocation2 + $0x82] sm:$0xff] }
 0x185   : > { %v5631_v27 = vpack.c.bf16 %v545_v24, %v545_v24  ;;  %v787_v46 = vpack.c.bf16 %v755_v38, %v755_v38 }
 0x186   : > { %631 = vrot.lane.b32.xlu1 %v5594_v40, %s5285_s25  ;;  %633 = vrot.lane.b32.xlu2 %v560_v42, %s5285_s25  ;;  %513 = vst.msk [vmem:[#allocation4 + $0x68] sm:$0xf] %vm486_vm3, %v5599_v45  ;;  %v754_v42 = vld [vmem:[#allocation2 + $0x7a] sm:$0xff] }
 0x187   : > { %v786_v49 = vpack.c.bf16 %v754_v42, %v754_v42 }
 0x18b   : > { %v383_v54 = vpop.trf.xlu0  ;;  %v449_v55 = vld [vmem:[#allocation2 + $0x140] sm:$0xff] }
 0x18c   : > { %416 = vst.msk [vmem:[#allocation2 + $0x151] sm:$0xff] %vm226_vm0, %v383_v54  ;;  %v5604_v56 = vpack.c.bf16 %v449_v55, %v449_v55  ;;  %v546_v26 = vld [vmem:[#allocation2 + $0x141] sm:$0xff] }
 0x18d   : > { %v578_v32 = vpack.c.bf16 %v546_v26, %v546_v26  ;;  %v533_v26 = vld [vmem:[#allocation2 + $0xa9] sm:$0xff] }
 0x18e   : > { %663 = vrot.lane.b32.xlu1 %v575_v51, %s5285_s25  ;;  %665 = vrot.lane.b32.xlu2 %v576_v52, %s5285_s25  ;;  %514 = vst.msk [vmem:[#allocation4 + $0x6c] sm:$0xf] %vm486_vm3, %v5604_v56 }
 0x193   : > { %v384_v63 = vpop.trf.xlu0  ;;  %v450_v18 = vld [vmem:[#allocation2 + $0x150] sm:$0xff] }
 0x194   : > { %417 = vst.msk [vmem:[#allocation2 + $0x159] sm:$0xff] %vm226_vm0, %v384_v63  ;;  %v5625_v23 = vpack.c.bf16 %v450_v18, %v450_v18  ;;  %v564_v63 = vpack.c.bf16 %v532_v60, %v532_v60 }
 0x196   : > { %858 = vrot.lane.b32.xlu1 %v5612_v1, %s5284_s24  ;;  %856 = vrot.lane.b32.xlu2 %v784_v3, %s5284_s24  ;;  %515 = vst.msk [vmem:[#allocation4 + $0x70] sm:$0xf] %vm486_vm3, %v5625_v23  ;;  %v547_v3 = vld [vmem:[#allocation2 + $0x151] sm:$0xff] }
 0x19b   : > { %v385_v8 = vpop.trf.xlu0  ;;  %v451_v15 = vld [vmem:[#allocation2 + $0x158] sm:$0xff] }
 0x19c   : > { %418 = vst.msk [vmem:[#allocation2 + $0x169] sm:$0xff] %vm226_vm0, %v385_v8  ;;  %v5623_v21 = vpack.c.bf16 %v451_v15, %v451_v15  ;;  %v548_v5 = vld [vmem:[#allocation2 + $0x159] sm:$0xff] }
 0x19d   : > { %v5653_v15 = vpack.c.bf16 %v548_v5, %v548_v5  ;;  %v758_v5 = vld [vmem:[#allocation2 + $0xaa] sm:$0xff] }
 0x19e   : > { %635 = vrot.lane.b32.xlu1 %v561_v13, %s5285_s25  ;;  %637 = vrot.lane.b32.xlu2 %v5618_v14, %s5285_s25  ;;  %516 = vst.msk [vmem:[#allocation4 + $0x74] sm:$0xf] %vm486_vm3, %v5623_v21  ;;  %v579_v13 = vpack.c.bf16 %v547_v3, %v547_v3 }
 0x1a3   : > { %v386_v48 = vpop.trf.xlu0  ;;  %v452_v52 = vld [vmem:[#allocation2 + $0x168] sm:$0xff] }
 0x1a4   : > { %419 = vst.msk [vmem:[#allocation2 + $0x171] sm:$0xff] %vm226_vm0, %v386_v48  ;;  %v5641_v54 = vpack.c.bf16 %v452_v52, %v452_v52  ;;  %v565_v48 = vpack.c.bf16 %v533_v26, %v533_v26  ;;  %v759_v26 = vld [vmem:[#allocation2 + $0xb2] sm:$0xff] }
 0x1a6   : > { %667 = vrot.lane.b32.xlu1 %v5631_v27, %s5285_s25  ;;  %669 = vrot.lane.b32.xlu2 %v578_v32, %s5285_s25  ;;  %517 = vst.msk [vmem:[#allocation4 + $0x78] sm:$0xf] %vm486_vm3, %v5641_v54  ;;  %v756_v32 = vld [vmem:[#allocation2 + $0x92] sm:$0xff] }
 0x1a8   : > { %v654_v37 = vpop.permute.xlu2 %653 }
 0x1a9   : > { %731 = vst.msk [vmem:[#allocation4 + $0x4c] sm:$0xf] %vm711_vm4, %v654_v37  ;;  %v5662_v37 = vpack.c.bf16 %v756_v32, %v756_v32  ;;  %v5695_v32 = vpack.c.bf16 %v759_v26, %v759_v26 }
 0x1ab   : > { %v998_v43 = vld [vmem:[#allocation2 + $0x170] sm:$0xff] }
 0x1ac   : > { %v1030_v51 = vpack.c.bf16 %v998_v43, %v998_v43 }
 0x1ae   : > { %862 = vrot.lane.b32.xlu1 %v787_v46, %s5284_s24  ;;  %860 = vrot.lane.b32.xlu2 %v786_v49, %s5284_s24  ;;  %518 = vst.msk [vmem:[#allocation4 + $0x7c] sm:$0xf] %vm486_vm3, %v1030_v51  ;;  %v534_v46 = vld [vmem:[#allocation2 + $0xb1] sm:$0xff]  ;;  %vm3177_vm3 = vcmask 191616  }
 0x1af   : > { %1123 = vrot.lane.b32.xlu0 %v1030_v51, %s5286_s26  ;;  %v5673_v51 = vpack.c.bf16 %v534_v46, %v534_v46 }
 0x1b0   : > { %v626_v55 = vpop.permute.xlu2 %625 }
 0x1b1   : > { %717 = vst.msk [vmem:[#allocation4 + $0x14] sm:$0xf] %vm711_vm4, %v626_v55 }
 0x1b6   : > { %639 = vrot.lane.b32.xlu1 %v563_v62, %s5285_s25  ;;  %641 = vrot.lane.b32.xlu2 %v564_v63, %s5285_s25  ;;  %v789_v62 = vpack.c.bf16 %v757_v58, %v757_v58 }
 0x1b7   : > { %1290 = vrot.lane.b32.xlu0 %v5425_v10, %s5287_s27  ;;  %v387_v10 = vpop.trf.xlu0 }
 0x1b8   : > { %v652_v7 = vpop.permute.xlu1 %651  ;;  %v658_v8 = vpop.permute.xlu2 %657  ;;  %420 = vst.msk [vmem:[#allocation2 + $0x181] sm:$0xff] %vm226_vm0, %v387_v10 }
 0x1b9   : > { %730 = vst.msk [vmem:[#allocation4 + $0x48] sm:$0xf] %vm711_vm4, %v652_v7  ;;  %v1209_v7 = vld [vmem:[#allocation2 + $0xc9] sm:$0xff] }
 0x1ba   : > { %733 = vst.msk [vmem:[#allocation4 + $0x54] sm:$0xf] %vm711_vm4, %v658_v8  ;;  %v1241_v10 = vpack.c.bf16 %v1209_v7, %v1209_v7 }
 0x1be   : > { %671 = vrot.lane.b32.xlu1 %v579_v13, %s5285_s25  ;;  %673 = vrot.lane.b32.xlu2 %v5653_v15, %s5285_s25  ;;  %v790_v13 = vpack.c.bf16 %v758_v5, %v758_v5 }
 0x1bf   : > { %1296 = vrot.lane.b32.xlu0 %v5533_v29, %s5287_s27  ;;  %v549_v29 = vld [vmem:[#allocation2 + $0x169] sm:$0xff]  ;;  %v388_v38 = vpop.trf.xlu0 }
 0x1c0   : > { %v847_v18 = vpop.permute.xlu1 %846  ;;  %v849_v24 = vpop.permute.xlu2 %848  ;;  %421 = vst.msk [vmem:[#allocation2 + $0x189] sm:$0xff] %vm226_vm0, %v388_v38  ;;  %v581_v49 = vpack.c.bf16 %v549_v29, %v549_v29  ;;  %v761_v38 = vld [vmem:[#allocation2 + $0xca] sm:$0xff]  ;;  %vm275_vm0 = vcmask 58368  }
 0x1c1   : > { %940 = vst.msk [vmem:[#allocation4 + $0xc] sm:$0xf] %vm936_vm5, %v847_v18 }
 0x1c2   : > { %276 = vst.msk [vmem:[#allocation3 + $0x10] sm:$0x3] %vm275_vm0, %v5283_v2 }
 0x1c3   : > { %280 = vst.msk [vmem:[#allocation3 + $0x1a8] sm:$0x3] %vm275_vm0, %v5283_v2 }
 0x1c4   : > { %300 = vst.msk [vmem:[#allocation3 + $0x11] sm:$0x1] %vm281_vm15, %v5283_v2 }
 0x1c5   : > { %317 = vst.msk [vmem:[#allocation3 + $0x1a9] sm:$0x1] %vm281_vm15, %v5283_v2 }
 0x1c6   : > { %643 = vrot.lane.b32.xlu1 %v565_v48, %s5285_s25  ;;  %864 = vrot.lane.b32.xlu2 %v5662_v37, %s5284_s24 }
 0x1c7   : > { %1302 = vrot.lane.b32.xlu0 %v5594_v40, %s5287_s27  ;;  %v550_v40 = vld [vmem:[#allocation2 + $0x171] sm:$0xff] }
 0x1c8   : > { %v624_v42 = vpop.permute.xlu1 %623  ;;  %v630_v43 = vpop.permute.xlu2 %629  ;;  %v582_v60 = vpack.c.bf16 %v550_v40, %v550_v40 }
 0x1c9   : > { %716 = vst.msk [vmem:[#allocation4 + $0x10] sm:$0xf] %vm711_vm4, %v624_v42  ;;  %v760_v42 = vld [vmem:[#allocation2 + $0xc2] sm:$0xff] }
 0x1ca   : > { %941 = vst.msk [vmem:[#allocation4 + $0x10] sm:$0xf] %vm936_vm5, %v849_v24  ;;  %v792_v46 = vpack.c.bf16 %v760_v42, %v760_v42  ;;  %v768_v42 = vld [vmem:[#allocation2 + $0x122] sm:$0xff] }
 0x1cb   : > { %719 = vst.msk [vmem:[#allocation4 + $0x1c] sm:$0xf] %vm711_vm4, %v630_v43  ;;  %v793_v43 = vpack.c.bf16 %v761_v38, %v761_v38  ;;  %v769_v38 = vld [vmem:[#allocation2 + $0x12a] sm:$0xff] }
 0x1ce   : > { %645 = vrot.lane.b32.xlu2 %v5673_v51, %s5285_s25  ;;  %675 = vrot.lane.b32.xlu1 %v581_v49, %s5285_s25 }
 0x1cf   : > { %1308 = vrot.lane.b32.xlu0 %v5618_v14, %s5287_s27  ;;  %v535_v14 = vld [vmem:[#allocation2 + $0xc1] sm:$0xff] }
 0x1d0   : > { %v656_v52 = vpop.permute.xlu1 %655  ;;  %v662_v55 = vpop.permute.xlu2 %661  ;;  %v5686_v8 = vpack.c.bf16 %v535_v14, %v535_v14 }
 0x1d1   : > { %732 = vst.msk [vmem:[#allocation4 + $0x50] sm:$0xf] %vm711_vm4, %v656_v52  ;;  %v763_v52 = vld [vmem:[#allocation2 + $0xe2] sm:$0xff] }
 0x1d2   : > { %735 = vst.msk [vmem:[#allocation4 + $0x5c] sm:$0xf] %vm711_vm4, %v662_v55  ;;  %v762_v55 = vld [vmem:[#allocation2 + $0xda] sm:$0xff]  ;;  %v795_v58 = vpack.c.bf16 %v763_v52, %v763_v52 }
 0x1d3   : > { %v770_v52 = vld [vmem:[#allocation2 + $0x13a] sm:$0xff] }
 0x1d6   : > { %866 = vrot.lane.b32.xlu1 %v789_v62, %s5284_s24  ;;  %677 = vrot.lane.b32.xlu2 %v582_v60, %s5285_s25  ;;  %v5710_v60 = vpack.c.bf16 %v762_v55, %v762_v55 }
 0x1d7   : > { %1314 = vrot.lane.b32.xlu0 %v565_v48, %s5287_s27 }
 0x1d8   : > { %v851_v63 = vpop.permute.xlu1 %850  ;;  %v853_v3 = vpop.permute.xlu2 %852 }
 0x1d9   : > { %942 = vst.msk [vmem:[#allocation4 + $0x14] sm:$0xf] %vm936_vm5, %v851_v63  ;;  %v765_v63 = vld [vmem:[#allocation2 + $0xfa] sm:$0xff] }
 0x1da   : > { %v5720_v14 = vpack.c.bf16 %v765_v63, %v765_v63  ;;  %v772_v63 = vld [vmem:[#allocation2 + $0x152] sm:$0xff] }
 0x1de   : > { %647 = vrot.lane.b32.xlu1 %v5686_v8, %s5285_s25  ;;  %868 = vrot.lane.b32.xlu2 %v790_v13, %s5284_s24  ;;  %v1224_v13 = vld [vmem:[#allocation2 + $0x181] sm:$0xff] }
 0x1df   : > { %1320 = vrot.lane.b32.xlu0 %v1241_v10, %s5287_s27 }
 0x1e0   : > { %v628_v18 = vpop.permute.xlu1 %627  ;;  %v634_v24 = vpop.permute.xlu2 %633 }
 0x1e1   : > { %718 = vst.msk [vmem:[#allocation4 + $0x18] sm:$0xf] %vm711_vm4, %v628_v18  ;;  %v766_v18 = vld [vmem:[#allocation2 + $0x10a] sm:$0xff] }
 0x1e2   : > { %943 = vst.msk [vmem:[#allocation4 + $0x18] sm:$0xf] %vm936_vm5, %v853_v3  ;;  %v764_v3 = vld [vmem:[#allocation2 + $0xf2] sm:$0xff] }
 0x1e3   : > { %721 = vst.msk [vmem:[#allocation4 + $0x24] sm:$0xf] %vm711_vm4, %v634_v24  ;;  %v796_v5 = vpack.c.bf16 %v764_v3, %v764_v3  ;;  %v1256_v24 = vpack.c.bf16 %v1224_v13, %v1224_v13  ;;  %v774_v13 = vld [vmem:[#allocation2 + $0x16a] sm:$0xff] }
 0x1e6   : > { %870 = vrot.lane.b32.xlu1 %v5695_v32, %s5284_s24  ;;  %649 = vrot.lane.b32.xlu2 %v1241_v10, %s5285_s25  ;;  %v767_v10 = vld [vmem:[#allocation2 + $0x112] sm:$0xff] }
 0x1e7   : > { %1326 = vrot.lane.b32.xlu0 %v5542_v33, %s5287_s27  ;;  %v799_v26 = vpack.c.bf16 %v767_v10, %v767_v10 }
 0x1e8   : > { %v660_v48 = vpop.permute.xlu1 %659  ;;  %v666_v29 = vpop.permute.xlu2 %665 }
 0x1e9   : > { %734 = vst.msk [vmem:[#allocation4 + $0x58] sm:$0xf] %vm711_vm4, %v660_v48  ;;  %v798_v48 = vpack.c.bf16 %v766_v18, %v766_v18  ;;  %v806_v18 = vpack.c.bf16 %v774_v13, %v774_v13  ;;  %v1201_v13 = vld [vmem:[#allocation2 + $0x69] sm:$0xff] }
 0x1ea   : > { %737 = vst.msk [vmem:[#allocation4 + $0x64] sm:$0xf] %vm711_vm4, %v666_v29 }
 0x1ee   : > { %874 = vrot.lane.b32.xlu1 %v793_v43, %s5284_s24  ;;  %872 = vrot.lane.b32.xlu2 %v792_v46, %s5284_s24  ;;  %v801_v43 = vpack.c.bf16 %v769_v38, %v769_v38  ;;  %v5733_v46 = vpack.c.bf16 %v768_v42, %v768_v42 }
 0x1ef   : > { %1332 = vrot.lane.b32.xlu0 %v5567_v6, %s5287_s27  ;;  %v845_v49 = vpop.permute.xlu0 %844 }
 0x1f0   : > { %939 = vst.msk [vmem:[#allocation4 + $0x8] sm:$0xf] %vm936_vm5, %v845_v49  ;;  %v855_v33 = vpop.permute.xlu1 %854  ;;  %v857_v40 = vpop.permute.xlu2 %856 }
 0x1f1   : > { %944 = vst.msk [vmem:[#allocation4 + $0x1c] sm:$0xf] %vm936_vm5, %v855_v33 }
 0x1f6   : > { %878 = vrot.lane.b32.xlu1 %v795_v58, %s5284_s24  ;;  %876 = vrot.lane.b32.xlu2 %v5710_v60, %s5284_s24  ;;  %v802_v58 = vpack.c.bf16 %v770_v52, %v770_v52 }
 0x1f7   : > { %1338 = vrot.lane.b32.xlu0 %v5631_v27, %s5287_s27 }
 0x1f8   : > { %v632_v6 = vpop.permute.xlu1 %631  ;;  %v638_v62 = vpop.permute.xlu2 %637 }
 0x1f9   : > { %720 = vst.msk [vmem:[#allocation4 + $0x20] sm:$0xf] %vm711_vm4, %v632_v6 }
 0x1fa   : > { %945 = vst.msk [vmem:[#allocation4 + $0x20] sm:$0xf] %vm936_vm5, %v857_v40  ;;  %v771_v40 = vld [vmem:[#allocation2 + $0x142] sm:$0xff] }
 0x1fb   : > { %723 = vst.msk [vmem:[#allocation4 + $0x2c] sm:$0xf] %vm711_vm4, %v638_v62  ;;  %v803_v55 = vpack.c.bf16 %v771_v40, %v771_v40  ;;  %v773_v62 = vld [vmem:[#allocation2 + $0x15a] sm:$0xff] }
 0x1fc   : > { %v805_v3 = vpack.c.bf16 %v773_v62, %v773_v62 }
 0x1fe   : > { %882 = vrot.lane.b32.xlu1 %v5720_v14, %s5284_s24  ;;  %880 = vrot.lane.b32.xlu2 %v796_v5, %s5284_s24  ;;  %v804_v5 = vpack.c.bf16 %v772_v63, %v772_v63 }
 0x1ff   : > { %1344 = vrot.lane.b32.xlu0 %v5653_v15, %s5287_s27 }
 0x200   : > { %v664_v27 = vpop.permute.xlu1 %663  ;;  %v670_v7 = vpop.permute.xlu2 %669 }
 0x201   : > { %736 = vst.msk [vmem:[#allocation4 + $0x60] sm:$0xf] %vm711_vm4, %v664_v27 }
 0x202   : > { %739 = vst.msk [vmem:[#allocation4 + $0x6c] sm:$0xf] %vm711_vm4, %v670_v7 }
 0x206   : > { %886 = vrot.lane.b32.xlu1 %v799_v26, %s5284_s24  ;;  %884 = vrot.lane.b32.xlu2 %v798_v48, %s5284_s24 }
 0x207   : > { %1350 = vrot.lane.b32.xlu0 %v1256_v24, %s5287_s27 }
 0x208   : > { %v859_v29 = vpop.permute.xlu1 %858  ;;  %v861_v15 = vpop.permute.xlu2 %860 }
 0x209   : > { %946 = vst.msk [vmem:[#allocation4 + $0x24] sm:$0xf] %vm936_vm5, %v859_v29 }
 0x20e   : > { %890 = vrot.lane.b32.xlu1 %v801_v43, %s5284_s24  ;;  %888 = vrot.lane.b32.xlu2 %v5733_v46, %s5284_s24 }
 0x20f   : > { %1517 = vrot.lane.b32.xlu0 %v5523_v17, %s5288_s28 }
 0x210   : > { %v636_v49 = vpop.permute.xlu1 %635  ;;  %v642_v33 = vpop.permute.xlu2 %641 }
 0x211   : > { %722 = vst.msk [vmem:[#allocation4 + $0x28] sm:$0xf] %vm711_vm4, %v636_v49 }
 0x212   : > { %947 = vst.msk [vmem:[#allocation4 + $0x28] sm:$0xf] %vm936_vm5, %v861_v15 }
 0x213   : > { %725 = vst.msk [vmem:[#allocation4 + $0x34] sm:$0xf] %vm711_vm4, %v642_v33 }
 0x216   : > { %894 = vrot.lane.b32.xlu1 %v803_v55, %s5284_s24  ;;  %892 = vrot.lane.b32.xlu2 %v802_v58, %s5284_s24  ;;  %v1000_v58 = vld [vmem:[#allocation2 + $0x188] sm:$0xff] }
 0x217   : > { %1523 = vrot.lane.b32.xlu0 %v5583_v34, %s5288_s28  ;;  %v775_v34 = vld [vmem:[#allocation2 + $0x172] sm:$0xff] }
 0x218   : > { %v668_v17 = vpop.permute.xlu1 %667  ;;  %v674_v6 = vpop.permute.xlu2 %673  ;;  %v807_v10 = vpack.c.bf16 %v775_v34, %v775_v34 }
 0x219   : > { %738 = vst.msk [vmem:[#allocation4 + $0x68] sm:$0xf] %vm711_vm4, %v668_v17 }
 0x21a   : > { %741 = vst.msk [vmem:[#allocation4 + $0x74] sm:$0xf] %vm711_vm4, %v674_v6  ;;  %v1032_v6 = vpack.c.bf16 %v1000_v58, %v1000_v58 }
 0x21e   : > { %898 = vrot.lane.b32.xlu1 %v805_v3, %s5284_s24  ;;  %896 = vrot.lane.b32.xlu2 %v804_v5, %s5284_s24  ;;  %v1198_v3 = vld [vmem:[#allocation2 + $0x49] sm:$0xff]  ;;  %v1196_v5 = vld [vmem:[#allocation2 + $0x31] sm:$0xff] }
 0x21f   : > { %1529 = vrot.lane.b32.xlu0 %v5612_v1, %s5288_s28 }
 0x220   : > { %v863_v27 = vpop.permute.xlu1 %862  ;;  %v865_v7 = vpop.permute.xlu2 %864 }
 0x221   : > { %948 = vst.msk [vmem:[#allocation4 + $0x2c] sm:$0xf] %vm936_vm5, %v863_v27  ;;  %v5911_v27 = vpack.c.bf16 %v1198_v3, %v1198_v3 }
 0x226   : > { %902 = vrot.lane.b32.xlu1 %v807_v10, %s5284_s24  ;;  %900 = vrot.lane.b32.xlu2 %v806_v18, %s5284_s24  ;;  %v1199_v10 = vld [vmem:[#allocation2 + $0x51] sm:$0xff] }
 0x227   : > { %1535 = vrot.lane.b32.xlu0 %v5662_v37, %s5288_s28 }
 0x228   : > { %v640_v24 = vpop.permute.xlu1 %639  ;;  %v646_v26 = vpop.permute.xlu2 %645 }
 0x229   : > { %724 = vst.msk [vmem:[#allocation4 + $0x30] sm:$0xf] %vm711_vm4, %v640_v24  ;;  %v5921_v24 = vpack.c.bf16 %v1201_v13, %v1201_v13 }
 0x22a   : > { %949 = vst.msk [vmem:[#allocation4 + $0x30] sm:$0xf] %vm936_vm5, %v865_v7  ;;  %v1228_v7 = vpack.c.bf16 %v1196_v5, %v1196_v5 }
 0x22b   : > { %727 = vst.msk [vmem:[#allocation4 + $0x3c] sm:$0xf] %vm711_vm4, %v646_v26  ;;  %v1231_v26 = vpack.c.bf16 %v1199_v10, %v1199_v10 }
 0x22e   : > { %1067 = vrot.lane.b32.xlu1 %v5434_v16, %s5286_s26  ;;  %1065 = vrot.lane.b32.xlu2 %v5427_v11, %s5286_s26 }
 0x22f   : > { %1541 = vrot.lane.b32.xlu0 %v5695_v32, %s5288_s28  ;;  %v5796_v32 = vpop.permute.xlu0 %1123 }
 0x230   : > { %v672_v1 = vpop.permute.xlu1 %671  ;;  %v678_v48 = vpop.permute.xlu2 %677 }
 0x231   : > { %740 = vst.msk [vmem:[#allocation4 + $0x70] sm:$0xf] %vm711_vm4, %v672_v1 }
 0x232   : > { %743 = vst.msk [vmem:[#allocation4 + $0x7c] sm:$0xf] %vm711_vm4, %v678_v48 }
 0x236   : > { %1071 = vrot.lane.b32.xlu1 %v5445_v22, %s5286_s26  ;;  %1069 = vrot.lane.b32.xlu2 %v5440_v19, %s5286_s26 }
 0x237   : > { %1547 = vrot.lane.b32.xlu0 %v5710_v60, %s5288_s28  ;;  %v1291_v29 = vpop.permute.xlu0 %1290 }
 0x238   : > { %v644_v16 = vpop.permute.xlu1 %643  ;;  %v869_v11 = vpop.permute.xlu2 %868 }
 0x239   : > { %726 = vst.msk [vmem:[#allocation4 + $0x38] sm:$0xf] %vm711_vm4, %v644_v16  ;;  %v1204_v16 = vld [vmem:[#allocation2 + $0x91] sm:$0xff] }
 0x23a   : > { %951 = vst.msk [vmem:[#allocation4 + $0x38] sm:$0xf] %vm936_vm5, %v869_v11  ;;  %v1202_v11 = vld [vmem:[#allocation2 + $0x79] sm:$0xff] }
 0x23e   : > { %1075 = vrot.lane.b32.xlu1 %v5455_v28, %s5286_s26  ;;  %1073 = vrot.lane.b32.xlu2 %v5450_v25, %s5286_s26 }
 0x23f   : > { %1553 = vrot.lane.b32.xlu0 %v5720_v14, %s5288_s28  ;;  %v5816_v42 = vpop.permute.xlu0 %1296 }
 0x240   : > { %v676_v22 = vpop.permute.xlu1 %675  ;;  %v650_v19 = vpop.permute.xlu2 %649 }
 0x241   : > { %742 = vst.msk [vmem:[#allocation4 + $0x78] sm:$0xf] %vm711_vm4, %v676_v22  ;;  %v5931_v22 = vpack.c.bf16 %v1204_v16, %v1204_v16  ;;  %v1422_v16 = vld [vmem:[#allocation2 + $0x3a] sm:$0xff] }
 0x242   : > { %729 = vst.msk [vmem:[#allocation4 + $0x44] sm:$0xf] %vm711_vm4, %v650_v19  ;;  %v1234_v19 = vpack.c.bf16 %v1202_v11, %v1202_v11 }
 0x246   : > { %1079 = vrot.lane.b32.xlu1 %v5466_v36, %s5286_s26  ;;  %1077 = vrot.lane.b32.xlu2 %v5460_v31, %s5286_s26 }
 0x247   : > { %1559 = vrot.lane.b32.xlu0 %v5733_v46, %s5288_s28  ;;  %v5826_v46 = vpop.permute.xlu0 %1302 }
 0x248   : > { %v867_v28 = vpop.permute.xlu1 %866  ;;  %v873_v37 = vpop.permute.xlu2 %872 }
 0x249   : > { %950 = vst.msk [vmem:[#allocation4 + $0x34] sm:$0xf] %vm936_vm5, %v867_v28 }
 0x24e   : > { %1083 = vrot.lane.b32.xlu1 %v5477_v44, %s5286_s26  ;;  %1081 = vrot.lane.b32.xlu2 %v5471_v41, %s5286_s26  ;;  %v1450_v44 = vld [vmem:[#allocation2 + $0x18a] sm:$0xff] }
 0x24f   : > { %1565 = vrot.lane.b32.xlu0 %v803_v55, %s5288_s28  ;;  %v1482_v15 = vpack.c.bf16 %v1450_v44, %v1450_v44  ;;  %v1195_v55 = vld [vmem:[#allocation2 + $0x21] sm:$0xff] }
 0x250   : > { %v648_v60 = vpop.permute.xlu1 %647  ;;  %v877_v14 = vpop.permute.xlu2 %876  ;;  %v1227_v17 = vpack.c.bf16 %v1195_v55, %v1195_v55 }
 0x251   : > { %728 = vst.msk [vmem:[#allocation4 + $0x40] sm:$0xf] %vm711_vm4, %v648_v60  ;;  %v1205_v60 = vld [vmem:[#allocation2 + $0x99] sm:$0xff]  ;;  %vm3402_vm4 = vcmask 257216  }
 0x252   : > { %953 = vst.msk [vmem:[#allocation4 + $0x40] sm:$0xf] %vm936_vm5, %v873_v37 }
 0x253   : > { %955 = vst.msk [vmem:[#allocation4 + $0x48] sm:$0xf] %vm936_vm5, %v877_v14  ;;  %v1237_v14 = vpack.c.bf16 %v1205_v60, %v1205_v60 }
 0x256   : > { %1087 = vrot.lane.b32.xlu1 %v5489_v53, %s5286_s26  ;;  %1085 = vrot.lane.b32.xlu2 %v5482_v47, %s5286_s26 }
 0x257   : > { %1571 = vrot.lane.b32.xlu0 %v806_v18, %s5288_s28 }
 0x258   : > { %v871_v31 = vpop.permute.xlu1 %870  ;;  %v881_v41 = vpop.permute.xlu2 %880 }
 0x259   : > { %952 = vst.msk [vmem:[#allocation4 + $0x3c] sm:$0xf] %vm936_vm5, %v871_v31 }
 0x25a   : > { %957 = vst.msk [vmem:[#allocation4 + $0x50] sm:$0xf] %vm936_vm5, %v881_v41 }
 0x25e   : > { %1091 = vrot.lane.b32.xlu1 %v5502_v61, %s5286_s26  ;;  %1089 = vrot.lane.b32.xlu2 %v5496_v57, %s5286_s26 }
 0x25f   : > { %1577 = vrot.lane.b32.xlu0 %v1482_v15, %s5288_s28 }
 0x260   : > { %v875_v53 = vpop.permute.xlu1 %874  ;;  %v885_v38 = vpop.permute.xlu2 %884 }
 0x261   : > { %954 = vst.msk [vmem:[#allocation4 + $0x44] sm:$0xf] %vm936_vm5, %v875_v53 }
 0x262   : > { %959 = vst.msk [vmem:[#allocation4 + $0x58] sm:$0xf] %vm936_vm5, %v885_v38 }
 0x266   : > { %1095 = vrot.lane.b32.xlu1 %v5512_v4, %s5286_s26  ;;  %1093 = vrot.lane.b32.xlu2 %v5507_v0, %s5286_s26 }
 0x267   : > { %1745 = vrot.lane.b32.xlu0 %v5450_v25, %s5289_s29  ;;  %v5840_v25 = vpop.permute.xlu0 %1308 }
 0x268   : > { %v879_v57 = vpop.permute.xlu1 %878  ;;  %v889_v43 = vpop.permute.xlu2 %888 }
 0x269   : > { %956 = vst.msk [vmem:[#allocation4 + $0x4c] sm:$0xf] %vm936_vm5, %v879_v57  ;;  %v1211_v57 = vld [vmem:[#allocation2 + $0xe1] sm:$0xff] }
 0x26a   : > { %961 = vst.msk [vmem:[#allocation4 + $0x60] sm:$0xf] %vm936_vm5, %v889_v43 }
 0x26e   : > { %1099 = vrot.lane.b32.xlu1 %v5525_v20, %s5286_s26  ;;  %1097 = vrot.lane.b32.xlu2 %v5517_v9, %s5286_s26 }
 0x26f   : > { %1751 = vrot.lane.b32.xlu0 %v5466_v36, %s5289_s29  ;;  %v5852_v33 = vpop.permute.xlu0 %1314 }
 0x270   : > { %v883_v0 = vpop.permute.xlu1 %882  ;;  %v893_v4 = vpop.permute.xlu2 %892 }
 0x271   : > { %958 = vst.msk [vmem:[#allocation4 + $0x54] sm:$0xf] %vm936_vm5, %v883_v0 }
 0x272   : > { %963 = vst.msk [vmem:[#allocation4 + $0x68] sm:$0xf] %vm936_vm5, %v893_v4 }
 0x276   : > { %1103 = vrot.lane.b32.xlu1 %v5545_v39, %s5286_s26  ;;  %1101 = vrot.lane.b32.xlu2 %v5535_v30, %s5286_s26 }
 0x277   : > { %1757 = vrot.lane.b32.xlu0 %v5482_v47, %s5289_s29 }
 0x278   : > { %v887_v20 = vpop.permute.xlu1 %886  ;;  %v897_v49 = vpop.permute.xlu2 %896 }
 0x279   : > { %960 = vst.msk [vmem:[#allocation4 + $0x5c] sm:$0xf] %vm936_vm5, %v887_v20  ;;  %v1214_v20 = vld [vmem:[#allocation2 + $0x109] sm:$0xff] }
 0x27a   : > { %965 = vst.msk [vmem:[#allocation4 + $0x70] sm:$0xf] %vm936_vm5, %v897_v49 }
 0x27e   : > { %1107 = vrot.lane.b32.xlu1 %v5560_v59, %s5286_s26  ;;  %1105 = vrot.lane.b32.xlu2 %v5553_v50, %s5286_s26  ;;  %v5864_v50 = vpop.permute.xlu0 %1320 }
 0x27f   : > { %1763 = vrot.lane.b32.xlu0 %v5502_v61, %s5289_s29 }
 0x280   : > { %v891_v36 = vpop.permute.xlu1 %890  ;;  %v901_v30 = vpop.permute.xlu2 %900 }
 0x281   : > { %962 = vst.msk [vmem:[#allocation4 + $0x64] sm:$0xf] %vm936_vm5, %v891_v36 }
 0x282   : > { %967 = vst.msk [vmem:[#allocation4 + $0x78] sm:$0xf] %vm936_vm5, %v901_v30  ;;  %v1246_v30 = vpack.c.bf16 %v1214_v20, %v1214_v20 }
 0x286   : > { %1111 = vrot.lane.b32.xlu1 %v5585_v35, %s5286_s26  ;;  %1109 = vrot.lane.b32.xlu2 %v5571_v12, %s5286_s26  ;;  %v5877_v35 = vpop.permute.xlu0 %1326 }
 0x287   : > { %1769 = vrot.lane.b32.xlu0 %v5517_v9, %s5289_s29 }
 0x288   : > { %v895_v47 = vpop.permute.xlu1 %894  ;;  %v1066_v61 = vpop.permute.xlu2 %1065 }
 0x289   : > { %964 = vst.msk [vmem:[#allocation4 + $0x6c] sm:$0xf] %vm936_vm5, %v895_v47  ;;  %v1219_v47 = vld [vmem:[#allocation2 + $0x141] sm:$0xff] }
 0x28a   : > { %1162 = vst.msk [vmem:[#allocation4] sm:$0xf] %vm1161_vm6, %v1066_v61  ;;  %v1217_v61 = vld [vmem:[#allocation2 + $0x129] sm:$0xff] }
 0x28b   : > { %1387 = vst.msk [vmem:[#allocation4] sm:$0xf] %vm1386_vm7, %v1291_v29  ;;  %v1210_v29 = vld [vmem:[#allocation2 + $0xd9] sm:$0xff] }
 0x28c   : > { %v5951_v15 = vpack.c.bf16 %v1210_v29, %v1210_v29 }
 0x28e   : > { %1115 = vrot.lane.b32.xlu1 %v5604_v56, %s5286_s26  ;;  %1113 = vrot.lane.b32.xlu2 %v5599_v45, %s5286_s26 }
 0x28f   : > { %1775 = vrot.lane.b32.xlu0 %v5545_v39, %s5289_s29  ;;  %v999_v39 = vld [vmem:[#allocation2 + $0x180] sm:$0xff] }
 0x290   : > { %v899_v9 = vpop.permute.xlu1 %898  ;;  %v1070_v59 = vpop.permute.xlu2 %1069  ;;  %v5887_v52 = vpack.c.bf16 %v999_v39, %v999_v39 }
 0x291   : > { %966 = vst.msk [vmem:[#allocation4 + $0x74] sm:$0xf] %vm936_vm5, %v899_v9  ;;  %v5985_v9 = vpack.c.bf16 %v1219_v47, %v1219_v47 }
 0x292   : > { %1191 = vst.msk [vmem:[#allocation4 + $0x74] sm:$0xf] %vm1161_vm6, %v5796_v32 }
 0x293   : > { %1164 = vst.msk [vmem:[#allocation4 + $0x8] sm:$0xf] %vm1161_vm6, %v1070_v59 }
 0x296   : > { %1119 = vrot.lane.b32.xlu1 %v5623_v21, %s5286_s26  ;;  %1117 = vrot.lane.b32.xlu2 %v5625_v23, %s5286_s26  ;;  %v5893_v21 = vpop.permute.xlu0 %1332 }
 0x297   : > { %1781 = vrot.lane.b32.xlu0 %v5571_v12, %s5289_s29 }
 0x298   : > { %v903_v45 = vpop.permute.xlu1 %902  ;;  %v1074_v40 = vpop.permute.xlu2 %1073 }
 0x299   : > { %968 = vst.msk [vmem:[#allocation4 + $0x7c] sm:$0xf] %vm936_vm5, %v903_v45  ;;  %v1222_v45 = vld [vmem:[#allocation2 + $0x169] sm:$0xff]  ;;  %vm3627_vm5 = vcmask 322816  }
 0x29a   : > { %1166 = vst.msk [vmem:[#allocation4 + $0x10] sm:$0xf] %vm1161_vm6, %v1074_v40  ;;  %v1220_v40 = vld [vmem:[#allocation2 + $0x151] sm:$0xff] }
 0x29e   : > { %1121 = vrot.lane.b32.xlu2 %v5641_v54, %s5286_s26  ;;  %1125 = vrot.lane.b32.xlu1 %v5887_v52, %s5286_s26  ;;  %v5905_v63 = vpop.permute.xlu0 %1338 }
 0x29f   : > { %1787 = vrot.lane.b32.xlu0 %v5604_v56, %s5289_s29 }
 0x2a0   : > { %v1068_v12 = vpop.permute.xlu1 %1067  ;;  %v1078_v23 = vpop.permute.xlu2 %1077 }
 0x2a1   : > { %1163 = vst.msk [vmem:[#allocation4 + $0x4] sm:$0xf] %vm1161_vm6, %v1068_v12  ;;  %v5997_v12 = vpack.c.bf16 %v1222_v45, %v1222_v45  ;;  %v1434_v45 = vld [vmem:[#allocation2 + $0xca] sm:$0xff] }
 0x2a2   : > { %1168 = vst.msk [vmem:[#allocation4 + $0x18] sm:$0xf] %vm1161_vm6, %v1078_v23  ;;  %v1252_v23 = vpack.c.bf16 %v1220_v40, %v1220_v40  ;;  %v1466_v40 = vpack.c.bf16 %v1434_v45, %v1434_v45 }
 0x2a3   : > { %1393 = vst.msk [vmem:[#allocation4 + $0x18] sm:$0xf] %vm1386_vm7, %v5826_v46  ;;  %v1243_v46 = vpack.c.bf16 %v1211_v57, %v1211_v57 }
 0x2a6   : > { %1292 = vrot.lane.b32.xlu1 %v1227_v17, %s5287_s27  ;;  %1127 = vrot.lane.b32.xlu2 %v1032_v6, %s5286_s26  ;;  %v5919_v18 = vpop.permute.xlu0 %1344 }
 0x2a7   : > { %1793 = vrot.lane.b32.xlu0 %v5641_v54, %s5289_s29 }
 0x2a8   : > { %v1072_v56 = vpop.permute.xlu1 %1071  ;;  %v1082_v62 = vpop.permute.xlu2 %1081 }
 0x2a9   : > { %1165 = vst.msk [vmem:[#allocation4 + $0xc] sm:$0xf] %vm1161_vm6, %v1072_v56  ;;  %v1223_v56 = vld [vmem:[#allocation2 + $0x171] sm:$0xff] }
 0x2aa   : > { %1170 = vst.msk [vmem:[#allocation4 + $0x20] sm:$0xf] %vm1161_vm6, %v1082_v62 }
 0x2ab   : > { %1390 = vst.msk [vmem:[#allocation4 + $0xc] sm:$0xf] %vm1386_vm7, %v5816_v42  ;;  %v1213_v42 = vld [vmem:[#allocation2 + $0xf9] sm:$0xff] }
 0x2ac   : > { %v5964_v43 = vpack.c.bf16 %v1213_v42, %v1213_v42 }
 0x2ae   : > { %1298 = vrot.lane.b32.xlu1 %v5911_v27, %s5287_s27  ;;  %1294 = vrot.lane.b32.xlu2 %v1228_v7, %s5287_s27  ;;  %v5933_v28 = vpop.permute.xlu0 %1350 }
 0x2af   : > { %1799 = vrot.lane.b32.xlu0 %v1032_v6, %s5289_s29  ;;  %v1225_v6 = vld [vmem:[#allocation2 + $0x189] sm:$0xff] }
 0x2b0   : > { %v1076_v54 = vpop.permute.xlu1 %1075  ;;  %v1086_v34 = vpop.permute.xlu2 %1085  ;;  %v6009_v62 = vpack.c.bf16 %v1225_v6, %v1225_v6  ;;  %v1437_v6 = vld [vmem:[#allocation2 + $0xf2] sm:$0xff] }
 0x2b1   : > { %1167 = vst.msk [vmem:[#allocation4 + $0x14] sm:$0xf] %vm1161_vm6, %v1076_v54  ;;  %v1421_v54 = vld [vmem:[#allocation2 + $0x32] sm:$0xff] }
 0x2b2   : > { %1172 = vst.msk [vmem:[#allocation4 + $0x28] sm:$0xf] %vm1161_vm6, %v1086_v34  ;;  %v1419_v34 = vld [vmem:[#allocation2 + $0x1a] sm:$0xff] }
 0x2b3   : > { %v1451_v13 = vpack.c.bf16 %v1419_v34, %v1419_v34  ;;  %v1440_v34 = vld [vmem:[#allocation2 + $0x112] sm:$0xff] }
 0x2b6   : > { %1304 = vrot.lane.b32.xlu1 %v5921_v24, %s5287_s27  ;;  %1300 = vrot.lane.b32.xlu2 %v1231_v26, %s5287_s27  ;;  %v5946_v31 = vpop.permute.xlu0 %1517 }
 0x2b7   : > { %1966 = vrot.lane.b32.xlu0 %v1228_v7, %s5290_s30 }
 0x2b8   : > { %v1080_v1 = vpop.permute.xlu1 %1079  ;;  %v1090_v48 = vpop.permute.xlu2 %1089 }
 0x2b9   : > { %1169 = vst.msk [vmem:[#allocation4 + $0x1c] sm:$0xf] %vm1161_vm6, %v1080_v1  ;;  %v1900_v1 = vld [vmem:[#allocation2 + $0x199] sm:$0xff] }
 0x2ba   : > { %1174 = vst.msk [vmem:[#allocation4 + $0x30] sm:$0xf] %vm1161_vm6, %v1090_v48  ;;  %v1424_v48 = vld [vmem:[#allocation2 + $0x52] sm:$0xff] }
 0x2bb   : > { %1399 = vst.msk [vmem:[#allocation4 + $0x30] sm:$0xf] %vm1386_vm7, %v5852_v33 }
 0x2be   : > { %1310 = vrot.lane.b32.xlu1 %v5931_v22, %s5287_s27  ;;  %1306 = vrot.lane.b32.xlu2 %v1234_v19, %s5287_s27  ;;  %v5958_v38 = vpop.permute.xlu0 %1523 }
 0x2bf   : > { %1972 = vrot.lane.b32.xlu0 %v1231_v26, %s5290_s30 }
 0x2c0   : > { %v1084_v37 = vpop.permute.xlu1 %1083  ;;  %v1094_v32 = vpop.permute.xlu2 %1093 }
 0x2c1   : > { %1171 = vst.msk [vmem:[#allocation4 + $0x24] sm:$0xf] %vm1161_vm6, %v1084_v37  ;;  %v6029_v37 = vpack.c.bf16 %v1424_v48, %v1424_v48  ;;  %v1445_v48 = vld [vmem:[#allocation2 + $0x152] sm:$0xff] }
 0x2c2   : > { %1176 = vst.msk [vmem:[#allocation4 + $0x38] sm:$0xf] %vm1161_vm6, %v1094_v32  ;;  %v1454_v32 = vpack.c.bf16 %v1422_v16, %v1422_v16  ;;  %v1443_v16 = vld [vmem:[#allocation2 + $0x13a] sm:$0xff] }
 0x2c3   : > { %1396 = vst.msk [vmem:[#allocation4 + $0x24] sm:$0xf] %vm1386_vm7, %v5840_v25  ;;  %v1216_v25 = vld [vmem:[#allocation2 + $0x121] sm:$0xff] }
 0x2c4   : > { %v5977_v36 = vpack.c.bf16 %v1216_v25, %v1216_v25 }
 0x2c6   : > { %1316 = vrot.lane.b32.xlu1 %v5673_v51, %s5287_s27  ;;  %1312 = vrot.lane.b32.xlu2 %v1237_v14, %s5287_s27  ;;  %v5973_v49 = vpop.permute.xlu0 %1529 }
 0x2c7   : > { %1978 = vrot.lane.b32.xlu0 %v1234_v19, %s5290_s30  ;;  %v1932_v19 = vpack.c.bf16 %v1900_v1, %v1900_v1 }
 0x2c8   : > { %v1088_v41 = vpop.permute.xlu1 %1087  ;;  %v1098_v44 = vpop.permute.xlu2 %1097 }
 0x2c9   : > { %1173 = vst.msk [vmem:[#allocation4 + $0x2c] sm:$0xf] %vm1161_vm6, %v1088_v41  ;;  %v1427_v41 = vld [vmem:[#allocation2 + $0x7a] sm:$0xff] }
 0x2ca   : > { %1178 = vst.msk [vmem:[#allocation4 + $0x40] sm:$0xf] %vm1161_vm6, %v1098_v44  ;;  %v1425_v44 = vld [vmem:[#allocation2 + $0x62] sm:$0xff]  ;;  %v6039_v29 = vpack.c.bf16 %v1427_v41, %v1427_v41  ;;  %v1448_v41 = vld [vmem:[#allocation2 + $0x172] sm:$0xff] }
 0x2ce   : > { %1322 = vrot.lane.b32.xlu1 %v5951_v15, %s5287_s27  ;;  %1318 = vrot.lane.b32.xlu2 %v5686_v8, %s5287_s27  ;;  %v5987_v59 = vpop.permute.xlu0 %1535 }
 0x2cf   : > { %1984 = vrot.lane.b32.xlu0 %v1237_v14, %s5290_s30 }
 0x2d0   : > { %v1092_v51 = vpop.permute.xlu1 %1091  ;;  %v1102_v53 = vpop.permute.xlu2 %1101 }
 0x2d1   : > { %1175 = vst.msk [vmem:[#allocation4 + $0x34] sm:$0xf] %vm1161_vm6, %v1092_v51  ;;  %v1457_v51 = vpack.c.bf16 %v1425_v44, %v1425_v44  ;;  %v1446_v44 = vld [vmem:[#allocation2 + $0x15a] sm:$0xff] }
 0x2d2   : > { %1180 = vst.msk [vmem:[#allocation4 + $0x48] sm:$0xf] %vm1161_vm6, %v1102_v53 }
 0x2d3   : > { %1405 = vst.msk [vmem:[#allocation4 + $0x48] sm:$0xf] %vm1386_vm7, %v5877_v35 }
 0x2d6   : > { %1328 = vrot.lane.b32.xlu1 %v5964_v43, %s5287_s27  ;;  %1324 = vrot.lane.b32.xlu2 %v1243_v46, %s5287_s27  ;;  %v6002_v55 = vpop.permute.xlu0 %1541 }
 0x2d7   : > { %1990 = vrot.lane.b32.xlu0 %v5686_v8, %s5290_s30 }
 0x2d8   : > { %v1096_v0 = vpop.permute.xlu1 %1095  ;;  %v1106_v4 = vpop.permute.xlu2 %1105 }
 0x2d9   : > { %1177 = vst.msk [vmem:[#allocation4 + $0x3c] sm:$0xf] %vm1161_vm6, %v1096_v0  ;;  %v1428_v0 = vld [vmem:[#allocation2 + $0x82] sm:$0xff] }
 0x2da   : > { %1182 = vst.msk [vmem:[#allocation4 + $0x50] sm:$0xf] %vm1161_vm6, %v1106_v4  ;;  %v1460_v4 = vpack.c.bf16 %v1428_v0, %v1428_v0  ;;  %v1645_v0 = vld [vmem:[#allocation2 + $0x30] sm:$0xff] }
 0x2db   : > { %1402 = vst.msk [vmem:[#allocation4 + $0x3c] sm:$0xf] %vm1386_vm7, %v5864_v50  ;;  %v1249_v50 = vpack.c.bf16 %v1217_v61, %v1217_v61 }
 0x2de   : > { %1334 = vrot.lane.b32.xlu1 %v5977_v36, %s5287_s27  ;;  %1330 = vrot.lane.b32.xlu2 %v1246_v30, %s5287_s27  ;;  %v6015_v7 = vpop.permute.xlu0 %1547 }
 0x2df   : > { %1996 = vrot.lane.b32.xlu0 %v1243_v46, %s5290_s30  ;;  %v1430_v46 = vld [vmem:[#allocation2 + $0x9a] sm:$0xff] }
 0x2e0   : > { %v1100_v8 = vpop.permute.xlu1 %1099  ;;  %v1110_v33 = vpop.permute.xlu2 %1109 }
 0x2e1   : > { %1179 = vst.msk [vmem:[#allocation4 + $0x44] sm:$0xf] %vm1161_vm6, %v1100_v8  ;;  %v1431_v8 = vld [vmem:[#allocation2 + $0xaa] sm:$0xff] }
 0x2e2   : > { %1184 = vst.msk [vmem:[#allocation4 + $0x58] sm:$0xf] %vm1161_vm6, %v1110_v33  ;;  %v1463_v47 = vpack.c.bf16 %v1431_v8, %v1431_v8  ;;  %v1648_v8 = vld [vmem:[#allocation2 + $0x50] sm:$0xff] }
 0x2e6   : > { %1340 = vrot.lane.b32.xlu1 %v5985_v9, %s5287_s27  ;;  %1336 = vrot.lane.b32.xlu2 %v1249_v50, %s5287_s27  ;;  %v6027_v11 = vpop.permute.xlu0 %1553 }
 0x2e7   : > { %2002 = vrot.lane.b32.xlu0 %v1246_v30, %s5290_s30 }
 0x2e8   : > { %v1104_v35 = vpop.permute.xlu1 %1103  ;;  %v1114_v39 = vpop.permute.xlu2 %1113 }
 0x2e9   : > { %1181 = vst.msk [vmem:[#allocation4 + $0x4c] sm:$0xf] %vm1161_vm6, %v1104_v35 }
 0x2ea   : > { %1186 = vst.msk [vmem:[#allocation4 + $0x60] sm:$0xf] %vm1161_vm6, %v1114_v39  ;;  %v1436_v39 = vld [vmem:[#allocation2 + $0xe2] sm:$0xff] }
 0x2eb   : > { %1411 = vst.msk [vmem:[#allocation4 + $0x60] sm:$0xf] %vm1386_vm7, %v5905_v63  ;;  %v1255_v63 = vpack.c.bf16 %v1223_v56, %v1223_v56 }
 0x2ee   : > { %1346 = vrot.lane.b32.xlu1 %v5997_v12, %s5287_s27  ;;  %1342 = vrot.lane.b32.xlu2 %v1252_v23, %s5287_s27  ;;  %v6041_v53 = vpop.permute.xlu0 %1559 }
 0x2ef   : > { %2008 = vrot.lane.b32.xlu0 %v1249_v50, %s5290_s30 }
 0x2f0   : > { %v1108_v58 = vpop.permute.xlu1 %1107  ;;  %v1118_v17 = vpop.permute.xlu2 %1117 }
 0x2f1   : > { %1183 = vst.msk [vmem:[#allocation4 + $0x54] sm:$0xf] %vm1161_vm6, %v1108_v58 }
 0x2f2   : > { %1188 = vst.msk [vmem:[#allocation4 + $0x68] sm:$0xf] %vm1161_vm6, %v1118_v17  ;;  %v1439_v17 = vld [vmem:[#allocation2 + $0x10a] sm:$0xff] }
 0x2f3   : > { %1408 = vst.msk [vmem:[#allocation4 + $0x54] sm:$0xf] %vm1386_vm7, %v5893_v21  ;;  %v6019_v21 = vpack.c.bf16 %v1421_v54, %v1421_v54  ;;  %v1442_v54 = vld [vmem:[#allocation2 + $0x12a] sm:$0xff] }
 0x2f6   : > { %1352 = vrot.lane.b32.xlu1 %v6009_v62, %s5287_s27  ;;  %1348 = vrot.lane.b32.xlu2 %v1255_v63, %s5287_s27  ;;  %v6056_v25 = vpop.permute.xlu0 %1565 }
 0x2f7   : > { %2014 = vrot.lane.b32.xlu0 %v1252_v23, %s5290_s30 }
 0x2f8   : > { %v1112_v3 = vpop.permute.xlu1 %1111  ;;  %v1122_v5 = vpop.permute.xlu2 %1121 }
 0x2f9   : > { %1185 = vst.msk [vmem:[#allocation4 + $0x5c] sm:$0xf] %vm1161_vm6, %v1112_v3 }
 0x2fa   : > { %1190 = vst.msk [vmem:[#allocation4 + $0x70] sm:$0xf] %vm1161_vm6, %v1122_v5 }
 0x2fe   : > { %1519 = vrot.lane.b32.xlu1 %v6019_v21, %s5288_s28  ;;  %1515 = vrot.lane.b32.xlu2 %v1451_v13, %s5288_s28  ;;  %v6069_v35 = vpop.permute.xlu0 %1571  ;;  %v1472_v13 = vpack.c.bf16 %v1440_v34, %v1440_v34 }
 0x2ff   : > { %2020 = vrot.lane.b32.xlu0 %v1255_v63, %s5290_s30  ;;  %v1469_v63 = vpack.c.bf16 %v1437_v6, %v1437_v6 }
 0x300   : > { %v1116_v10 = vpop.permute.xlu1 %1115  ;;  %v1128_v26 = vpop.permute.xlu2 %1127 }
 0x301   : > { %1187 = vst.msk [vmem:[#allocation4 + $0x64] sm:$0xf] %vm1161_vm6, %v1116_v10 }
 0x302   : > { %1193 = vst.msk [vmem:[#allocation4 + $0x7c] sm:$0xf] %vm1161_vm6, %v1128_v26 }
 0x306   : > { %1525 = vrot.lane.b32.xlu1 %v6029_v37, %s5288_s28  ;;  %1521 = vrot.lane.b32.xlu2 %v1454_v32, %s5288_s28  ;;  %v6083_v56 = vpop.permute.xlu0 %1577 }
 0x307   : > { %2026 = vrot.lane.b32.xlu0 %v1932_v19, %s5290_s30  ;;  %v1475_v19 = vpack.c.bf16 %v1443_v16, %v1443_v16 }
 0x308   : > { %v1120_v60 = vpop.permute.xlu1 %1119  ;;  %v1295_v14 = vpop.permute.xlu2 %1294 }
 0x309   : > { %1189 = vst.msk [vmem:[#allocation4 + $0x6c] sm:$0xf] %vm1161_vm6, %v1120_v60 }
 0x30a   : > { %1389 = vst.msk [vmem:[#allocation4 + $0x8] sm:$0xf] %vm1386_vm7, %v1295_v14 }
 0x30b   : > { %1414 = vst.msk [vmem:[#allocation4 + $0x6c] sm:$0xf] %vm1386_vm7, %v5919_v18  ;;  %v6051_v18 = vpack.c.bf16 %v1430_v46, %v1430_v46 }
 0x30e   : > { %1531 = vrot.lane.b32.xlu1 %v6039_v29, %s5288_s28  ;;  %1527 = vrot.lane.b32.xlu2 %v1457_v51, %s5288_s28  ;;  %v6099_v10 = vpop.permute.xlu0 %1745 }
 0x30f   : > { %2193 = vrot.lane.b32.xlu0 %v1454_v32, %s5291_s6 }
 0x310   : > { %v1126_v42 = vpop.permute.xlu1 %1125  ;;  %v1301_v57 = vpop.permute.xlu2 %1300 }
 0x311   : > { %1192 = vst.msk [vmem:[#allocation4 + $0x78] sm:$0xf] %vm1161_vm6, %v1126_v42  ;;  %vm3852_vm6 = vcmask 388416  }
 0x312   : > { %1417 = vst.msk [vmem:[#allocation4 + $0x78] sm:$0xf] %vm1386_vm7, %v5933_v28  ;;  %v1433_v28 = vld [vmem:[#allocation2 + $0xc2] sm:$0xff] }
 0x313   : > { %1392 = vst.msk [vmem:[#allocation4 + $0x14] sm:$0xf] %vm1386_vm7, %v1301_v57  ;;  %v6063_v33 = vpack.c.bf16 %v1433_v28, %v1433_v28 }
 0x316   : > { %1537 = vrot.lane.b32.xlu1 %v6051_v18, %s5288_s28  ;;  %1533 = vrot.lane.b32.xlu2 %v1460_v4, %s5288_s28  ;;  %v6114_v32 = vpop.permute.xlu0 %1751 }
 0x317   : > { %2199 = vrot.lane.b32.xlu0 %v1457_v51, %s5291_s6  ;;  %v1478_v51 = vpack.c.bf16 %v1446_v44, %v1446_v44  ;;  %v1658_v44 = vld [vmem:[#allocation2 + $0xc8] sm:$0xff] }
 0x318   : > { %v1293_v20 = vpop.permute.xlu1 %1292  ;;  %v1307_v30 = vpop.permute.xlu2 %1306 }
 0x319   : > { %1388 = vst.msk [vmem:[#allocation4 + $0x4] sm:$0xf] %vm1386_vm7, %v1293_v20 }
 0x31a   : > { %1395 = vst.msk [vmem:[#allocation4 + $0x20] sm:$0xf] %vm1386_vm7, %v1307_v30 }
 0x31b   : > { %1613 = vst.msk [vmem:[#allocation4 + $0x4] sm:$0xf] %vm1611_vm8, %v5946_v31  ;;  %v6075_v31 = vpack.c.bf16 %v1436_v39, %v1436_v39 }
 0x31e   : > { %1543 = vrot.lane.b32.xlu1 %v6063_v33, %s5288_s28  ;;  %1539 = vrot.lane.b32.xlu2 %v1463_v47, %s5288_s28  ;;  %v6127_v46 = vpop.permute.xlu0 %1757 }
 0x31f   : > { %2205 = vrot.lane.b32.xlu0 %v1460_v4, %s5291_s6  ;;  %v1449_v4 = vld [vmem:[#allocation2 + $0x182] sm:$0xff] }
 0x320   : > { %v1299_v61 = vpop.permute.xlu1 %1298  ;;  %v1313_v50 = vpop.permute.xlu2 %1312  ;;  %v1481_v20 = vpack.c.bf16 %v1449_v4, %v1449_v4  ;;  %v1661_v4 = vld [vmem:[#allocation2 + $0xf0] sm:$0xff] }
 0x321   : > { %1391 = vst.msk [vmem:[#allocation4 + $0x10] sm:$0xf] %vm1386_vm7, %v1299_v61 }
 0x322   : > { %1398 = vst.msk [vmem:[#allocation4 + $0x2c] sm:$0xf] %vm1386_vm7, %v1313_v50 }
 0x323   : > { %1616 = vst.msk [vmem:[#allocation4 + $0x10] sm:$0xf] %vm1611_vm8, %v5958_v38  ;;  %v6087_v38 = vpack.c.bf16 %v1439_v17, %v1439_v17 }
 0x326   : > { %1549 = vrot.lane.b32.xlu1 %v6075_v31, %s5288_s28  ;;  %1545 = vrot.lane.b32.xlu2 %v1466_v40, %s5288_s28  ;;  %v6138_v61 = vpop.permute.xlu0 %1763 }
 0x327   : > { %2211 = vrot.lane.b32.xlu0 %v1463_v47, %s5291_s6  ;;  %v1646_v47 = vld [vmem:[#allocation2 + $0x38] sm:$0xff] }
 0x328   : > { %v1305_v23 = vpop.permute.xlu1 %1304  ;;  %v1319_v58 = vpop.permute.xlu2 %1318  ;;  %v1678_v50 = vpack.c.bf16 %v1646_v47, %v1646_v47  ;;  %v1664_v47 = vld [vmem:[#allocation2 + $0x110] sm:$0xff] }
 0x329   : > { %1394 = vst.msk [vmem:[#allocation4 + $0x1c] sm:$0xf] %vm1386_vm7, %v1305_v23  ;;  %v1649_v23 = vld [vmem:[#allocation2 + $0x60] sm:$0xff] }
 0x32a   : > { %1401 = vst.msk [vmem:[#allocation4 + $0x38] sm:$0xf] %vm1386_vm7, %v1319_v58  ;;  %v1681_v58 = vpack.c.bf16 %v1649_v23, %v1649_v23  ;;  %v1667_v23 = vld [vmem:[#allocation2 + $0x138] sm:$0xff] }
 0x32b   : > { %1619 = vst.msk [vmem:[#allocation4 + $0x1c] sm:$0xf] %vm1611_vm8, %v5973_v49  ;;  %v6097_v49 = vpack.c.bf16 %v1442_v54, %v1442_v54 }
 0x32e   : > { %1555 = vrot.lane.b32.xlu1 %v6087_v38, %s5288_s28  ;;  %1551 = vrot.lane.b32.xlu2 %v1469_v63, %s5288_s28  ;;  %v6149_v17 = vpop.permute.xlu0 %1769 }
 0x32f   : > { %2217 = vrot.lane.b32.xlu0 %v1466_v40, %s5291_s6  ;;  %v1651_v40 = vld [vmem:[#allocation2 + $0x78] sm:$0xff] }
 0x330   : > { %v1311_v3 = vpop.permute.xlu1 %1310  ;;  %v1325_v5 = vpop.permute.xlu2 %1324 }
 0x331   : > { %1397 = vst.msk [vmem:[#allocation4 + $0x28] sm:$0xf] %vm1386_vm7, %v1311_v3  ;;  %v1654_v3 = vld [vmem:[#allocation2 + $0x98] sm:$0xff] }
 0x332   : > { %1404 = vst.msk [vmem:[#allocation4 + $0x44] sm:$0xf] %vm1386_vm7, %v1325_v5  ;;  %v1652_v5 = vld [vmem:[#allocation2 + $0x80] sm:$0xff] }
 0x333   : > { %1622 = vst.msk [vmem:[#allocation4 + $0x28] sm:$0xf] %vm1611_vm8, %v5987_v59  ;;  %v6109_v59 = vpack.c.bf16 %v1445_v48, %v1445_v48  ;;  %v1684_v54 = vpack.c.bf16 %v1652_v5, %v1652_v5  ;;  %v1655_v48 = vld [vmem:[#allocation2 + $0xa8] sm:$0xff]  ;;  %v1670_v5 = vld [vmem:[#allocation2 + $0x158] sm:$0xff] }
 0x334   : > { %v1687_v16 = vpack.c.bf16 %v1655_v48, %v1655_v48 }
 0x336   : > { %1561 = vrot.lane.b32.xlu1 %v6097_v49, %s5288_s28  ;;  %1557 = vrot.lane.b32.xlu2 %v1472_v13, %s5288_s28  ;;  %v6159_v34 = vpop.permute.xlu0 %1775 }
 0x337   : > { %2223 = vrot.lane.b32.xlu0 %v1469_v63, %s5291_s6 }
 0x338   : > { %v1317_v26 = vpop.permute.xlu1 %1316  ;;  %v1331_v1 = vpop.permute.xlu2 %1330 }
 0x339   : > { %1400 = vst.msk [vmem:[#allocation4 + $0x34] sm:$0xf] %vm1386_vm7, %v1317_v26 }
 0x33a   : > { %1407 = vst.msk [vmem:[#allocation4 + $0x50] sm:$0xf] %vm1386_vm7, %v1331_v1  ;;  %v1657_v1 = vld [vmem:[#allocation2 + $0xc0] sm:$0xff] }
 0x33b   : > { %1625 = vst.msk [vmem:[#allocation4 + $0x34] sm:$0xf] %vm1611_vm8, %v6002_v55  ;;  %v6121_v55 = vpack.c.bf16 %v1448_v41, %v1448_v41  ;;  %v1660_v41 = vld [vmem:[#allocation2 + $0xe0] sm:$0xff] }
 0x33e   : > { %1567 = vrot.lane.b32.xlu1 %v6109_v59, %s5288_s28  ;;  %1563 = vrot.lane.b32.xlu2 %v1475_v19, %s5288_s28 }
 0x33f   : > { %2229 = vrot.lane.b32.xlu0 %v1472_v13, %s5291_s6 }
 0x340   : > { %v1323_v60 = vpop.permute.xlu1 %1322  ;;  %v1337_v14 = vpop.permute.xlu2 %1336 }
 0x341   : > { %1403 = vst.msk [vmem:[#allocation4 + $0x40] sm:$0xf] %vm1386_vm7, %v1323_v60 }
 0x342   : > { %1410 = vst.msk [vmem:[#allocation4 + $0x5c] sm:$0xf] %vm1386_vm7, %v1337_v14  ;;  %v6167_v14 = vpop.permute.xlu0 %1781 }
 0x343   : > { %1628 = vst.msk [vmem:[#allocation4 + $0x40] sm:$0xf] %vm1611_vm8, %v6015_v7  ;;  %v1677_v7 = vpack.c.bf16 %v1645_v0, %v1645_v0  ;;  %v1663_v0 = vld [vmem:[#allocation2 + $0x108] sm:$0xff] }
 0x346   : > { %1573 = vrot.lane.b32.xlu1 %v6121_v55, %s5288_s28  ;;  %1569 = vrot.lane.b32.xlu2 %v1478_v51, %s5288_s28 }
 0x347   : > { %2235 = vrot.lane.b32.xlu0 %v1475_v19, %s5291_s6 }
 0x348   : > { %v1329_v42 = vpop.permute.xlu1 %1328  ;;  %v1343_v57 = vpop.permute.xlu2 %1342 }
 0x349   : > { %1406 = vst.msk [vmem:[#allocation4 + $0x4c] sm:$0xf] %vm1386_vm7, %v1329_v42 }
 0x34a   : > { %1413 = vst.msk [vmem:[#allocation4 + $0x68] sm:$0xf] %vm1386_vm7, %v1343_v57 }
 0x34b   : > { %1631 = vst.msk [vmem:[#allocation4 + $0x4c] sm:$0xf] %vm1611_vm8, %v6027_v11  ;;  %v1680_v11 = vpack.c.bf16 %v1648_v8, %v1648_v8  ;;  %v1666_v8 = vld [vmem:[#allocation2 + $0x128] sm:$0xff] }
 0x34e   : > { %1741 = vrot.lane.b32.xlu1 %v1677_v7, %s5289_s29  ;;  %1575 = vrot.lane.b32.xlu2 %v1481_v20, %s5288_s28  ;;  %v6177_v7 = vpop.permute.xlu0 %1787 }
 0x34f   : > { %2241 = vrot.lane.b32.xlu0 %v1478_v51, %s5291_s6  ;;  %v1690_v51 = vpack.c.bf16 %v1658_v44, %v1658_v44 }
 0x350   : > { %v1335_v30 = vpop.permute.xlu1 %1334  ;;  %v1349_v28 = vpop.permute.xlu2 %1348 }
 0x351   : > { %1409 = vst.msk [vmem:[#allocation4 + $0x58] sm:$0xf] %vm1386_vm7, %v1335_v30 }
 0x352   : > { %1416 = vst.msk [vmem:[#allocation4 + $0x74] sm:$0xf] %vm1386_vm7, %v1349_v28 }
 0x353   : > { %1634 = vst.msk [vmem:[#allocation4 + $0x58] sm:$0xf] %vm1611_vm8, %v6041_v53  ;;  %v1683_v53 = vpack.c.bf16 %v1651_v40, %v1651_v40  ;;  %v1669_v40 = vld [vmem:[#allocation2 + $0x150] sm:$0xff] }
 0x356   : > { %1747 = vrot.lane.b32.xlu1 %v1680_v11, %s5289_s29  ;;  %1743 = vrot.lane.b32.xlu2 %v1678_v50, %s5289_s29  ;;  %v1698_v11 = vpack.c.bf16 %v1666_v8, %v1666_v8  ;;  %v1696_v50 = vpack.c.bf16 %v1664_v47, %v1664_v47  ;;  %v1883_v47 = vld [vmem:[#allocation2 + $0xc9] sm:$0xff] }
 0x357   : > { %2247 = vrot.lane.b32.xlu0 %v1481_v20, %s5291_s6  ;;  %v1693_v20 = vpack.c.bf16 %v1661_v4, %v1661_v4 }
 0x358   : > { %v1341_v39 = vpop.permute.xlu1 %1340  ;;  %v1516_v45 = vpop.permute.xlu2 %1515 }
 0x359   : > { %1412 = vst.msk [vmem:[#allocation4 + $0x64] sm:$0xf] %vm1386_vm7, %v1341_v39 }
 0x35a   : > { %1612 = vst.msk [vmem:[#allocation4] sm:$0xf] %vm1611_vm8, %v1516_v45 }
 0x35b   : > { %1637 = vst.msk [vmem:[#allocation4 + $0x64] sm:$0xf] %vm1611_vm8, %v6056_v25  ;;  %v1686_v25 = vpack.c.bf16 %v1654_v3, %v1654_v3  ;;  %v1672_v3 = vld [vmem:[#allocation2 + $0x170] sm:$0xff] }
 0x35e   : > { %1753 = vrot.lane.b32.xlu1 %v1683_v53, %s5289_s29  ;;  %1749 = vrot.lane.b32.xlu2 %v1681_v58, %s5289_s29  ;;  %v1699_v53 = vpack.c.bf16 %v1667_v23, %v1667_v23 }
 0x360   : > { %v1347_v6 = vpop.permute.xlu1 %1346  ;;  %v1522_v63 = vpop.permute.xlu2 %1521 }
 0x361   : > { %1415 = vst.msk [vmem:[#allocation4 + $0x70] sm:$0xf] %vm1386_vm7, %v1347_v6 }
 0x362   : > { %1640 = vst.msk [vmem:[#allocation4 + $0x70] sm:$0xf] %vm1611_vm8, %v6069_v35  ;;  %v1689_v35 = vpack.c.bf16 %v1657_v1, %v1657_v1 }
 0x363   : > { %1615 = vst.msk [vmem:[#allocation4 + $0xc] sm:$0xf] %vm1611_vm8, %v1522_v63 }
 0x366   : > { %1759 = vrot.lane.b32.xlu1 %v1686_v25, %s5289_s29  ;;  %1755 = vrot.lane.b32.xlu2 %v1684_v54, %s5289_s29  ;;  %v1704_v25 = vpack.c.bf16 %v1672_v3, %v1672_v3  ;;  %v1675_v54 = vld [vmem:[#allocation2 + $0x198] sm:$0xff] }
 0x367   : > { %v1707_v48 = vpack.c.bf16 %v1675_v54, %v1675_v54 }
 0x368   : > { %v1353_v13 = vpop.permute.xlu1 %1352  ;;  %v1528_v26 = vpop.permute.xlu2 %1527 }
 0x369   : > { %1418 = vst.msk [vmem:[#allocation4 + $0x7c] sm:$0xf] %vm1386_vm7, %v1353_v13  ;;  %vm4078_vm7 = vcmask 454016  }
 0x36a   : > { %1643 = vst.msk [vmem:[#allocation4 + $0x7c] sm:$0xf] %vm1611_vm8, %v6083_v56  ;;  %v1692_v56 = vpack.c.bf16 %v1660_v41, %v1660_v41 }
 0x36b   : > { %1618 = vst.msk [vmem:[#allocation4 + $0x18] sm:$0xf] %vm1611_vm8, %v1528_v26 }
 0x36e   : > { %1765 = vrot.lane.b32.xlu1 %v1689_v35, %s5289_s29  ;;  %1761 = vrot.lane.b32.xlu2 %v1687_v16, %s5289_s29 }
 0x370   : > { %v1520_v19 = vpop.permute.xlu1 %1519  ;;  %v1534_v60 = vpop.permute.xlu2 %1533 }
 0x371   : > { %1614 = vst.msk [vmem:[#allocation4 + $0x8] sm:$0xf] %vm1611_vm8, %v1520_v19  ;;  %v1871_v19 = vld [vmem:[#allocation2 + $0x39] sm:$0xff] }
 0x372   : > { %1621 = vst.msk [vmem:[#allocation4 + $0x24] sm:$0xf] %vm1611_vm8, %v1534_v60  ;;  %v1903_v44 = vpack.c.bf16 %v1871_v19, %v1871_v19 }
 0x373   : > { %1840 = vst.msk [vmem:[#allocation4 + $0x8] sm:$0xf] %vm1837_vm9, %v6099_v10  ;;  %v1695_v10 = vpack.c.bf16 %v1663_v0, %v1663_v0  ;;  %v1877_v0 = vld [vmem:[#allocation2 + $0x81] sm:$0xff] }
 0x374   : > { %v1909_v4 = vpack.c.bf16 %v1877_v0, %v1877_v0 }
 0x376   : > { %1771 = vrot.lane.b32.xlu1 %v1692_v56, %s5289_s29  ;;  %1767 = vrot.lane.b32.xlu2 %v1690_v51, %s5289_s29  ;;  %v1874_v56 = vld [vmem:[#allocation2 + $0x61] sm:$0xff] }
 0x377   : > { %v1906_v51 = vpack.c.bf16 %v1874_v56, %v1874_v56 }
 0x378   : > { %v1526_v42 = vpop.permute.xlu1 %1525  ;;  %v1540_v57 = vpop.permute.xlu2 %1539 }
 0x379   : > { %1617 = vst.msk [vmem:[#allocation4 + $0x14] sm:$0xf] %vm1611_vm8, %v1526_v42 }
 0x37a   : > { %1624 = vst.msk [vmem:[#allocation4 + $0x30] sm:$0xf] %vm1611_vm8, %v1540_v57 }
 0x37b   : > { %1843 = vst.msk [vmem:[#allocation4 + $0x14] sm:$0xf] %vm1837_vm9, %v6114_v32  ;;  %v6187_v32 = vpop.permute.xlu0 %1793 }
 0x37e   : > { %1777 = vrot.lane.b32.xlu1 %v1695_v10, %s5289_s29  ;;  %1773 = vrot.lane.b32.xlu2 %v1693_v20, %s5289_s29 }
 0x380   : > { %v1532_v30 = vpop.permute.xlu1 %1531  ;;  %v1546_v28 = vpop.permute.xlu2 %1545 }
 0x381   : > { %1620 = vst.msk [vmem:[#allocation4 + $0x20] sm:$0xf] %vm1611_vm8, %v1532_v30 }
 0x382   : > { %1627 = vst.msk [vmem:[#allocation4 + $0x3c] sm:$0xf] %vm1611_vm8, %v1546_v28 }
 0x383   : > { %1846 = vst.msk [vmem:[#allocation4 + $0x20] sm:$0xf] %vm1837_vm9, %v6127_v46  ;;  %v1701_v46 = vpack.c.bf16 %v1669_v40, %v1669_v40  ;;  %v1800_v58 = vpop.permute.xlu0 %1799 }
 0x386   : > { %1783 = vrot.lane.b32.xlu1 %v1698_v11, %s5289_s29  ;;  %1779 = vrot.lane.b32.xlu2 %v1696_v50, %s5289_s29  ;;  %v1881_v11 = vld [vmem:[#allocation2 + $0xb1] sm:$0xff]  ;;  %v1915_v50 = vpack.c.bf16 %v1883_v47, %v1883_v47 }
 0x388   : > { %v1538_v39 = vpop.permute.xlu1 %1537  ;;  %v1552_v45 = vpop.permute.xlu2 %1551 }
 0x389   : > { %1623 = vst.msk [vmem:[#allocation4 + $0x2c] sm:$0xf] %vm1611_vm8, %v1538_v39 }
 0x38a   : > { %1630 = vst.msk [vmem:[#allocation4 + $0x48] sm:$0xf] %vm1611_vm8, %v1552_v45  ;;  %v1886_v45 = vld [vmem:[#allocation2 + $0xf1] sm:$0xff] }
 0x38b   : > { %1849 = vst.msk [vmem:[#allocation4 + $0x2c] sm:$0xf] %vm1837_vm9, %v6138_v61  ;;  %v1702_v61 = vpack.c.bf16 %v1670_v5, %v1670_v5  ;;  %v1967_v1 = vpop.permute.xlu0 %1966  ;;  %v1918_v23 = vpack.c.bf16 %v1886_v45, %v1886_v45 }
 0x38e   : > { %1789 = vrot.lane.b32.xlu1 %v1701_v46, %s5289_s29  ;;  %1785 = vrot.lane.b32.xlu2 %v1699_v53, %s5289_s29 }
 0x390   : > { %v1544_v6 = vpop.permute.xlu1 %1543  ;;  %v1558_v63 = vpop.permute.xlu2 %1557 }
 0x391   : > { %1626 = vst.msk [vmem:[#allocation4 + $0x38] sm:$0xf] %vm1611_vm8, %v1544_v6 }
 0x392   : > { %1633 = vst.msk [vmem:[#allocation4 + $0x54] sm:$0xf] %vm1611_vm8, %v1558_v63 }
 0x393   : > { %1852 = vst.msk [vmem:[#allocation4 + $0x38] sm:$0xf] %vm1837_vm9, %v6149_v17  ;;  %v1676_v17 = vld [vmem:[#allocation2 + $0x1a0] sm:$0xff]  ;;  %v1973_v41 = vpop.permute.xlu0 %1972 }
 0x394   : > { %v1708_v60 = vpack.c.bf16 %v1676_v17, %v1676_v17 }
 0x396   : > { %1795 = vrot.lane.b32.xlu1 %v1704_v25, %s5289_s29  ;;  %1791 = vrot.lane.b32.xlu2 %v1702_v61, %s5289_s29 }
 0x398   : > { %v1550_v13 = vpop.permute.xlu1 %1549  ;;  %v1564_v26 = vpop.permute.xlu2 %1563 }
 0x399   : > { %1629 = vst.msk [vmem:[#allocation4 + $0x44] sm:$0xf] %vm1611_vm8, %v1550_v13 }
 0x39a   : > { %1636 = vst.msk [vmem:[#allocation4 + $0x60] sm:$0xf] %vm1611_vm8, %v1564_v26 }
 0x39b   : > { %1855 = vst.msk [vmem:[#allocation4 + $0x44] sm:$0xf] %vm1837_vm9, %v6159_v34  ;;  %v1979_v42 = vpop.permute.xlu0 %1978 }
 0x39e   : > { %1801 = vrot.lane.b32.xlu1 %v1707_v48, %s5289_s29  ;;  %1797 = vrot.lane.b32.xlu2 %v5887_v52, %s5289_s29 }
 0x3a0   : > { %v1556_v35 = vpop.permute.xlu1 %1555  ;;  %v1570_v16 = vpop.permute.xlu2 %1569 }
 0x3a1   : > { %1632 = vst.msk [vmem:[#allocation4 + $0x50] sm:$0xf] %vm1611_vm8, %v1556_v35 }
 0x3a2   : > { %1639 = vst.msk [vmem:[#allocation4 + $0x6c] sm:$0xf] %vm1611_vm8, %v1570_v16  ;;  %v1901_v16 = vld [vmem:[#allocation2 + $0x1a1] sm:$0xff] }
 0x3a3   : > { %1858 = vst.msk [vmem:[#allocation4 + $0x50] sm:$0xf] %vm1837_vm9, %v6167_v14 }
 0x3a6   : > { %1968 = vrot.lane.b32.xlu1 %v1903_v44, %s5290_s30  ;;  %1803 = vrot.lane.b32.xlu2 %v1708_v60, %s5289_s29 }
 0x3a8   : > { %v1562_v34 = vpop.permute.xlu1 %1561  ;;  %v1576_v52 = vpop.permute.xlu2 %1575 }
 0x3a9   : > { %1635 = vst.msk [vmem:[#allocation4 + $0x5c] sm:$0xf] %vm1611_vm8, %v1562_v34 }
 0x3aa   : > { %1642 = vst.msk [vmem:[#allocation4 + $0x78] sm:$0xf] %vm1611_vm8, %v1576_v52 }
 0x3ab   : > { %1861 = vst.msk [vmem:[#allocation4 + $0x5c] sm:$0xf] %vm1837_vm9, %v6177_v7  ;;  %v1985_v7 = vpop.permute.xlu0 %1984 }
 0x3ae   : > { %1974 = vrot.lane.b32.xlu1 %v1906_v51, %s5290_s30  ;;  %1970 = vrot.lane.b32.xlu2 %v5911_v27, %s5290_s30  ;;  %v1880_v27 = vld [vmem:[#allocation2 + $0xa9] sm:$0xff] }
 0x3af   : > { %v1912_v30 = vpack.c.bf16 %v1880_v27, %v1880_v27 }
 0x3b0   : > { %v1568_v14 = vpop.permute.xlu1 %1567  ;;  %v1744_v57 = vpop.permute.xlu2 %1743 }
 0x3b1   : > { %1638 = vst.msk [vmem:[#allocation4 + $0x68] sm:$0xf] %vm1611_vm8, %v1568_v14 }
 0x3b2   : > { %1839 = vst.msk [vmem:[#allocation4 + $0x4] sm:$0xf] %vm1837_vm9, %v1744_v57 }
 0x3b3   : > { %1864 = vst.msk [vmem:[#allocation4 + $0x68] sm:$0xf] %vm1837_vm9, %v6187_v32  ;;  %v1913_v32 = vpack.c.bf16 %v1881_v11, %v1881_v11 }
 0x3b6   : > { %1980 = vrot.lane.b32.xlu1 %v1909_v4, %s5290_s30  ;;  %1976 = vrot.lane.b32.xlu2 %v5921_v24, %s5290_s30  ;;  %v1991_v24 = vpop.permute.xlu0 %1990 }
 0x3b8   : > { %v1574_v10 = vpop.permute.xlu1 %1573  ;;  %v1750_v20 = vpop.permute.xlu2 %1749 }
 0x3b9   : > { %1641 = vst.msk [vmem:[#allocation4 + $0x74] sm:$0xf] %vm1611_vm8, %v1574_v10  ;;  %vm4762_vm8 = vcmask 1043456  }
 0x3ba   : > { %1867 = vst.msk [vmem:[#allocation4 + $0x74] sm:$0xf] %vm1837_vm9, %v1800_v58  ;;  %v1889_v58 = vld [vmem:[#allocation2 + $0x111] sm:$0xff] }
 0x3bb   : > { %1842 = vst.msk [vmem:[#allocation4 + $0x10] sm:$0xf] %vm1837_vm9, %v1750_v20  ;;  %v1921_v6 = vpack.c.bf16 %v1889_v58, %v1889_v58  ;;  %v2356_v58 = vld [vmem:[%s7462_s1 + $0x10] sm:$0x3] }
 0x3be   : > { %1986 = vrot.lane.b32.xlu1 %v1912_v30, %s5290_s30  ;;  %1982 = vrot.lane.b32.xlu2 %v5931_v22, %s5290_s30  ;;  %v1997_v40 = vpop.permute.xlu0 %1996 }
 0x3c0   : > { %v1742_v28 = vpop.permute.xlu1 %1741  ;;  %v1756_v8 = vpop.permute.xlu2 %1755 }
 0x3c1   : > { %1838 = vst.msk [vmem:[#allocation4] sm:$0xf] %vm1837_vm9, %v1742_v28 }
 0x3c2   : > { %1845 = vst.msk [vmem:[#allocation4 + $0x1c] sm:$0xf] %vm1837_vm9, %v1756_v8 }
 0x3c3   : > { %2063 = vst.msk [vmem:[#allocation4] sm:$0xf] %vm2062_vm10, %v1967_v1 }
 0x3c6   : > { %1992 = vrot.lane.b32.xlu1 %v1915_v50, %s5290_s30  ;;  %1988 = vrot.lane.b32.xlu2 %v1913_v32, %s5290_s30  ;;  %v2003_v63 = vpop.permute.xlu0 %2002 }
 0x3c8   : > { %v1748_v39 = vpop.permute.xlu1 %1747  ;;  %v1762_v22 = vpop.permute.xlu2 %1761 }
 0x3c9   : > { %1841 = vst.msk [vmem:[#allocation4 + $0xc] sm:$0xf] %vm1837_vm9, %v1748_v39 }
 0x3ca   : > { %1848 = vst.msk [vmem:[#allocation4 + $0x28] sm:$0xf] %vm1837_vm9, %v1762_v22 }
 0x3cb   : > { %2066 = vst.msk [vmem:[#allocation4 + $0xc] sm:$0xf] %vm2062_vm10, %v1973_v41 }
 0x3ce   : > { %1998 = vrot.lane.b32.xlu1 %v1918_v23, %s5290_s30  ;;  %1994 = vrot.lane.b32.xlu2 %v5951_v15, %s5290_s30  ;;  %v1892_v15 = vld [vmem:[#allocation2 + $0x139] sm:$0xff]  ;;  %v2009_v61 = vpop.permute.xlu0 %2008 }
 0x3cf   : > { %v1924_v25 = vpack.c.bf16 %v1892_v15, %v1892_v15 }
 0x3d0   : > { %v1754_v46 = vpop.permute.xlu1 %1753  ;;  %v1768_v53 = vpop.permute.xlu2 %1767 }
 0x3d1   : > { %1844 = vst.msk [vmem:[#allocation4 + $0x18] sm:$0xf] %vm1837_vm9, %v1754_v46 }
 0x3d2   : > { %1851 = vst.msk [vmem:[#allocation4 + $0x34] sm:$0xf] %vm1837_vm9, %v1768_v53 }
 0x3d3   : > { %2069 = vst.msk [vmem:[#allocation4 + $0x18] sm:$0xf] %vm2062_vm10, %v1979_v42 }
 0x3d6   : > { %2004 = vrot.lane.b32.xlu1 %v1921_v6, %s5290_s30  ;;  %2000 = vrot.lane.b32.xlu2 %v5964_v43, %s5290_s30  ;;  %v1895_v43 = vld [vmem:[#allocation2 + $0x159] sm:$0xff]  ;;  %v2015_v17 = vpop.permute.xlu0 %2014 }
 0x3d7   : > { %v1927_v26 = vpack.c.bf16 %v1895_v43, %v1895_v43 }
 0x3d8   : > { %v1760_v3 = vpop.permute.xlu1 %1759  ;;  %v1774_v5 = vpop.permute.xlu2 %1773 }
 0x3d9   : > { %1847 = vst.msk [vmem:[#allocation4 + $0x24] sm:$0xf] %vm1837_vm9, %v1760_v3 }
 0x3da   : > { %1854 = vst.msk [vmem:[#allocation4 + $0x40] sm:$0xf] %vm1837_vm9, %v1774_v5 }
 0x3db   : > { %2072 = vst.msk [vmem:[#allocation4 + $0x24] sm:$0xf] %vm2062_vm10, %v1985_v7 }
 0x3de   : > { %2010 = vrot.lane.b32.xlu1 %v1924_v25, %s5290_s30  ;;  %2006 = vrot.lane.b32.xlu2 %v5977_v36, %s5290_s30  ;;  %v1898_v36 = vld [vmem:[#allocation2 + $0x181] sm:$0xff]  ;;  %v2021_v41 = vpop.permute.xlu0 %2020 }
 0x3df   : > { %v1930_v35 = vpack.c.bf16 %v1898_v36, %v1898_v36 }
 0x3e0   : > { %v1766_v54 = vpop.permute.xlu1 %1765  ;;  %v1780_v13 = vpop.permute.xlu2 %1779 }
 0x3e1   : > { %1850 = vst.msk [vmem:[#allocation4 + $0x30] sm:$0xf] %vm1837_vm9, %v1766_v54  ;;  %v5222_v54 = vld [vmem:[%s7462_s1 + $0x8] sm:$0xff] }
 0x3e2   : > { %1857 = vst.msk [vmem:[#allocation4 + $0x4c] sm:$0xf] %vm1837_vm9, %v1780_v13 }
 0x3e3   : > { %2075 = vst.msk [vmem:[#allocation4 + $0x30] sm:$0xf] %vm2062_vm10, %v1991_v24 }
 0x3e6   : > { %2016 = vrot.lane.b32.xlu1 %v1927_v26, %s5290_s30  ;;  %2012 = vrot.lane.b32.xlu2 %v5985_v9, %s5290_s30  ;;  %v1933_v9 = vpack.c.bf16 %v1901_v16, %v1901_v16  ;;  %v2027_v56 = vpop.permute.xlu0 %2026 }
 0x3e8   : > { %v1772_v1 = vpop.permute.xlu1 %1771  ;;  %v1786_v48 = vpop.permute.xlu2 %1785 }
 0x3e9   : > { %1853 = vst.msk [vmem:[#allocation4 + $0x3c] sm:$0xf] %vm1837_vm9, %v1772_v1  ;;  %v2124_v1 = vld [vmem:[#allocation2 + $0x18a] sm:$0xff] }
 0x3ea   : > { %1860 = vst.msk [vmem:[#allocation4 + $0x58] sm:$0xf] %vm1837_vm9, %v1786_v48 }
 0x3eb   : > { %2078 = vst.msk [vmem:[#allocation4 + $0x3c] sm:$0xf] %vm2062_vm10, %v1997_v40 }
 0x3ee   : > { %2022 = vrot.lane.b32.xlu1 %v1930_v35, %s5290_s30  ;;  %2018 = vrot.lane.b32.xlu2 %v5997_v12, %s5290_s30  ;;  %v2097_v12 = vld [vmem:[#allocation2 + $0x4a] sm:$0xff]  ;;  %v2194_v57 = vpop.permute.xlu0 %2193 }
 0x3ef   : > { %v2129_v52 = vpack.c.bf16 %v2097_v12, %v2097_v12 }
 0x3f0   : > { %v1778_v19 = vpop.permute.xlu1 %1777  ;;  %v1792_v60 = vpop.permute.xlu2 %1791 }
 0x3f1   : > { %1856 = vst.msk [vmem:[#allocation4 + $0x48] sm:$0xf] %vm1837_vm9, %v1778_v19 }
 0x3f2   : > { %1863 = vst.msk [vmem:[#allocation4 + $0x64] sm:$0xf] %vm1837_vm9, %v1792_v60 }
 0x3f3   : > { %2081 = vst.msk [vmem:[#allocation4 + $0x48] sm:$0xf] %vm2062_vm10, %v2003_v63  ;;  %v2450_v63 = vunpack.c.l.b16 %v2356_v58 }
 0x3f6   : > { %2028 = vrot.lane.b32.xlu1 %v1933_v9, %s5290_s30  ;;  %2024 = vrot.lane.b32.xlu2 %v6009_v62, %s5290_s30  ;;  %v2100_v62 = vld [vmem:[#allocation2 + $0x6a] sm:$0xff]  ;;  %v2200_v27 = vpop.permute.xlu0 %2199 }
 0x3f7   : > { %v2132_v14 = vpack.c.bf16 %v2100_v62, %v2100_v62 }
 0x3f8   : > { %v1784_v44 = vpop.permute.xlu1 %1783  ;;  %v1798_v34 = vpop.permute.xlu2 %1797 }
 0x3f9   : > { %1859 = vst.msk [vmem:[#allocation4 + $0x54] sm:$0xf] %vm1837_vm9, %v1784_v44 }
 0x3fa   : > { %1866 = vst.msk [vmem:[#allocation4 + $0x70] sm:$0xf] %vm1837_vm9, %v1798_v34 }
 0x3fb   : > { %2084 = vst.msk [vmem:[#allocation4 + $0x54] sm:$0xf] %vm2062_vm10, %v2009_v61  ;;  %v2121_v61 = vld [vmem:[#allocation2 + $0x16a] sm:$0xff] }
 0x3fc   : > { %v2153_v13 = vpack.c.bf16 %v2121_v61, %v2121_v61 }
 0x3fe   : > { %2195 = vrot.lane.b32.xlu1 %v2129_v52, %s5291_s6  ;;  %2191 = vrot.lane.b32.xlu2 %v6019_v21, %s5291_s6  ;;  %v2103_v21 = vld [vmem:[#allocation2 + $0x92] sm:$0xff]  ;;  %v2206_v24 = vpop.permute.xlu0 %2205 }
 0x3ff   : > { %v2135_v7 = vpack.c.bf16 %v2103_v21, %v2103_v21 }
 0x400   : > { %v1790_v51 = vpop.permute.xlu1 %1789  ;;  %v1804_v42 = vpop.permute.xlu2 %1803 }
 0x401   : > { %1862 = vst.msk [vmem:[#allocation4 + $0x60] sm:$0xf] %vm1837_vm9, %v1790_v51 }
 0x402   : > { %1869 = vst.msk [vmem:[#allocation4 + $0x7c] sm:$0xf] %vm1837_vm9, %v1804_v42 }
 0x403   : > { %2087 = vst.msk [vmem:[#allocation4 + $0x60] sm:$0xf] %vm2062_vm10, %v2015_v17  ;;  %v2156_v17 = vpack.c.bf16 %v2124_v1, %v2124_v1 }
 0x406   : > { %2201 = vrot.lane.b32.xlu1 %v2132_v14, %s5291_s6  ;;  %2197 = vrot.lane.b32.xlu2 %v6029_v37, %s5291_s6  ;;  %v2106_v37 = vld [vmem:[#allocation2 + $0xb2] sm:$0xff]  ;;  %v2212_v39 = vpop.permute.xlu0 %2211 }
 0x407   : > { %v2138_v30 = vpack.c.bf16 %v2106_v37, %v2106_v37 }
 0x408   : > { %v1796_v0 = vpop.permute.xlu1 %1795  ;;  %v1971_v4 = vpop.permute.xlu2 %1970 }
 0x409   : > { %1865 = vst.msk [vmem:[#allocation4 + $0x6c] sm:$0xf] %vm1837_vm9, %v1796_v0 }
 0x40a   : > { %2065 = vst.msk [vmem:[#allocation4 + $0x8] sm:$0xf] %vm2062_vm10, %v1971_v4 }
 0x40b   : > { %2090 = vst.msk [vmem:[#allocation4 + $0x6c] sm:$0xf] %vm2062_vm10, %v2021_v41 }
 0x40e   : > { %2207 = vrot.lane.b32.xlu1 %v2135_v7, %s5291_s6  ;;  %2203 = vrot.lane.b32.xlu2 %v6039_v29, %s5291_s6  ;;  %v2109_v29 = vld [vmem:[#allocation2 + $0xda] sm:$0xff]  ;;  %v2218_v23 = vpop.permute.xlu0 %2217 }
 0x40f   : > { %v2141_v47 = vpack.c.bf16 %v2109_v29, %v2109_v29 }
 0x410   : > { %v1802_v10 = vpop.permute.xlu1 %1801  ;;  %v1977_v20 = vpop.permute.xlu2 %1976 }
 0x411   : > { %1868 = vst.msk [vmem:[#allocation4 + $0x78] sm:$0xf] %vm1837_vm9, %v1802_v10  ;;  %vm4303_vm9 = vcmask 519616  }
 0x412   : > { %2093 = vst.msk [vmem:[#allocation4 + $0x78] sm:$0xf] %vm2062_vm10, %v2027_v56 }
 0x413   : > { %2068 = vst.msk [vmem:[#allocation4 + $0x14] sm:$0xf] %vm2062_vm10, %v1977_v20 }
 0x416   : > { %2213 = vrot.lane.b32.xlu1 %v2138_v30, %s5291_s6  ;;  %2209 = vrot.lane.b32.xlu2 %v6051_v18, %s5291_s6  ;;  %v2112_v18 = vld [vmem:[#allocation2 + $0xfa] sm:$0xff]  ;;  %v2224_v25 = vpop.permute.xlu0 %2223 }
 0x417   : > { %v2144_v32 = vpack.c.bf16 %v2112_v18, %v2112_v18 }
 0x418   : > { %v1969_v28 = vpop.permute.xlu1 %1968  ;;  %v1983_v8 = vpop.permute.xlu2 %1982 }
 0x419   : > { %2064 = vst.msk [vmem:[#allocation4 + $0x4] sm:$0xf] %vm2062_vm10, %v1969_v28 }
 0x41a   : > { %2289 = vst.msk [vmem:[#allocation4 + $0x4] sm:$0xf] %vm2287_vm11, %v2194_v57 }
 0x41b   : > { %2071 = vst.msk [vmem:[#allocation4 + $0x20] sm:$0xf] %vm2062_vm10, %v1983_v8 }
 0x41e   : > { %2219 = vrot.lane.b32.xlu1 %v2141_v47, %s5291_s6  ;;  %2215 = vrot.lane.b32.xlu2 %v6063_v33, %s5291_s6  ;;  %v2115_v33 = vld [vmem:[#allocation2 + $0x122] sm:$0xff]  ;;  %v2230_v48 = vpop.permute.xlu0 %2229 }
 0x41f   : > { %v2147_v40 = vpack.c.bf16 %v2115_v33, %v2115_v33 }
 0x420   : > { %v1975_v11 = vpop.permute.xlu1 %1974  ;;  %v1989_v50 = vpop.permute.xlu2 %1988 }
 0x421   : > { %2067 = vst.msk [vmem:[#allocation4 + $0x10] sm:$0xf] %vm2062_vm10, %v1975_v11 }
 0x422   : > { %2292 = vst.msk [vmem:[#allocation4 + $0x10] sm:$0xf] %vm2287_vm11, %v2200_v27 }
 0x423   : > { %2074 = vst.msk [vmem:[#allocation4 + $0x2c] sm:$0xf] %vm2062_vm10, %v1989_v50 }
 0x426   : > { %2225 = vrot.lane.b32.xlu1 %v2144_v32, %s5291_s6  ;;  %2221 = vrot.lane.b32.xlu2 %v6075_v31, %s5291_s6  ;;  %v2118_v31 = vld [vmem:[#allocation2 + $0x142] sm:$0xff]  ;;  %v2236_v35 = vpop.permute.xlu0 %2235 }
 0x427   : > { %v2150_v6 = vpack.c.bf16 %v2118_v31, %v2118_v31  ;;  %v2125_v31 = vld [vmem:[#allocation2 + $0x19a] sm:$0xff] }
 0x428   : > { %v1981_v22 = vpop.permute.xlu1 %1980  ;;  %v1995_v45 = vpop.permute.xlu2 %1994  ;;  %v2157_v58 = vpack.c.bf16 %v2125_v31, %v2125_v31 }
 0x429   : > { %2070 = vst.msk [vmem:[#allocation4 + $0x1c] sm:$0xf] %vm2062_vm10, %v1981_v22 }
 0x42a   : > { %2295 = vst.msk [vmem:[#allocation4 + $0x1c] sm:$0xf] %vm2287_vm11, %v2206_v24 }
 0x42b   : > { %2077 = vst.msk [vmem:[#allocation4 + $0x38] sm:$0xf] %vm2062_vm10, %v1995_v45  ;;  %v2126_v45 = vld [vmem:[#allocation2 + $0x1a2] sm:$0xff] }
 0x42c   : > { %v2158_v33 = vpack.c.bf16 %v2126_v45, %v2126_v45 }
 0x42e   : > { %2231 = vrot.lane.b32.xlu1 %v2147_v40, %s5291_s6  ;;  %2227 = vrot.lane.b32.xlu2 %v6087_v38, %s5291_s6  ;;  %v2453_v38 = vpack.c.b16 %v2450_v63, %v2450_v63  ;;  %v2242_v60 = vpop.permute.xlu0 %2241 }
 0x42f   : > { %2253 = vrot.lane.b32.xlu0 %v2158_v33, %s5291_s6 }
 0x430   : > { %v1987_v46 = vpop.permute.xlu1 %1986  ;;  %v2001_v53 = vpop.permute.xlu2 %2000  ;;  %v2507_v15 = vsel %vm2505_vm12, %v2453_v38, 0  ;;  %v2761_v38 = vld [vmem:[#allocation3 + $0x9] sm:$0xff] }
 0x431   : > { %2073 = vst.msk [vmem:[#allocation4 + $0x28] sm:$0xf] %vm2062_vm10, %v1987_v46  ;;  %2514 = vmatpush.bf16.msra.mxu0 %v2507_v15  ;;  %5243 = vmatpush.bf16.msra.mxu3 %v2507_v15  ;;  %v2760_v46 = vld [vmem:[#allocation3 + $0x1] sm:$0xff] }
 0x432   : > { %2298 = vst.msk [vmem:[#allocation4 + $0x28] sm:$0xf] %vm2287_vm11, %v2212_v39 }
 0x433   : > { %2080 = vst.msk [vmem:[#allocation4 + $0x44] sm:$0xf] %vm2062_vm10, %v2001_v53  ;;  %v2792_v53 = vpack.c.bf16 %v2760_v46, %v2760_v46 }
 0x435   : > { %2515 = vmatpush.bf16.msra.mxu0 %v5222_v54  ;;  %5244 = vmatpush.bf16.msra.mxu3 %v5222_v54 }
 0x436   : > { %2237 = vrot.lane.b32.xlu1 %v2150_v6, %s5291_s6  ;;  %2233 = vrot.lane.b32.xlu2 %v6097_v49, %s5291_s6  ;;  %v5221_v49 = vld [vmem:[%s7462_s1] sm:$0xff]  ;;  %v2248_v34 = vpop.permute.xlu0 %2247 }
 0x438   : > { %v1993_v3 = vpop.permute.xlu1 %1992  ;;  %v2007_v5 = vpop.permute.xlu2 %2006 }
 0x439   : > { %2076 = vst.msk [vmem:[#allocation4 + $0x34] sm:$0xf] %vm2062_vm10, %v1993_v3  ;;  %2516 = vmatpush.bf16.msra.mxu0 %v5221_v49  ;;  %5245 = vmatpush.bf16.msra.mxu3 %v5221_v49  ;;  %v6450_v3 = vld [vmem:[%s7463_s2] ss:$0 sm:$0xff] }
 0x43a   : > { %2301 = vst.msk [vmem:[#allocation4 + $0x34] sm:$0xf] %vm2287_vm11, %v2218_v23 }
 0x43b   : > { %2083 = vst.msk [vmem:[#allocation4 + $0x50] sm:$0xf] %vm2062_vm10, %v2007_v5  ;;  %v2793_v5 = vpack.c.bf16 %v2761_v38, %v2761_v38 }
 0x43e   : > { %2243 = vrot.lane.b32.xlu1 %v2153_v13, %s5291_s6  ;;  %2239 = vrot.lane.b32.xlu2 %v6109_v59, %s5291_s6 }
 0x440   : > { %v1999_v43 = vpop.permute.xlu1 %1998  ;;  %v2013_v26 = vpop.permute.xlu2 %2012 }
 0x441   : > { %2079 = vst.msk [vmem:[#allocation4 + $0x40] sm:$0xf] %vm2062_vm10, %v1999_v43 }
 0x442   : > { %2304 = vst.msk [vmem:[#allocation4 + $0x40] sm:$0xf] %vm2287_vm11, %v2224_v25 }
 0x443   : > { %2086 = vst.msk [vmem:[#allocation4 + $0x5c] sm:$0xf] %vm2062_vm10, %v2013_v26 }
 0x446   : > { %2249 = vrot.lane.b32.xlu1 %v2156_v17, %s5291_s6  ;;  %2245 = vrot.lane.b32.xlu2 %v6121_v55, %s5291_s6 }
 0x448   : > { %v2005_v36 = vpop.permute.xlu1 %2004  ;;  %v2019_v59 = vpop.permute.xlu2 %2018 }
 0x449   : > { %2082 = vst.msk [vmem:[#allocation4 + $0x4c] sm:$0xf] %vm2062_vm10, %v2005_v36 }
 0x44a   : > { %2307 = vst.msk [vmem:[#allocation4 + $0x4c] sm:$0xf] %vm2287_vm11, %v2230_v48 }
 0x44b   : > { %2089 = vst.msk [vmem:[#allocation4 + $0x68] sm:$0xf] %vm2062_vm10, %v2019_v59 }
 0x44e   : > { %2856 = vrot.lane.b32.xlu1 %v2792_v53, %s5284_s24  ;;  %2251 = vrot.lane.b32.xlu2 %v2157_v58, %s5291_s6 }
 0x450   : > { %v2011_v16 = vpop.permute.xlu1 %2010  ;;  %v2025_v19 = vpop.permute.xlu2 %2024 }
 0x451   : > { %2085 = vst.msk [vmem:[#allocation4 + $0x58] sm:$0xf] %vm2062_vm10, %v2011_v16 }
 0x452   : > { %2310 = vst.msk [vmem:[#allocation4 + $0x58] sm:$0xf] %vm2287_vm11, %v2236_v35 }
 0x453   : > { %2092 = vst.msk [vmem:[#allocation4 + $0x74] sm:$0xf] %vm2062_vm10, %v2025_v19 }
 0x456   : > { %2858 = vrot.lane.b32.xlu2 %v2793_v5, %s5284_s24 }
 0x458   : > { %v2017_v9 = vpop.permute.xlu1 %2016  ;;  %v2192_v55 = vpop.permute.xlu2 %2191 }
 0x459   : > { %2088 = vst.msk [vmem:[#allocation4 + $0x64] sm:$0xf] %vm2062_vm10, %v2017_v9 }
 0x45a   : > { %2313 = vst.msk [vmem:[#allocation4 + $0x64] sm:$0xf] %vm2287_vm11, %v2242_v60 }
 0x45b   : > { %2288 = vst.msk [vmem:[#allocation4] sm:$0xf] %vm2287_vm11, %v2192_v55 }
 0x460   : > { %v2023_v41 = vpop.permute.xlu1 %2022  ;;  %v2198_v44 = vpop.permute.xlu2 %2197 }
 0x461   : > { %2091 = vst.msk [vmem:[#allocation4 + $0x70] sm:$0xf] %vm2062_vm10, %v2023_v41 }
 0x462   : > { %2316 = vst.msk [vmem:[#allocation4 + $0x70] sm:$0xf] %vm2287_vm11, %v2248_v34  ;;  %v5205_v12 = vld [vmem:[#allocation4] sm:$0xff] }
 0x463   : > { %2291 = vst.msk [vmem:[#allocation4 + $0xc] sm:$0xf] %vm2287_vm11, %v2198_v44  ;;  %5089 = vmatmul.msk.bf16.vlgmr.msra.gmra.mxu0 %vm2456_vm13, %v5205_v12 }
 0x468   : > { %v2029_v52 = vpop.permute.xlu1 %2028  ;;  %v2204_v56 = vpop.permute.xlu2 %2203 }
 0x469   : > { %2094 = vst.msk [vmem:[#allocation4 + $0x7c] sm:$0xf] %vm2062_vm10, %v2029_v52  ;;  %vm4528_vm10 = vcmask 585216  }
 0x46a   : > { %2294 = vst.msk [vmem:[#allocation4 + $0x18] sm:$0xf] %vm2287_vm11, %v2204_v56 }
 0x470   : > { %v2196_v51 = vpop.permute.xlu1 %2195  ;;  %v2210_v42 = vpop.permute.xlu2 %2209 }
 0x471   : > { %2290 = vst.msk [vmem:[#allocation4 + $0x8] sm:$0xf] %vm2287_vm11, %v2196_v51  ;;  %v5208_v8 = vld [vmem:[#allocation4 + $0x18] sm:$0xff] }
 0x472   : > { %2297 = vst.msk [vmem:[#allocation4 + $0x24] sm:$0xf] %vm2287_vm11, %v2210_v42 }
 0x478   : > { %v2202_v62 = vpop.permute.xlu1 %2201  ;;  %v2216_v14 = vpop.permute.xlu2 %2215  ;;  %v5206_v57 = vld [vmem:[#allocation4 + $0x8] sm:$0xff] }
 0x479   : > { %2293 = vst.msk [vmem:[#allocation4 + $0x14] sm:$0xf] %vm2287_vm11, %v2202_v62  ;;  %5090 = vmatmul.msk.bf16.gmra.mxu0 %vm2456_vm13, %v5206_v57 }
 0x47a   : > { %2300 = vst.msk [vmem:[#allocation4 + $0x30] sm:$0xf] %vm2287_vm11, %v2216_v14 }
 0x480   : > { %v2208_v0 = vpop.permute.xlu1 %2207  ;;  %v2222_v4 = vpop.permute.xlu2 %2221  ;;  %v5207_v10 = vld [vmem:[#allocation4 + $0x10] sm:$0xff] }
 0x481   : > { %2296 = vst.msk [vmem:[#allocation4 + $0x20] sm:$0xf] %vm2287_vm11, %v2208_v0  ;;  %v5211_v40 = vld [vmem:[#allocation4 + $0x30] sm:$0xff] }
 0x482   : > { %2303 = vst.msk [vmem:[#allocation4 + $0x3c] sm:$0xf] %vm2287_vm11, %v2222_v4 }
 0x488   : > { %v2214_v21 = vpop.permute.xlu1 %2213  ;;  %v2228_v7 = vpop.permute.xlu2 %2227  ;;  %v5209_v11 = vld [vmem:[#allocation4 + $0x20] sm:$0xff] }
 0x489   : > { %2299 = vst.msk [vmem:[#allocation4 + $0x2c] sm:$0xf] %vm2287_vm11, %v2214_v21  ;;  %5091 = vmatmul.msk.bf16.gmra.mxu0 %vm2456_vm13, %v5207_v10 }
 0x48a   : > { %2306 = vst.msk [vmem:[#allocation4 + $0x48] sm:$0xf] %vm2287_vm11, %v2228_v7 }
 0x490   : > { %v2220_v20 = vpop.permute.xlu1 %2219  ;;  %v2234_v27 = vpop.permute.xlu2 %2233  ;;  %v5210_v39 = vld [vmem:[#allocation4 + $0x28] sm:$0xff] }
 0x491   : > { %2302 = vst.msk [vmem:[#allocation4 + $0x38] sm:$0xf] %vm2287_vm11, %v2220_v20  ;;  %v5214_v37 = vld [vmem:[#allocation4 + $0x48] sm:$0xff] }
 0x492   : > { %2309 = vst.msk [vmem:[#allocation4 + $0x54] sm:$0xf] %vm2287_vm11, %v2234_v27  ;;  %5098 = vmatmul.msk.bf16.vlgmr.msra.gmra.mxu3 %vm2456_vm13, %v5214_v37 }
 0x498   : > { %v2226_v30 = vpop.permute.xlu1 %2225  ;;  %v2240_v28 = vpop.permute.xlu2 %2239  ;;  %v5212_v6 = vld [vmem:[#allocation4 + $0x38] sm:$0xff] }
 0x499   : > { %2305 = vst.msk [vmem:[#allocation4 + $0x44] sm:$0xf] %vm2287_vm11, %v2226_v30  ;;  %5092 = vmatmul.msk.bf16.gmra.mxu0 %vm2456_vm13, %v5208_v8 }
 0x49a   : > { %2312 = vst.msk [vmem:[#allocation4 + $0x60] sm:$0xf] %vm2287_vm11, %v2240_v28 }
 0x4a0   : > { %v2232_v29 = vpop.permute.xlu1 %2231  ;;  %v2246_v24 = vpop.permute.xlu2 %2245  ;;  %v5213_v54 = vld [vmem:[#allocation4 + $0x40] sm:$0xff] }
 0x4a1   : > { %2308 = vst.msk [vmem:[#allocation4 + $0x50] sm:$0xf] %vm2287_vm11, %v2232_v29  ;;  %v5217_v23 = vld [vmem:[#allocation4 + $0x60] sm:$0xff] }
 0x4a2   : > { %2315 = vst.msk [vmem:[#allocation4 + $0x6c] sm:$0xf] %vm2287_vm11, %v2246_v24 }
 0x4a8   : > { %v2238_v47 = vpop.permute.xlu1 %2237  ;;  %v5215_v50 = vld [vmem:[#allocation4 + $0x50] sm:$0xff] }
 0x4a9   : > { %2311 = vst.msk [vmem:[#allocation4 + $0x5c] sm:$0xf] %vm2287_vm11, %v2238_v47  ;;  %5093 = vmatmul.msk.bf16.gmra.mxu0 %vm2456_vm13, %v5209_v11  ;;  %5099 = vmatmul.msk.bf16.gmra.mxu3 %vm2456_vm13, %v5215_v50 }
 0x4b0   : > { %v2244_v18 = vpop.permute.xlu1 %2243  ;;  %v5216_v22 = vld [vmem:[#allocation4 + $0x58] sm:$0xff] }
 0x4b1   : > { %2314 = vst.msk [vmem:[#allocation4 + $0x68] sm:$0xf] %vm2287_vm11, %v2244_v18 }
 0x4b8   : > { %v2250_v32 = vpop.permute.xlu1 %2249  ;;  %v5218_v63 = vld [vmem:[#allocation4 + $0x68] sm:$0xff] }
 0x4b9   : > { %2317 = vst.msk [vmem:[#allocation4 + $0x74] sm:$0xf] %vm2287_vm11, %v2250_v32  ;;  %5094 = vmatmul.msk.bf16.gmra.mxu0 %vm2456_vm13, %v5210_v39  ;;  %5100 = vmatmul.msk.bf16.gmra.mxu3 %vm2456_vm13, %v5216_v22 }
 0x4c0   : > { %v5219_v13 = vld [vmem:[#allocation4 + $0x70] sm:$0xff] }
 0x4c9   : > { %5095 = vmatmul.msk.bf16.gmra.mxu0 %vm2456_vm13, %v5211_v40  ;;  %5101 = vmatmul.msk.bf16.gmra.mxu3 %vm2456_vm13, %v5217_v23 }
 0x4d9   : > { %5096 = vmatmul.msk.bf16.gmra.mxu0 %vm2456_vm13, %v5212_v6  ;;  %5102 = vmatmul.msk.bf16.gmra.mxu3 %vm2456_vm13, %v5218_v63 }
 0x4e0   : > { %v2518_v15 = vpop.f32.mrf.mxu0 }
 0x4e1   : > { %v2519_v25 = vadd.f32 %v6450_v3, %v2518_v15 }
 0x4e3   : > { %v2598_v61 = vmax.f32 %v2519_v25, 0.0 }
 0x4e5   : > { %2631 = vst.msk [vmem:[#allocation3 + $0x19] sm:$0xff] %vm272_vm14, %v2598_v61 }
 0x4e8   : > { %v2520_v49 = vpop.f32.mrf.mxu0 }
 0x4e9   : > { %v2521_v43 = vadd.f32 %v6450_v3, %v2520_v49  ;;  %5097 = vmatmul.msk.bf16.gmra.mxu0 %vm2456_vm13, %v5213_v54  ;;  %5103 = vmatmul.msk.bf16.gmra.mxu3 %vm2456_vm13, %v5219_v13 }
 0x4eb   : > { %v2599_v26 = vmax.f32 %v2521_v43, 0.0 }
 0x4ec   : > { %v2762_v1 = vld [vmem:[#allocation3 + $0x19] sm:$0xff] }
 0x4ed   : > { %v2665_v48 = vld [vmem:[#allocation3 + $0x18] sm:$0xff]  ;;  %2632 = vst.msk [vmem:[#allocation3 + $0x21] sm:$0xff] %vm272_vm14, %v2599_v26  ;;  %v2794_v17 = vpack.c.bf16 %v2762_v1, %v2762_v1 }
 0x4ee   : > { %v6487_v36 = vpack.c.bf16 %v2665_v48, %v2665_v48 }
 0x4ef   : > { %2860 = vrot.lane.b32.xlu0 %v2794_v17, %s5284_s24 }
 0x4f0   : > { %2730 = vst.msk [vmem:[#allocation5 + $0x8] sm:$0xf] %vm2727_vm1, %v6487_v36 }
 0x4f4   : > { %v2763_v59 = vld [vmem:[#allocation3 + $0x21] sm:$0xff] }
 0x4f5   : > { %v2666_v35 = vld [vmem:[#allocation3 + $0x20] sm:$0xff]  ;;  %v2795_v16 = vpack.c.bf16 %v2763_v59, %v2763_v59 }
 0x4f6   : > { %v6492_v19 = vpack.c.bf16 %v2666_v35, %v2666_v35  ;;  %v2523_v60 = vpop.f32.mrf.mxu0 }
 0x4f7   : > { %2862 = vrot.lane.b32.xlu1 %v2795_v16, %s5284_s24  ;;  %v2524_v2 = vadd.f32 %v6450_v3, %v2523_v60  ;;  %v2252_v60 = vpop.permute.xlu2 %2251 }
 0x4f8   : > { %2731 = vst.msk [vmem:[#allocation5 + $0xc] sm:$0xf] %vm2727_vm1, %v6492_v19 }
 0x4f9   : > { %v2600_v9 = vmax.f32 %v2524_v2, 0.0  ;;  %2318 = vst.msk [vmem:[#allocation4 + $0x78] sm:$0xf] %vm2287_vm11, %v2252_v60 }
 0x4fb   : > { %2633 = vst.msk [vmem:[#allocation3 + $0x31] sm:$0xff] %vm272_vm14, %v2600_v9 }
 0x4fe   : > { %v2525_v55 = vpop.f32.mrf.mxu0 }
 0x4ff   : > { %v2526_v41 = vadd.f32 %v6450_v3, %v2525_v55 }
 0x501   : > { %v2601_v44 = vmax.f32 %v2526_v41, 0.0 }
 0x502   : > { %v2764_v34 = vld [vmem:[#allocation3 + $0x31] sm:$0xff] }
 0x503   : > { %v2667_v12 = vld [vmem:[#allocation3 + $0x30] sm:$0xff]  ;;  %2634 = vst.msk [vmem:[#allocation3 + $0x39] sm:$0xff] %vm272_vm14, %v2601_v44  ;;  %v2796_v52 = vpack.c.bf16 %v2764_v34, %v2764_v34 }
 0x504   : > { %v6501_v56 = vpack.c.bf16 %v2667_v12, %v2667_v12 }
 0x505   : > { %2864 = vrot.lane.b32.xlu2 %v2796_v52, %s5284_s24 }
 0x506   : > { %2732 = vst.msk [vmem:[#allocation5 + $0x10] sm:$0xf] %vm2727_vm1, %v6501_v56  ;;  %v2528_v51 = vpop.f32.mrf.mxu0 }
 0x507   : > { %v2529_v42 = vadd.f32 %v6450_v3, %v2528_v51 }
 0x509   : > { %v2602_v62 = vmax.f32 %v2529_v42, 0.0 }
 0x50a   : > { %v2765_v14 = vld [vmem:[#allocation3 + $0x39] sm:$0xff] }
 0x50b   : > { %v2668_v57 = vld [vmem:[#allocation3 + $0x38] sm:$0xff]  ;;  %2635 = vst.msk [vmem:[#allocation3 + $0x49] sm:$0xff] %vm272_vm14, %v2602_v62  ;;  %v2797_v0 = vpack.c.bf16 %v2765_v14, %v2765_v14  ;;  %v2254_v14 = vpop.permute.xlu0 %2253 }
 0x50c   : > { %v6508_v4 = vpack.c.bf16 %v2668_v57, %v2668_v57  ;;  %2319 = vst.msk [vmem:[#allocation4 + $0x7c] sm:$0xf] %vm2287_vm11, %v2254_v14  ;;  %vm4713_vm11 = vcmask 588800  }
 0x50d   : > { %2866 = vrot.lane.b32.xlu0 %v2797_v0, %s5284_s24 }
 0x50e   : > { %2733 = vst.msk [vmem:[#allocation5 + $0x14] sm:$0xf] %vm2727_vm1, %v6508_v4  ;;  %v2530_v21 = vpop.f32.mrf.mxu0 }
 0x50f   : > { %v2531_v7 = vadd.f32 %v6450_v3, %v2530_v21 }
 0x511   : > { %v2603_v10 = vmax.f32 %v2531_v7, 0.0 }
 0x512   : > { %v2766_v20 = vld [vmem:[#allocation3 + $0x49] sm:$0xff] }
 0x513   : > { %v2669_v27 = vld [vmem:[#allocation3 + $0x48] sm:$0xff]  ;;  %2636 = vst.msk [vmem:[#allocation3 + $0x51] sm:$0xff] %vm272_vm14, %v2603_v10  ;;  %v2798_v37 = vpack.c.bf16 %v2766_v20, %v2766_v20 }
 0x514   : > { %v6515_v30 = vpack.c.bf16 %v2669_v27, %v2669_v27  ;;  %v2664_v10 = vld [vmem:[#allocation3 + $0x8] sm:$0xff] }
 0x515   : > { %v2563_v28 = vpop.f32.mrf.mxu3  ;;  %2868 = vrot.lane.b32.xlu1 %v2798_v37, %s5284_s24  ;;  %v2696_v37 = vpack.c.bf16 %v2664_v10, %v2664_v10 }
 0x516   : > { %2734 = vst.msk [vmem:[#allocation5 + $0x18] sm:$0xf] %vm2727_vm1, %v6515_v30  ;;  %v2564_v8 = vadd.f32 %v6450_v3, %v2563_v28  ;;  %v2533_v29 = vpop.f32.mrf.mxu0 }
 0x517   : > { %v2534_v24 = vadd.f32 %v6450_v3, %v2533_v29  ;;  %2729 = vst.msk [vmem:[#allocation5 + $0x4] sm:$0xf] %vm2727_vm1, %v2696_v37  ;;  %v2859_v29 = vpop.permute.xlu2 %2858 }
 0x518   : > { %v2616_v47 = vmax.f32 %v2564_v8, 0.0  ;;  %2954 = vst.msk [vmem:[#allocation5 + $0x4] sm:$0xf] %vm2952_vm2, %v2859_v29 }
 0x519   : > { %v2604_v11 = vmax.f32 %v2534_v24, 0.0 }
 0x51a   : > { %2649 = vst.msk [vmem:[#allocation3 + $0xf1] sm:$0xff] %vm272_vm14, %v2616_v47  ;;  %v2767_v50 = vld [vmem:[#allocation3 + $0x51] sm:$0xff] }
 0x51b   : > { %v2670_v18 = vld [vmem:[#allocation3 + $0x50] sm:$0xff]  ;;  %2637 = vst.msk [vmem:[#allocation3 + $0x61] sm:$0xff] %vm272_vm14, %v2604_v11  ;;  %v2799_v32 = vpack.c.bf16 %v2767_v50, %v2767_v50 }
 0x51c   : > { %v6524_v39 = vpack.c.bf16 %v2670_v18, %v2670_v18 }
 0x51d   : > { %v2565_v22 = vpop.f32.mrf.mxu3  ;;  %2870 = vrot.lane.b32.xlu2 %v2799_v32, %s5284_s24 }
 0x51e   : > { %2735 = vst.msk [vmem:[#allocation5 + $0x1c] sm:$0xf] %vm2727_vm1, %v6524_v39  ;;  %v2566_v45 = vadd.f32 %v6450_v3, %v2565_v22  ;;  %v2535_v33 = vpop.f32.mrf.mxu0 }
 0x51f   : > { %v2536_v40 = vadd.f32 %v6450_v3, %v2535_v33  ;;  %v2663_v33 = vld [vmem:[#allocation3] sm:$0xff] }
 0x520   : > { %v2617_v23 = vmax.f32 %v2566_v45, 0.0 }
 0x521   : > { %v2605_v46 = vmax.f32 %v2536_v40, 0.0  ;;  %v2683_v53 = vld [vmem:[#allocation3 + $0xf0] sm:$0xff] }
 0x522   : > { %2650 = vst.msk [vmem:[#allocation3 + $0xf9] sm:$0xff] %vm272_vm14, %v2617_v23  ;;  %v2768_v31 = vld [vmem:[#allocation3 + $0x61] sm:$0xff]  ;;  %v6532_v6 = vpack.c.bf16 %v2683_v53, %v2683_v53 }
 0x523   : > { %v2671_v58 = vld [vmem:[#allocation3 + $0x60] sm:$0xff]  ;;  %2638 = vst.msk [vmem:[#allocation3 + $0x69] sm:$0xff] %vm272_vm14, %v2605_v46  ;;  %v2800_v63 = vpack.c.bf16 %v2768_v31, %v2768_v31  ;;  %v2695_v46 = vpack.c.bf16 %v2663_v33, %v2663_v33 }
 0x524   : > { %v6535_v38 = vpack.c.bf16 %v2671_v58, %v2671_v58  ;;  %2748 = vst.msk [vmem:[#allocation5 + $0x50] sm:$0xf] %vm2727_vm1, %v6532_v6  ;;  %v2857_v58 = vpop.permute.xlu1 %2856 }
 0x525   : > { %2872 = vrot.lane.b32.xlu0 %v2800_v63, %s5284_s24  ;;  %2728 = vst.msk [vmem:[#allocation5] sm:$0xf] %vm2727_vm1, %v2695_v46 }
 0x526   : > { %2736 = vst.msk [vmem:[#allocation5 + $0x20] sm:$0xf] %vm2727_vm1, %v6535_v38  ;;  %v2538_v5 = vpop.f32.mrf.mxu0 }
 0x527   : > { %v2539_v15 = vadd.f32 %v6450_v3, %v2538_v5  ;;  %2953 = vst.msk [vmem:[#allocation5] sm:$0xf] %vm2952_vm2, %v2857_v58 }
 0x529   : > { %v2606_v25 = vmax.f32 %v2539_v15, 0.0  ;;  %v2684_v43 = vld [vmem:[#allocation3 + $0xf8] sm:$0xff] }
 0x52a   : > { %v2769_v61 = vld [vmem:[#allocation3 + $0x69] sm:$0xff]  ;;  %v6546_v1 = vpack.c.bf16 %v2684_v43, %v2684_v43 }
 0x52b   : > { %v2672_v54 = vld [vmem:[#allocation3 + $0x68] sm:$0xff]  ;;  %2639 = vst.msk [vmem:[#allocation3 + $0x79] sm:$0xff] %vm272_vm14, %v2606_v25  ;;  %v2801_v13 = vpack.c.bf16 %v2769_v61, %v2769_v61 }
 0x52c   : > { %v6544_v49 = vpack.c.bf16 %v2672_v54, %v2672_v54  ;;  %v2568_v26 = vpop.f32.mrf.mxu3  ;;  %2749 = vst.msk [vmem:[#allocation5 + $0x54] sm:$0xf] %vm2727_vm1, %v6546_v1 }
 0x52d   : > { %v2569_v48 = vadd.f32 %v6450_v3, %v2568_v26  ;;  %2874 = vrot.lane.b32.xlu1 %v2801_v13, %s5284_s24 }
 0x52e   : > { %2737 = vst.msk [vmem:[#allocation5 + $0x24] sm:$0xf] %vm2727_vm1, %v6544_v49  ;;  %v2540_v17 = vpop.f32.mrf.mxu0 }
 0x52f   : > { %v2618_v59 = vmax.f32 %v2569_v48, 0.0  ;;  %v2541_v35 = vadd.f32 %v6450_v3, %v2540_v17 }
 0x531   : > { %2651 = vst.msk [vmem:[#allocation3 + $0x109] sm:$0xff] %vm272_vm14, %v2618_v59  ;;  %v2607_v16 = vmax.f32 %v2541_v35, 0.0 }
 0x532   : > { %v2770_v2 = vld [vmem:[#allocation3 + $0x79] sm:$0xff] }
 0x533   : > { %v2673_v9 = vld [vmem:[#allocation3 + $0x78] sm:$0xff]  ;;  %2640 = vst.msk [vmem:[#allocation3 + $0x81] sm:$0xff] %vm272_vm14, %v2607_v16  ;;  %v2802_v55 = vpack.c.bf16 %v2770_v2, %v2770_v2 }
 0x534   : > { %v6558_v41 = vpack.c.bf16 %v2673_v9, %v2673_v9  ;;  %v2570_v44 = vpop.f32.mrf.mxu3 }
 0x535   : > { %v2571_v34 = vadd.f32 %v6450_v3, %v2570_v44  ;;  %2876 = vrot.lane.b32.xlu2 %v2802_v55, %s5284_s24 }
 0x536   : > { %2738 = vst.msk [vmem:[#allocation5 + $0x28] sm:$0xf] %vm2727_vm1, %v6558_v41  ;;  %v2543_v12 = vpop.f32.mrf.mxu0 }
 0x537   : > { %v2619_v52 = vmax.f32 %v2571_v34, 0.0  ;;  %v2544_v51 = vadd.f32 %v6450_v3, %v2543_v12 }
 0x538   : > { %v2685_v42 = vld [vmem:[#allocation3 + $0x108] sm:$0xff] }
 0x539   : > { %2652 = vst.msk [vmem:[#allocation3 + $0x111] sm:$0xff] %vm272_vm14, %v2619_v52  ;;  %v2608_v62 = vmax.f32 %v2544_v51, 0.0  ;;  %v6566_v57 = vpack.c.bf16 %v2685_v42, %v2685_v42 }
 0x53a   : > { %v2771_v0 = vld [vmem:[#allocation3 + $0x81] sm:$0xff] }
 0x53b   : > { %v2674_v21 = vld [vmem:[#allocation3 + $0x80] sm:$0xff]  ;;  %2641 = vst.msk [vmem:[#allocation3 + $0x91] sm:$0xff] %vm272_vm14, %v2608_v62  ;;  %v2803_v7 = vpack.c.bf16 %v2771_v0, %v2771_v0 }
 0x53c   : > { %v6570_v20 = vpack.c.bf16 %v2674_v21, %v2674_v21  ;;  %v2573_v27 = vpop.f32.mrf.mxu3  ;;  %2750 = vst.msk [vmem:[#allocation5 + $0x58] sm:$0xf] %vm2727_vm1, %v6566_v57 }
 0x53d   : > { %v2574_v28 = vadd.f32 %v6450_v3, %v2573_v27  ;;  %2878 = vrot.lane.b32.xlu0 %v2803_v7, %s5284_s24 }
 0x53e   : > { %2739 = vst.msk [vmem:[#allocation5 + $0x2c] sm:$0xf] %vm2727_vm1, %v6570_v20  ;;  %v2545_v8 = vpop.f32.mrf.mxu0 }
 0x53f   : > { %v2620_v24 = vmax.f32 %v2574_v28, 0.0  ;;  %v2546_v47 = vadd.f32 %v6450_v3, %v2545_v8 }
 0x540   : > { %v2686_v50 = vld [vmem:[#allocation3 + $0x110] sm:$0xff] }
 0x541   : > { %2653 = vst.msk [vmem:[#allocation3 + $0x121] sm:$0xff] %vm272_vm14, %v2620_v24  ;;  %v2609_v11 = vmax.f32 %v2546_v47, 0.0  ;;  %v6582_v22 = vpack.c.bf16 %v2686_v50, %v2686_v50 }
 0x542   : > { %v2772_v18 = vld [vmem:[#allocation3 + $0x91] sm:$0xff] }
 0x543   : > { %v2675_v32 = vld [vmem:[#allocation3 + $0x90] sm:$0xff]  ;;  %2642 = vst.msk [vmem:[#allocation3 + $0x99] sm:$0xff] %vm272_vm14, %v2609_v11  ;;  %v2804_v45 = vpack.c.bf16 %v2772_v18, %v2772_v18 }
 0x544   : > { %v6585_v40 = vpack.c.bf16 %v2675_v32, %v2675_v32  ;;  %v2575_v23 = vpop.f32.mrf.mxu3  ;;  %2751 = vst.msk [vmem:[#allocation5 + $0x5c] sm:$0xf] %vm2727_vm1, %v6582_v22 }
 0x545   : > { %v2576_v53 = vadd.f32 %v6450_v3, %v2575_v23  ;;  %2880 = vrot.lane.b32.xlu1 %v2804_v45, %s5284_s24 }
 0x546   : > { %2740 = vst.msk [vmem:[#allocation5 + $0x30] sm:$0xf] %vm2727_vm1, %v6585_v40  ;;  %v2548_v31 = vpop.f32.mrf.mxu0 }
 0x547   : > { %v2621_v63 = vmax.f32 %v2576_v53, 0.0  ;;  %v2549_v5 = vadd.f32 %v6450_v3, %v2548_v31 }
 0x548   : > { %v2687_v15 = vld [vmem:[#allocation3 + $0x120] sm:$0xff] }
 0x549   : > { %2654 = vst.msk [vmem:[#allocation3 + $0x129] sm:$0xff] %vm272_vm14, %v2621_v63  ;;  %v2610_v25 = vmax.f32 %v2549_v5, 0.0  ;;  %v6597_v61 = vpack.c.bf16 %v2687_v15, %v2687_v15 }
 0x54a   : > { %v2773_v54 = vld [vmem:[#allocation3 + $0x99] sm:$0xff] }
 0x54b   : > { %v2676_v13 = vld [vmem:[#allocation3 + $0x98] sm:$0xff]  ;;  %2643 = vst.msk [vmem:[#allocation3 + $0xa9] sm:$0xff] %vm272_vm14, %v2610_v25  ;;  %v2805_v43 = vpack.c.bf16 %v2773_v54, %v2773_v54 }
 0x54c   : > { %v6600_v26 = vpack.c.bf16 %v2676_v13, %v2676_v13  ;;  %v2578_v48 = vpop.f32.mrf.mxu3  ;;  %2752 = vst.msk [vmem:[#allocation5 + $0x60] sm:$0xf] %vm2727_vm1, %v6597_v61 }
 0x54d   : > { %v2579_v17 = vadd.f32 %v6450_v3, %v2578_v48  ;;  %2882 = vrot.lane.b32.xlu2 %v2805_v43, %s5284_s24 }
 0x54e   : > { %2741 = vst.msk [vmem:[#allocation5 + $0x34] sm:$0xf] %vm2727_vm1, %v6600_v26  ;;  %v2550_v59 = vpop.f32.mrf.mxu0 }
 0x54f   : > { %v2622_v35 = vmax.f32 %v2579_v17, 0.0  ;;  %v2551_v16 = vadd.f32 %v6450_v3, %v2550_v59 }
 0x550   : > { %v2688_v2 = vld [vmem:[#allocation3 + $0x128] sm:$0xff] }
 0x551   : > { %2655 = vst.msk [vmem:[#allocation3 + $0x139] sm:$0xff] %vm272_vm14, %v2622_v35  ;;  %v2611_v60 = vmax.f32 %v2551_v16, 0.0  ;;  %v6610_v44 = vpack.c.bf16 %v2688_v2, %v2688_v2 }
 0x552   : > { %v2774_v9 = vld [vmem:[#allocation3 + $0xa9] sm:$0xff] }
 0x553   : > { %v2677_v55 = vld [vmem:[#allocation3 + $0xa8] sm:$0xff]  ;;  %2644 = vst.msk [vmem:[#allocation3 + $0xb1] sm:$0xff] %vm272_vm14, %v2611_v60  ;;  %v2806_v34 = vpack.c.bf16 %v2774_v9, %v2774_v9 }
 0x554   : > { %v6613_v12 = vpack.c.bf16 %v2677_v55, %v2677_v55  ;;  %v2580_v52 = vpop.f32.mrf.mxu3  ;;  %2753 = vst.msk [vmem:[#allocation5 + $0x64] sm:$0xf] %vm2727_vm1, %v6610_v44 }
 0x555   : > { %v2581_v51 = vadd.f32 %v6450_v3, %v2580_v52  ;;  %2884 = vrot.lane.b32.xlu0 %v2806_v34, %s5284_s24  ;;  %v2780_v52 = vld [vmem:[#allocation3 + $0xf1] sm:$0xff] }
 0x556   : > { %2742 = vst.msk [vmem:[#allocation5 + $0x38] sm:$0xf] %vm2727_vm1, %v6613_v12  ;;  %v2553_v42 = vpop.f32.mrf.mxu0 }
 0x557   : > { %v2623_v62 = vmax.f32 %v2581_v51, 0.0  ;;  %v2554_v14 = vadd.f32 %v6450_v3, %v2553_v42 }
 0x558   : > { %v2689_v0 = vld [vmem:[#allocation3 + $0x138] sm:$0xff] }
 0x559   : > { %2656 = vst.msk [vmem:[#allocation3 + $0x141] sm:$0xff] %vm272_vm14, %v2623_v62  ;;  %v2612_v21 = vmax.f32 %v2554_v14, 0.0  ;;  %v6623_v7 = vpack.c.bf16 %v2689_v0, %v2689_v0 }
 0x55a   : > { %v2775_v10 = vld [vmem:[#allocation3 + $0xb1] sm:$0xff] }
 0x55b   : > { %2645 = vst.msk [vmem:[#allocation3 + $0xc1] sm:$0xff] %vm272_vm14, %v2612_v21  ;;  %v2807_v27 = vpack.c.bf16 %v2775_v10, %v2775_v10  ;;  %v2678_v37 = vld [vmem:[#allocation3 + $0xb0] sm:$0xff]  ;;  %v2812_v10 = vpack.c.bf16 %v2780_v52, %v2780_v52 }
 0x55c   : > { %v2583_v28 = vpop.f32.mrf.mxu3  ;;  %v6626_v8 = vpack.c.bf16 %v2678_v37, %v2678_v37  ;;  %2754 = vst.msk [vmem:[#allocation5 + $0x68] sm:$0xf] %vm2727_vm1, %v6623_v7 }
 0x55d   : > { %v2584_v29 = vadd.f32 %v6450_v3, %v2583_v28  ;;  %2886 = vrot.lane.b32.xlu1 %v2807_v27, %s5284_s24 }
 0x55e   : > { %v2555_v24 = vpop.f32.mrf.mxu0  ;;  %2743 = vst.msk [vmem:[#allocation5 + $0x3c] sm:$0xf] %vm2727_vm1, %v6626_v8 }
 0x55f   : > { %v2624_v47 = vmax.f32 %v2584_v29, 0.0  ;;  %v2556_v11 = vadd.f32 %v6450_v3, %v2555_v24  ;;  %v2865_v50 = vpop.permute.xlu2 %2864 }
 0x560   : > { %2957 = vst.msk [vmem:[#allocation5 + $0x10] sm:$0xf] %vm2952_vm2, %v2865_v50  ;;  %v2690_v45 = vld [vmem:[#allocation3 + $0x140] sm:$0xff] }
 0x561   : > { %2657 = vst.msk [vmem:[#allocation3 + $0x151] sm:$0xff] %vm272_vm14, %v2624_v47  ;;  %v2613_v18 = vmax.f32 %v2556_v11, 0.0  ;;  %v2861_v32 = vpop.permute.xlu0 %2860  ;;  %v6638_v46 = vpack.c.bf16 %v2690_v45, %v2690_v45  ;;  %v2781_v47 = vld [vmem:[#allocation3 + $0xf9] sm:$0xff]  ;;  %v5220_v11 = vld [vmem:[#allocation4 + $0x78] sm:$0xff] }
 0x562   : > { %2955 = vst.msk [vmem:[#allocation5 + $0x8] sm:$0xf] %vm2952_vm2, %v2861_v32  ;;  %v2776_v33 = vld [vmem:[#allocation3 + $0xc1] sm:$0xff]  ;;  %5104 = vmatmul.msk.bf16.gmra.mxu3 %vm2456_vm13, %v5220_v11 }
 0x563   : > { %v2679_v23 = vld [vmem:[#allocation3 + $0xc0] sm:$0xff]  ;;  %2646 = vst.msk [vmem:[#allocation3 + $0xc9] sm:$0xff] %vm272_vm14, %v2613_v18  ;;  %v2808_v53 = vpack.c.bf16 %v2776_v33, %v2776_v33  ;;  %v2783_v18 = vld [vmem:[#allocation3 + $0x111] sm:$0xff] }
 0x564   : > { %v6641_v31 = vpack.c.bf16 %v2679_v23, %v2679_v23  ;;  %v2585_v58 = vpop.f32.mrf.mxu3  ;;  %2755 = vst.msk [vmem:[#allocation5 + $0x6c] sm:$0xf] %vm2727_vm1, %v6638_v46  ;;  %v2813_v23 = vpack.c.bf16 %v2781_v47, %v2781_v47  ;;  %v2988_v11 = vld [vmem:[#allocation3 + $0x22] sm:$0xff] }
 0x565   : > { %v2586_v63 = vadd.f32 %v6450_v3, %v2585_v58  ;;  %2888 = vrot.lane.b32.xlu2 %v2808_v53, %s5284_s24  ;;  %v2815_v58 = vpack.c.bf16 %v2783_v18, %v2783_v18 }
 0x566   : > { %2744 = vst.msk [vmem:[#allocation5 + $0x40] sm:$0xf] %vm2727_vm1, %v6641_v31  ;;  %v2558_v5 = vpop.f32.mrf.mxu0 }
 0x567   : > { %v2625_v15 = vmax.f32 %v2586_v63, 0.0  ;;  %v2559_v25 = vadd.f32 %v6450_v3, %v2558_v5 }
 0x568   : > { %v2691_v54 = vld [vmem:[#allocation3 + $0x150] sm:$0xff] }
 0x569   : > { %2658 = vst.msk [vmem:[#allocation3 + $0x159] sm:$0xff] %vm272_vm14, %v2625_v15  ;;  %v2614_v13 = vmax.f32 %v2559_v25, 0.0  ;;  %v2863_v43 = vpop.permute.xlu1 %2862  ;;  %v6651_v48 = vpack.c.bf16 %v2691_v54, %v2691_v54  ;;  %v2782_v15 = vld [vmem:[#allocation3 + $0x109] sm:$0xff]  ;;  %v2784_v25 = vld [vmem:[#allocation3 + $0x121] sm:$0xff]  ;;  %v2786_v54 = vld [vmem:[#allocation3 + $0x139] sm:$0xff] }
 0x56a   : > { %2956 = vst.msk [vmem:[#allocation5 + $0xc] sm:$0xf] %vm2952_vm2, %v2863_v43  ;;  %v2777_v17 = vld [vmem:[#allocation3 + $0xc9] sm:$0xff] }
 0x56b   : > { %2647 = vst.msk [vmem:[#allocation3 + $0xd9] sm:$0xff] %vm272_vm14, %v2614_v13  ;;  %v2809_v59 = vpack.c.bf16 %v2777_v17, %v2777_v17  ;;  %v2680_v35 = vld [vmem:[#allocation3 + $0xc8] sm:$0xff]  ;;  %v6697_v17 = vpack.c.bf16 %v2782_v15, %v2782_v15 }
 0x56c   : > { %v2588_v16 = vpop.f32.mrf.mxu3  ;;  %v6655_v60 = vpack.c.bf16 %v2680_v35, %v2680_v35  ;;  %2756 = vst.msk [vmem:[#allocation5 + $0x70] sm:$0xf] %vm2727_vm1, %v6651_v48  ;;  %v2818_v35 = vpack.c.bf16 %v2786_v54, %v2786_v54 }
 0x56d   : > { %v2589_v2 = vadd.f32 %v6450_v3, %v2588_v16  ;;  %2890 = vrot.lane.b32.xlu0 %v2809_v59, %s5284_s24  ;;  %v2816_v59 = vpack.c.bf16 %v2784_v25, %v2784_v25 }
 0x56e   : > { %v2560_v9 = vpop.f32.mrf.mxu0  ;;  %2745 = vst.msk [vmem:[#allocation5 + $0x44] sm:$0xf] %vm2727_vm1, %v6655_v60 }
 0x56f   : > { %v2626_v55 = vmax.f32 %v2589_v2, 0.0  ;;  %v2561_v34 = vadd.f32 %v6450_v3, %v2560_v9  ;;  %v2785_v2 = vld [vmem:[#allocation3 + $0x129] sm:$0xff]  ;;  %v2787_v9 = vld [vmem:[#allocation3 + $0x141] sm:$0xff] }
 0x570   : > { %v2692_v42 = vld [vmem:[#allocation3 + $0x158] sm:$0xff]  ;;  %v2819_v52 = vpack.c.bf16 %v2787_v9, %v2787_v9 }
 0x571   : > { %2659 = vst.msk [vmem:[#allocation3 + $0x169] sm:$0xff] %vm272_vm14, %v2626_v55  ;;  %v2615_v51 = vmax.f32 %v2561_v34, 0.0  ;;  %v6665_v0 = vpack.c.bf16 %v2692_v42, %v2692_v42  ;;  %v2789_v55 = vld [vmem:[#allocation3 + $0x159] sm:$0xff]  ;;  %v6706_v34 = vpack.c.bf16 %v2785_v2, %v2785_v2 }
 0x572   : > { %v2778_v62 = vld [vmem:[#allocation3 + $0xd9] sm:$0xff] }
 0x573   : > { %v2681_v14 = vld [vmem:[#allocation3 + $0xd8] sm:$0xff]  ;;  %2648 = vst.msk [vmem:[#allocation3 + $0xe1] sm:$0xff] %vm272_vm14, %v2615_v51  ;;  %v2810_v21 = vpack.c.bf16 %v2778_v62, %v2778_v62  ;;  %v2821_v51 = vpack.c.bf16 %v2789_v55, %v2789_v55  ;;  %v2985_v62 = vld [vmem:[#allocation3 + $0x2] sm:$0xff] }
 0x574   : > { %v6668_v27 = vpack.c.bf16 %v2681_v14, %v2681_v14  ;;  %v2590_v37 = vpop.f32.mrf.mxu3  ;;  %2757 = vst.msk [vmem:[#allocation5 + $0x74] sm:$0xf] %vm2727_vm1, %v6665_v0  ;;  %v2788_v14 = vld [vmem:[#allocation3 + $0x151] sm:$0xff] }
 0x575   : > { %v2591_v28 = vadd.f32 %v6450_v3, %v2590_v37  ;;  %2892 = vrot.lane.b32.xlu1 %v2810_v21, %s5284_s24  ;;  %2896 = vrot.lane.b32.xlu0 %v2812_v10, %s5284_s24  ;;  %v3017_v10 = vpack.c.bf16 %v2985_v62, %v2985_v62  ;;  %v6713_v37 = vpack.c.bf16 %v2788_v14, %v2788_v14  ;;  %v2997_v62 = vld [vmem:[#allocation3 + $0x92] sm:$0xff] }
 0x576   : > { %2746 = vst.msk [vmem:[#allocation5 + $0x48] sm:$0xf] %vm2727_vm1, %v6668_v27 }
 0x577   : > { %v2627_v29 = vmax.f32 %v2591_v28, 0.0  ;;  %v2871_v24 = vpop.permute.xlu2 %2870 }
 0x578   : > { %2960 = vst.msk [vmem:[#allocation5 + $0x1c] sm:$0xf] %vm2952_vm2, %v2871_v24  ;;  %v2693_v50 = vld [vmem:[#allocation3 + $0x168] sm:$0xff] }
 0x579   : > { %2660 = vst.msk [vmem:[#allocation3 + $0x171] sm:$0xff] %vm272_vm14, %v2627_v29  ;;  %v6679_v32 = vpack.c.bf16 %v2693_v50, %v2693_v50  ;;  %v2790_v21 = vld [vmem:[#allocation3 + $0x169] sm:$0xff] }
 0x57a   : > { %v2779_v45 = vld [vmem:[#allocation3 + $0xe1] sm:$0xff]  ;;  %v2822_v28 = vpack.c.bf16 %v2790_v21, %v2790_v21  ;;  %v2986_v29 = vld [vmem:[#allocation3 + $0xa] sm:$0xff] }
 0x57b   : > { %v6682_v33 = vpack.c.bf16 %v2779_v45, %v2779_v45  ;;  %v2682_v53 = vld [vmem:[#allocation3 + $0xe0] sm:$0xff]  ;;  %2758 = vst.msk [vmem:[#allocation5 + $0x78] sm:$0xf] %vm2727_vm1, %v6679_v32  ;;  %v3018_v50 = vpack.c.bf16 %v2986_v29, %v2986_v29  ;;  %v3020_v45 = vpack.c.bf16 %v2988_v11, %v2988_v11 }
 0x57c   : > { %v6686_v63 = vpack.c.bf16 %v2682_v53, %v2682_v53  ;;  %v2987_v53 = vld [vmem:[#allocation3 + $0x1a] sm:$0xff]  ;;  %v2996_v29 = vld [vmem:[#allocation3 + $0x82] sm:$0xff] }
 0x57d   : > { %2894 = vrot.lane.b32.xlu2 %v6682_v33, %s5284_s24  ;;  %2898 = vrot.lane.b32.xlu1 %v2813_v23, %s5284_s24  ;;  %v6727_v15 = vpack.c.bf16 %v2987_v53, %v2987_v53  ;;  %v6748_v11 = vpack.c.bf16 %v2996_v29, %v2996_v29  ;;  %v2999_v53 = vld [vmem:[#allocation3 + $0xaa] sm:$0xff] }
 0x57e   : > { %2902 = vrot.lane.b32.xlu0 %v2815_v58, %s5284_s24  ;;  %2747 = vst.msk [vmem:[#allocation5 + $0x4c] sm:$0xf] %vm2727_vm1, %v6686_v63  ;;  %v2989_v58 = vld [vmem:[#allocation3 + $0x32] sm:$0xff] }
 0x57f   : > { %v2867_v5 = vpop.permute.xlu0 %2866  ;;  %v3021_v25 = vpack.c.bf16 %v2989_v58, %v2989_v58  ;;  %v3001_v58 = vld [vmem:[#allocation3 + $0xc2] sm:$0xff] }
 0x580   : > { %2958 = vst.msk [vmem:[#allocation5 + $0x14] sm:$0xf] %vm2952_vm2, %v2867_v5  ;;  %v2694_v13 = vld [vmem:[#allocation3 + $0x170] sm:$0xff] }
 0x581   : > { %v6695_v43 = vpack.c.bf16 %v2694_v13, %v2694_v13  ;;  %v2791_v47 = vld [vmem:[#allocation3 + $0x171] sm:$0xff] }
 0x582   : > { %v6720_v18 = vpack.c.bf16 %v2791_v47, %v2791_v47  ;;  %v2991_v5 = vld [vmem:[#allocation3 + $0x4a] sm:$0xff]  ;;  %v3000_v47 = vld [vmem:[#allocation3 + $0xb2] sm:$0xff] }
 0x583   : > { %2759 = vst.msk [vmem:[#allocation5 + $0x7c] sm:$0xf] %vm2727_vm1, %v6695_v43  ;;  %v3023_v54 = vpack.c.bf16 %v2991_v5, %v2991_v5  ;;  %v3003_v5 = vld [vmem:[#allocation3 + $0xda] sm:$0xff] }
 0x585   : > { %2900 = vrot.lane.b32.xlu2 %v6697_v17, %s5284_s24  ;;  %2904 = vrot.lane.b32.xlu1 %v2816_v59, %s5284_s24  ;;  %v2990_v59 = vld [vmem:[#allocation3 + $0x3a] sm:$0xff] }
 0x586   : > { %2908 = vrot.lane.b32.xlu0 %v2818_v35, %s5284_s24  ;;  %v2992_v35 = vld [vmem:[#allocation3 + $0x52] sm:$0xff]  ;;  %v6734_v2 = vpack.c.bf16 %v2990_v59, %v2990_v59 }
 0x587   : > { %v2869_v16 = vpop.permute.xlu1 %2868  ;;  %v3024_v9 = vpack.c.bf16 %v2992_v35, %v2992_v35  ;;  %v3002_v35 = vld [vmem:[#allocation3 + $0xca] sm:$0xff] }
 0x588   : > { %2959 = vst.msk [vmem:[#allocation5 + $0x18] sm:$0xf] %vm2952_vm2, %v2869_v16  ;;  %v2994_v16 = vld [vmem:[#allocation3 + $0x6a] sm:$0xff] }
 0x589   : > { %v3026_v55 = vpack.c.bf16 %v2994_v16, %v2994_v16  ;;  %v3004_v16 = vld [vmem:[#allocation3 + $0xe2] sm:$0xff] }
 0x58d   : > { %2906 = vrot.lane.b32.xlu2 %v6706_v34, %s5284_s24  ;;  %2910 = vrot.lane.b32.xlu1 %v2819_v52, %s5284_s24 }
 0x58e   : > { %2914 = vrot.lane.b32.xlu0 %v2821_v51, %s5284_s24  ;;  %v2993_v51 = vld [vmem:[#allocation3 + $0x62] sm:$0xff] }
 0x58f   : > { %v2877_v42 = vpop.permute.xlu2 %2876  ;;  %v6741_v14 = vpack.c.bf16 %v2993_v51, %v2993_v51 }
 0x590   : > { %2963 = vst.msk [vmem:[#allocation5 + $0x28] sm:$0xf] %vm2952_vm2, %v2877_v42  ;;  %v2995_v42 = vld [vmem:[#allocation3 + $0x7a] sm:$0xff] }
 0x591   : > { %v3027_v21 = vpack.c.bf16 %v2995_v42, %v2995_v42 }
 0x595   : > { %2912 = vrot.lane.b32.xlu2 %v6713_v37, %s5284_s24  ;;  %2916 = vrot.lane.b32.xlu1 %v2822_v28, %s5284_s24 }
 0x596   : > { %3081 = vrot.lane.b32.xlu0 %v3017_v10, %s5287_s27  ;;  %v3029_v10 = vpack.c.bf16 %v2997_v62, %v2997_v62  ;;  %v3005_v62 = vld [vmem:[#allocation3 + $0xf2] sm:$0xff] }
 0x597   : > { %v2873_v24 = vpop.permute.xlu0 %2872 }
 0x598   : > { %2961 = vst.msk [vmem:[#allocation5 + $0x20] sm:$0xf] %vm2952_vm2, %v2873_v24  ;;  %v2998_v24 = vld [vmem:[#allocation3 + $0x9a] sm:$0xff] }
 0x59d   : > { %2918 = vrot.lane.b32.xlu2 %v6720_v18, %s5284_s24  ;;  %3083 = vrot.lane.b32.xlu1 %v3018_v50, %s5287_s27  ;;  %v3030_v50 = vpack.c.bf16 %v2998_v24, %v2998_v24 }
 0x59e   : > { %3087 = vrot.lane.b32.xlu0 %v3020_v45, %s5287_s27  ;;  %v3032_v45 = vpack.c.bf16 %v3000_v47, %v3000_v47 }
 0x59f   : > { %v2875_v23 = vpop.permute.xlu1 %2874 }
 0x5a0   : > { %2962 = vst.msk [vmem:[#allocation5 + $0x24] sm:$0xf] %vm2952_vm2, %v2875_v23 }
 0x5a5   : > { %3085 = vrot.lane.b32.xlu2 %v6727_v15, %s5287_s27  ;;  %3089 = vrot.lane.b32.xlu1 %v3021_v25, %s5287_s27  ;;  %v6755_v25 = vpack.c.bf16 %v2999_v53, %v2999_v53 }
 0x5a6   : > { %3093 = vrot.lane.b32.xlu0 %v3023_v54, %s5287_s27  ;;  %v3033_v54 = vpack.c.bf16 %v3001_v58, %v3001_v58 }
 0x5a7   : > { %v2883_v13 = vpop.permute.xlu2 %2882 }
 0x5a8   : > { %2966 = vst.msk [vmem:[#allocation5 + $0x34] sm:$0xf] %vm2952_vm2, %v2883_v13  ;;  %v3035_v13 = vpack.c.bf16 %v3003_v5, %v3003_v5 }
 0x5ad   : > { %3091 = vrot.lane.b32.xlu2 %v6734_v2, %s5287_s27  ;;  %3095 = vrot.lane.b32.xlu1 %v3024_v9, %s5287_s27  ;;  %v3006_v9 = vld [vmem:[#allocation3 + $0xfa] sm:$0xff] }
 0x5ae   : > { %3099 = vrot.lane.b32.xlu0 %v3026_v55, %s5287_s27  ;;  %v6762_v55 = vpack.c.bf16 %v3002_v35, %v3002_v35  ;;  %v3038_v51 = vpack.c.bf16 %v3006_v9, %v3006_v9  ;;  %v3013_v35 = vld [vmem:[#allocation3 + $0x152] sm:$0xff] }
 0x5af   : > { %v2879_v52 = vpop.permute.xlu0 %2878 }
 0x5b0   : > { %2964 = vst.msk [vmem:[#allocation5 + $0x2c] sm:$0xf] %vm2952_vm2, %v2879_v52  ;;  %v3036_v52 = vpack.c.bf16 %v3004_v16, %v3004_v16  ;;  %v3015_v16 = vld [vmem:[#allocation3 + $0x16a] sm:$0xff] }
 0x5b5   : > { %3097 = vrot.lane.b32.xlu2 %v6741_v14, %s5287_s27  ;;  %3101 = vrot.lane.b32.xlu1 %v3027_v21, %s5287_s27  ;;  %v3007_v21 = vld [vmem:[#allocation3 + $0x10a] sm:$0xff] }
 0x5b6   : > { %3105 = vrot.lane.b32.xlu0 %v3029_v10, %s5287_s27  ;;  %v3009_v10 = vld [vmem:[#allocation3 + $0x122] sm:$0xff]  ;;  %v3039_v29 = vpack.c.bf16 %v3007_v21, %v3007_v21 }
 0x5b7   : > { %v2881_v28 = vpop.permute.xlu1 %2880  ;;  %v3041_v24 = vpack.c.bf16 %v3009_v10, %v3009_v10  ;;  %v3014_v10 = vld [vmem:[#allocation3 + $0x15a] sm:$0xff] }
 0x5b8   : > { %2965 = vst.msk [vmem:[#allocation5 + $0x30] sm:$0xf] %vm2952_vm2, %v2881_v28  ;;  %v6769_v28 = vpack.c.bf16 %v3005_v62, %v3005_v62 }
 0x5bd   : > { %3103 = vrot.lane.b32.xlu2 %v6748_v11, %s5287_s27  ;;  %3107 = vrot.lane.b32.xlu1 %v3030_v50, %s5287_s27  ;;  %v3008_v50 = vld [vmem:[#allocation3 + $0x112] sm:$0xff] }
 0x5be   : > { %3111 = vrot.lane.b32.xlu0 %v3032_v45, %s5287_s27  ;;  %v3010_v45 = vld [vmem:[#allocation3 + $0x12a] sm:$0xff]  ;;  %v6776_v53 = vpack.c.bf16 %v3008_v50, %v3008_v50 }
 0x5bf   : > { %v2889_v23 = vpop.permute.xlu2 %2888  ;;  %v3042_v58 = vpack.c.bf16 %v3010_v45, %v3010_v45 }
 0x5c0   : > { %2969 = vst.msk [vmem:[#allocation5 + $0x40] sm:$0xf] %vm2952_vm2, %v2889_v23  ;;  %v3012_v23 = vld [vmem:[#allocation3 + $0x142] sm:$0xff] }
 0x5c1   : > { %v3044_v5 = vpack.c.bf16 %v3012_v23, %v3012_v23 }
 0x5c5   : > { %3109 = vrot.lane.b32.xlu2 %v6755_v25, %s5287_s27  ;;  %3113 = vrot.lane.b32.xlu1 %v3033_v54, %s5287_s27 }
 0x5c6   : > { %3117 = vrot.lane.b32.xlu0 %v3035_v13, %s5287_s27 }
 0x5c7   : > { %v2885_v59 = vpop.permute.xlu0 %2884 }
 0x5c8   : > { %2967 = vst.msk [vmem:[#allocation5 + $0x38] sm:$0xf] %vm2952_vm2, %v2885_v59  ;;  %v3011_v59 = vld [vmem:[#allocation3 + $0x13a] sm:$0xff] }
 0x5c9   : > { %v6784_v9 = vpack.c.bf16 %v3011_v59, %v3011_v59 }
 0x5cd   : > { %3115 = vrot.lane.b32.xlu2 %v6762_v55, %s5287_s27  ;;  %3119 = vrot.lane.b32.xlu1 %v3036_v52, %s5287_s27  ;;  %v3045_v52 = vpack.c.bf16 %v3013_v35, %v3013_v35 }
 0x5ce   : > { %3123 = vrot.lane.b32.xlu0 %v3038_v51, %s5287_s27  ;;  %v3047_v51 = vpack.c.bf16 %v3015_v16, %v3015_v16 }
 0x5cf   : > { %v2887_v42 = vpop.permute.xlu1 %2886 }
 0x5d0   : > { %2968 = vst.msk [vmem:[#allocation5 + $0x3c] sm:$0xf] %vm2952_vm2, %v2887_v42 }
 0x5d5   : > { %3121 = vrot.lane.b32.xlu2 %v6769_v28, %s5287_s27  ;;  %3125 = vrot.lane.b32.xlu1 %v3039_v29, %s5287_s27  ;;  %v3016_v29 = vld [vmem:[#allocation3 + $0x172] sm:$0xff] }
 0x5d6   : > { %3129 = vrot.lane.b32.xlu0 %v3041_v24, %s5287_s27  ;;  %v6793_v24 = vpack.c.bf16 %v3014_v10, %v3014_v10  ;;  %v3437_v10 = vld [vmem:[#allocation3 + $0x31] sm:$0xff] }
 0x5d7   : > { %v2895_v47 = vpop.permute.xlu2 %2894 }
 0x5d8   : > { %2972 = vst.msk [vmem:[#allocation5 + $0x4c] sm:$0xf] %vm2952_vm2, %v2895_v47  ;;  %v3048_v47 = vpack.c.bf16 %v3016_v29, %v3016_v29 }
 0x5dd   : > { %3127 = vrot.lane.b32.xlu2 %v6776_v53, %s5287_s27  ;;  %3131 = vrot.lane.b32.xlu1 %v3042_v58, %s5287_s27 }
 0x5de   : > { %3135 = vrot.lane.b32.xlu0 %v3044_v5, %s5287_s27 }
 0x5df   : > { %v2901_v54 = vpop.permute.xlu2 %2900  ;;  %v2891_v13 = vpop.permute.xlu0 %2890 }
 0x5e0   : > { %2975 = vst.msk [vmem:[#allocation5 + $0x58] sm:$0xf] %vm2952_vm2, %v2901_v54 }
 0x5e1   : > { %2970 = vst.msk [vmem:[#allocation5 + $0x44] sm:$0xf] %vm2952_vm2, %v2891_v13 }
 0x5e5   : > { %3133 = vrot.lane.b32.xlu2 %v6784_v9, %s5287_s27  ;;  %3137 = vrot.lane.b32.xlu1 %v3045_v52, %s5287_s27  ;;  %v2593_v54 = vpop.f32.mrf.mxu3 }
 0x5e6   : > { %3141 = vrot.lane.b32.xlu0 %v3047_v51, %s5287_s27  ;;  %v2594_v13 = vadd.f32 %v6450_v3, %v2593_v54 }
 0x5e7   : > { %v2893_v42 = vpop.permute.xlu1 %2892  ;;  %v2907_v62 = vpop.permute.xlu2 %2906 }
 0x5e8   : > { %2971 = vst.msk [vmem:[#allocation5 + $0x48] sm:$0xf] %vm2952_vm2, %v2893_v42  ;;  %v2897_v21 = vpop.permute.xlu0 %2896 }
 0x5e9   : > { %2978 = vst.msk [vmem:[#allocation5 + $0x64] sm:$0xf] %vm2952_vm2, %v2907_v62  ;;  %v3435_v62 = vld [vmem:[#allocation3 + $0x19] sm:$0xff] }
 0x5ea   : > { %2973 = vst.msk [vmem:[#allocation5 + $0x50] sm:$0xf] %vm2952_vm2, %v2897_v21  ;;  %v3467_v29 = vpack.c.bf16 %v3435_v62, %v3435_v62 }
 0x5ed   : > { %3139 = vrot.lane.b32.xlu2 %v6793_v24, %s5287_s27  ;;  %3143 = vrot.lane.b32.xlu1 %v3048_v47, %s5287_s27  ;;  %v2595_v3 = vpop.f32.mrf.mxu3 }
 0x5ee   : > { %3308 = vrot.lane.b32.xlu0 %v6492_v19, %s5289_s29 }
 0x5ef   : > { %v2899_v50 = vpop.permute.xlu1 %2898  ;;  %v2913_v45 = vpop.permute.xlu2 %2912 }
 0x5f0   : > { %2974 = vst.msk [vmem:[#allocation5 + $0x54] sm:$0xf] %vm2952_vm2, %v2899_v50  ;;  %v2903_v23 = vpop.permute.xlu0 %2902 }
 0x5f1   : > { %2981 = vst.msk [vmem:[#allocation5 + $0x70] sm:$0xf] %vm2952_vm2, %v2913_v45 }
 0x5f2   : > { %2976 = vst.msk [vmem:[#allocation5 + $0x5c] sm:$0xf] %vm2952_vm2, %v2903_v23  ;;  %v3438_v23 = vld [vmem:[#allocation3 + $0x39] sm:$0xff] }
 0x5f5   : > { %3306 = vrot.lane.b32.xlu2 %v6487_v36, %s5289_s29  ;;  %3310 = vrot.lane.b32.xlu1 %v6501_v56, %s5289_s29 }
 0x5f6   : > { %3314 = vrot.lane.b32.xlu0 %v6515_v30, %s5289_s29 }
 0x5f7   : > { %v2905_v58 = vpop.permute.xlu1 %2904  ;;  %v2919_v19 = vpop.permute.xlu2 %2918 }
 0x5f8   : > { %2977 = vst.msk [vmem:[#allocation5 + $0x60] sm:$0xf] %vm2952_vm2, %v2905_v58  ;;  %v2909_v5 = vpop.permute.xlu0 %2908  ;;  %v3436_v58 = vld [vmem:[#allocation3 + $0x21] sm:$0xff] }
 0x5f9   : > { %2984 = vst.msk [vmem:[#allocation5 + $0x7c] sm:$0xf] %vm2952_vm2, %v2919_v19  ;;  %v3440_v19 = vld [vmem:[#allocation3 + $0x51] sm:$0xff] }
 0x5fa   : > { %2979 = vst.msk [vmem:[#allocation5 + $0x68] sm:$0xf] %vm2952_vm2, %v2909_v5  ;;  %v6907_v5 = vpack.c.bf16 %v3438_v23, %v3438_v23 }
 0x5fd   : > { %3312 = vrot.lane.b32.xlu2 %v6508_v4, %s5289_s29  ;;  %3316 = vrot.lane.b32.xlu1 %v6524_v39, %s5289_s29  ;;  %v2628_v4 = vmax.f32 %v2594_v13, 0.0 }
 0x5fe   : > { %3320 = vrot.lane.b32.xlu0 %v6544_v49, %s5289_s29 }
 0x5ff   : > { %v2911_v36 = vpop.permute.xlu1 %2910  ;;  %v3086_v56 = vpop.permute.xlu2 %3085  ;;  %2661 = vst.msk [vmem:[#allocation3 + $0x181] sm:$0xff] %vm272_vm14, %v2628_v4  ;;  %v3441_v4 = vld [vmem:[#allocation3 + $0x61] sm:$0xff] }
 0x600   : > { %2980 = vst.msk [vmem:[#allocation5 + $0x6c] sm:$0xf] %vm2952_vm2, %v2911_v36  ;;  %v2915_v30 = vpop.permute.xlu0 %2914  ;;  %v3468_v36 = vpack.c.bf16 %v3436_v58, %v3436_v58  ;;  %v3456_v58 = vld [vmem:[#allocation3 + $0x111] sm:$0xff] }
 0x601   : > { %3180 = vst.msk [vmem:[#allocation5 + $0x8] sm:$0xf] %vm3177_vm3, %v3086_v56  ;;  %v6909_v56 = vpack.c.bf16 %v3440_v19, %v3440_v19  ;;  %v3454_v19 = vld [vmem:[#allocation3 + $0xf9] sm:$0xff] }
 0x602   : > { %2982 = vst.msk [vmem:[#allocation5 + $0x74] sm:$0xf] %vm2952_vm2, %v2915_v30 }
 0x605   : > { %3318 = vrot.lane.b32.xlu2 %v6535_v38, %s5289_s29  ;;  %3322 = vrot.lane.b32.xlu1 %v6558_v41, %s5289_s29  ;;  %v5274_v38 = vld [vmem:[%s7463_s2] ss:$0 sm:$0xff] }
 0x606   : > { %3326 = vrot.lane.b32.xlu0 %v6585_v40, %s5289_s29  ;;  %v2596_v41 = vadd.f32 %v5274_v38, %v2595_v3  ;;  %v3240_v21 = vld [vmem:[#allocation3 + $0x180] sm:$0xff] }
 0x607   : > { %v3092_v39 = vpop.permute.xlu2 %3091  ;;  %v2917_v49 = vpop.permute.xlu1 %2916  ;;  %v3272_v47 = vpack.c.bf16 %v3240_v21, %v3240_v21 }
 0x608   : > { %3183 = vst.msk [vmem:[#allocation5 + $0x14] sm:$0xf] %vm3177_vm3, %v3092_v39  ;;  %v3082_v59 = vpop.permute.xlu0 %3081  ;;  %v2629_v35 = vmax.f32 %v2596_v41, 0.0  ;;  %v3439_v39 = vld [vmem:[#allocation3 + $0x49] sm:$0xff] }
 0x609   : > { %2983 = vst.msk [vmem:[#allocation5 + $0x78] sm:$0xf] %vm2952_vm2, %v2917_v49  ;;  %v3443_v49 = vld [vmem:[#allocation3 + $0x79] sm:$0xff]  ;;  %v6919_v3 = vpack.c.bf16 %v3439_v39, %v3439_v39  ;;  %v3457_v39 = vld [vmem:[#allocation3 + $0x121] sm:$0xff] }
 0x60a   : > { %3178 = vst.msk [vmem:[#allocation5] sm:$0xf] %vm3177_vm3, %v3082_v59  ;;  %v3473_v59 = vpack.c.bf16 %v3441_v4, %v3441_v4  ;;  %v3475_v38 = vpack.c.bf16 %v3443_v49, %v3443_v49  ;;  %v3459_v4 = vld [vmem:[#allocation3 + $0x139] sm:$0xff] }
 0x60b   : > { %2662 = vst.msk [vmem:[#allocation3 + $0x189] sm:$0xff] %vm272_vm14, %v2629_v35  ;;  %v6970_v49 = vpack.c.bf16 %v3459_v4, %v3459_v4 }
 0x60d   : > { %3324 = vrot.lane.b32.xlu2 %v6570_v20, %s5289_s29  ;;  %3328 = vrot.lane.b32.xlu1 %v6600_v26, %s5289_s29 }
 0x60e   : > { %3332 = vrot.lane.b32.xlu0 %v6626_v8, %s5289_s29 }
 0x60f   : > { %v3098_v40 = vpop.permute.xlu2 %3097  ;;  %v3084_v16 = vpop.permute.xlu1 %3083 }
 0x610   : > { %3186 = vst.msk [vmem:[#allocation5 + $0x20] sm:$0xf] %vm3177_vm3, %v3098_v40  ;;  %v3088_v52 = vpop.permute.xlu0 %3087 }
 0x611   : > { %3179 = vst.msk [vmem:[#allocation5 + $0x4] sm:$0xf] %vm3177_vm3, %v3084_v16  ;;  %v3444_v16 = vld [vmem:[#allocation3 + $0x81] sm:$0xff] }
 0x612   : > { %3181 = vst.msk [vmem:[#allocation5 + $0xc] sm:$0xf] %vm3177_vm3, %v3088_v52  ;;  %v3241_v51 = vld [vmem:[#allocation3 + $0x188] sm:$0xff] }
 0x613   : > { %v3273_v42 = vpack.c.bf16 %v3241_v51, %v3241_v51  ;;  %v3442_v52 = vld [vmem:[#allocation3 + $0x69] sm:$0xff] }
 0x615   : > { %3330 = vrot.lane.b32.xlu2 %v6613_v12, %s5289_s29  ;;  %3334 = vrot.lane.b32.xlu1 %v6641_v31, %s5289_s29 }
 0x616   : > { %3338 = vrot.lane.b32.xlu0 %v6668_v27, %s5289_s29 }
 0x617   : > { %v3104_v20 = vpop.permute.xlu2 %3103  ;;  %v3090_v26 = vpop.permute.xlu1 %3089 }
 0x618   : > { %3189 = vst.msk [vmem:[#allocation5 + $0x2c] sm:$0xf] %vm3177_vm3, %v3104_v20  ;;  %v3094_v8 = vpop.permute.xlu0 %3093  ;;  %v3446_v20 = vld [vmem:[#allocation3 + $0x99] sm:$0xff] }
 0x619   : > { %3182 = vst.msk [vmem:[#allocation5 + $0x10] sm:$0xf] %vm3177_vm3, %v3090_v26  ;;  %v3476_v26 = vpack.c.bf16 %v3444_v16, %v3444_v16 }
 0x61a   : > { %3184 = vst.msk [vmem:[#allocation5 + $0x18] sm:$0xf] %vm3177_vm3, %v3094_v8  ;;  %v3474_v8 = vpack.c.bf16 %v3442_v52, %v3442_v52 }
 0x61d   : > { %3336 = vrot.lane.b32.xlu2 %v6655_v60, %s5289_s29  ;;  %3340 = vrot.lane.b32.xlu1 %v6686_v63, %s5289_s29 }
 0x61e   : > { %3344 = vrot.lane.b32.xlu0 %v6546_v1, %s5289_s29 }
 0x61f   : > { %v3110_v12 = vpop.permute.xlu2 %3109  ;;  %v3096_v31 = vpop.permute.xlu1 %3095 }
 0x620   : > { %3192 = vst.msk [vmem:[#allocation5 + $0x38] sm:$0xf] %vm3177_vm3, %v3110_v12  ;;  %v3100_v27 = vpop.permute.xlu0 %3099  ;;  %v3478_v12 = vpack.c.bf16 %v3446_v20, %v3446_v20 }
 0x621   : > { %3185 = vst.msk [vmem:[#allocation5 + $0x1c] sm:$0xf] %vm3177_vm3, %v3096_v31 }
 0x622   : > { %3187 = vst.msk [vmem:[#allocation5 + $0x24] sm:$0xf] %vm3177_vm3, %v3100_v27 }
 0x625   : > { %3342 = vrot.lane.b32.xlu2 %v6532_v6, %s5289_s29  ;;  %3346 = vrot.lane.b32.xlu1 %v6566_v57, %s5289_s29 }
 0x626   : > { %3350 = vrot.lane.b32.xlu0 %v6597_v61, %s5289_s29 }
 0x627   : > { %v3116_v60 = vpop.permute.xlu2 %3115  ;;  %v3102_v1 = vpop.permute.xlu1 %3101 }
 0x628   : > { %3195 = vst.msk [vmem:[#allocation5 + $0x44] sm:$0xf] %vm3177_vm3, %v3116_v60  ;;  %v3106_v63 = vpop.permute.xlu0 %3105 }
 0x629   : > { %3188 = vst.msk [vmem:[#allocation5 + $0x28] sm:$0xf] %vm3177_vm3, %v3102_v1  ;;  %v3447_v1 = vld [vmem:[#allocation3 + $0xa9] sm:$0xff] }
 0x62a   : > { %3190 = vst.msk [vmem:[#allocation5 + $0x30] sm:$0xf] %vm3177_vm3, %v3106_v63  ;;  %v3445_v63 = vld [vmem:[#allocation3 + $0x91] sm:$0xff] }
 0x62d   : > { %3348 = vrot.lane.b32.xlu2 %v6582_v22, %s5289_s29  ;;  %3352 = vrot.lane.b32.xlu1 %v6610_v44, %s5289_s29 }
 0x62e   : > { %3356 = vrot.lane.b32.xlu0 %v6638_v46, %s5289_s29 }
 0x62f   : > { %v3122_v6 = vpop.permute.xlu2 %3121  ;;  %v3108_v57 = vpop.permute.xlu1 %3107 }
 0x630   : > { %3198 = vst.msk [vmem:[#allocation5 + $0x50] sm:$0xf] %vm3177_vm3, %v3122_v6  ;;  %v3112_v61 = vpop.permute.xlu0 %3111  ;;  %v3449_v6 = vld [vmem:[#allocation3 + $0xc1] sm:$0xff] }
 0x631   : > { %3191 = vst.msk [vmem:[#allocation5 + $0x34] sm:$0xf] %vm3177_vm3, %v3108_v57  ;;  %v3479_v57 = vpack.c.bf16 %v3447_v1, %v3447_v1 }
 0x632   : > { %3193 = vst.msk [vmem:[#allocation5 + $0x3c] sm:$0xf] %vm3177_vm3, %v3112_v61  ;;  %v3477_v61 = vpack.c.bf16 %v3445_v63, %v3445_v63  ;;  %v3661_v63 = vld [vmem:[#allocation3 + $0x22] sm:$0xff] }
 0x635   : > { %3354 = vrot.lane.b32.xlu2 %v6623_v7, %s5289_s29  ;;  %3358 = vrot.lane.b32.xlu1 %v6651_v48, %s5289_s29 }
 0x636   : > { %3362 = vrot.lane.b32.xlu0 %v6679_v32, %s5289_s29 }
 0x637   : > { %v3128_v22 = vpop.permute.xlu2 %3127  ;;  %v3114_v44 = vpop.permute.xlu1 %3113 }
 0x638   : > { %3201 = vst.msk [vmem:[#allocation5 + $0x5c] sm:$0xf] %vm3177_vm3, %v3128_v22  ;;  %v3118_v46 = vpop.permute.xlu0 %3117  ;;  %v3481_v22 = vpack.c.bf16 %v3449_v6, %v3449_v6  ;;  %v3466_v6 = vld [vmem:[#allocation3 + $0x189] sm:$0xff] }
 0x639   : > { %3194 = vst.msk [vmem:[#allocation5 + $0x40] sm:$0xf] %vm3177_vm3, %v3114_v44 }
 0x63a   : > { %3196 = vst.msk [vmem:[#allocation5 + $0x48] sm:$0xf] %vm3177_vm3, %v3118_v46 }
 0x63d   : > { %3360 = vrot.lane.b32.xlu2 %v6665_v0, %s5289_s29  ;;  %3364 = vrot.lane.b32.xlu1 %v6695_v43, %s5289_s29  ;;  %v6898_v0 = vpack.c.bf16 %v3437_v10, %v3437_v10 }
 0x63e   : > { %3368 = vrot.lane.b32.xlu0 %v3273_v42, %s5289_s29  ;;  %v3450_v42 = vld [vmem:[#allocation3 + $0xc9] sm:$0xff] }
 0x63f   : > { %v3134_v7 = vpop.permute.xlu2 %3133  ;;  %v3120_v48 = vpop.permute.xlu1 %3119 }
 0x640   : > { %3204 = vst.msk [vmem:[#allocation5 + $0x68] sm:$0xf] %vm3177_vm3, %v3134_v7  ;;  %v3124_v32 = vpop.permute.xlu0 %3123  ;;  %v3448_v7 = vld [vmem:[#allocation3 + $0xb1] sm:$0xff] }
 0x641   : > { %3197 = vst.msk [vmem:[#allocation5 + $0x4c] sm:$0xf] %vm3177_vm3, %v3120_v48  ;;  %v3482_v48 = vpack.c.bf16 %v3450_v42, %v3450_v42 }
 0x642   : > { %3199 = vst.msk [vmem:[#allocation5 + $0x54] sm:$0xf] %vm3177_vm3, %v3124_v32  ;;  %v3480_v32 = vpack.c.bf16 %v3448_v7, %v3448_v7 }
 0x645   : > { %3531 = vrot.lane.b32.xlu1 %v3467_v29, %s5291_s6  ;;  %3366 = vrot.lane.b32.xlu2 %v3272_v47, %s5289_s29  ;;  %v3453_v29 = vld [vmem:[#allocation3 + $0xf1] sm:$0xff]  ;;  %v3451_v47 = vld [vmem:[#allocation3 + $0xd9] sm:$0xff] }
 0x646   : > { %3535 = vrot.lane.b32.xlu0 %v6898_v0, %s5291_s6 }
 0x647   : > { %v3140_v43 = vpop.permute.xlu2 %3139  ;;  %v3126_v50 = vpop.permute.xlu1 %3125 }
 0x648   : > { %3207 = vst.msk [vmem:[#allocation5 + $0x74] sm:$0xf] %vm3177_vm3, %v3140_v43  ;;  %v3130_v45 = vpop.permute.xlu0 %3129  ;;  %v6947_v43 = vpack.c.bf16 %v3453_v29, %v3453_v29 }
 0x649   : > { %3200 = vst.msk [vmem:[#allocation5 + $0x58] sm:$0xf] %vm3177_vm3, %v3126_v50  ;;  %v3483_v50 = vpack.c.bf16 %v3451_v47, %v3451_v47 }
 0x64a   : > { %3202 = vst.msk [vmem:[#allocation5 + $0x60] sm:$0xf] %vm3177_vm3, %v3130_v45 }
 0x64d   : > { %3537 = vrot.lane.b32.xlu1 %v6907_v5, %s5291_s6  ;;  %3533 = vrot.lane.b32.xlu2 %v3468_v36, %s5291_s6  ;;  %v6957_v36 = vpack.c.bf16 %v3456_v58, %v3456_v58 }
 0x64e   : > { %3541 = vrot.lane.b32.xlu0 %v6909_v56, %s5291_s6 }
 0x64f   : > { %v3307_v30 = vpop.permute.xlu2 %3306  ;;  %v3132_v54 = vpop.permute.xlu1 %3131 }
 0x650   : > { %3403 = vst.msk [vmem:[#allocation5] sm:$0xf] %vm3402_vm4, %v3307_v30  ;;  %v3136_v13 = vpop.permute.xlu0 %3135  ;;  %v6959_v30 = vpack.c.bf16 %v3454_v19, %v3454_v19 }
 0x651   : > { %3203 = vst.msk [vmem:[#allocation5 + $0x64] sm:$0xf] %vm3177_vm3, %v3132_v54 }
 0x652   : > { %3205 = vst.msk [vmem:[#allocation5 + $0x6c] sm:$0xf] %vm3177_vm3, %v3136_v13 }
 0x655   : > { %3543 = vrot.lane.b32.xlu1 %v3473_v59, %s5291_s6  ;;  %3539 = vrot.lane.b32.xlu2 %v6919_v3, %s5291_s6  ;;  %v6972_v59 = vpack.c.bf16 %v3457_v39, %v3457_v39 }
 0x656   : > { %3547 = vrot.lane.b32.xlu0 %v3475_v38, %s5291_s6 }
 0x657   : > { %v3313_v41 = vpop.permute.xlu2 %3312  ;;  %v3138_v35 = vpop.permute.xlu1 %3137 }
 0x658   : > { %3406 = vst.msk [vmem:[#allocation5 + $0xc] sm:$0xf] %vm3402_vm4, %v3313_v41  ;;  %v3142_v40 = vpop.permute.xlu0 %3141 }
 0x659   : > { %3206 = vst.msk [vmem:[#allocation5 + $0x70] sm:$0xf] %vm3177_vm3, %v3138_v35  ;;  %v3462_v35 = vld [vmem:[#allocation3 + $0x159] sm:$0xff] }
 0x65a   : > { %3208 = vst.msk [vmem:[#allocation5 + $0x78] sm:$0xf] %vm3177_vm3, %v3142_v40  ;;  %v3460_v40 = vld [vmem:[#allocation3 + $0x141] sm:$0xff]  ;;  %v6983_v16 = vpack.c.bf16 %v3462_v35, %v3462_v35 }
 0x65b   : > { %v6985_v52 = vpack.c.bf16 %v3460_v40, %v3460_v40  ;;  %v3674_v35 = vld [vmem:[#allocation3 + $0xc2] sm:$0xff] }
 0x65d   : > { %3549 = vrot.lane.b32.xlu1 %v3476_v26, %s5291_s6  ;;  %3545 = vrot.lane.b32.xlu2 %v3474_v8, %s5291_s6  ;;  %v3465_v8 = vld [vmem:[#allocation3 + $0x181] sm:$0xff] }
 0x65e   : > { %3553 = vrot.lane.b32.xlu0 %v3478_v12, %s5291_s6  ;;  %v3463_v12 = vld [vmem:[#allocation3 + $0x169] sm:$0xff] }
 0x65f   : > { %v3319_v31 = vpop.permute.xlu2 %3318  ;;  %v3144_v27 = vpop.permute.xlu1 %3143 }
 0x660   : > { %3409 = vst.msk [vmem:[#allocation5 + $0x18] sm:$0xf] %vm3402_vm4, %v3319_v31  ;;  %v3309_v60 = vpop.permute.xlu0 %3308  ;;  %v3497_v31 = vpack.c.bf16 %v3465_v8, %v3465_v8  ;;  %v3679_v8 = vld [vmem:[#allocation3 + $0xfa] sm:$0xff] }
 0x661   : > { %3209 = vst.msk [vmem:[#allocation5 + $0x7c] sm:$0xf] %vm3177_vm3, %v3144_v27  ;;  %v3495_v27 = vpack.c.bf16 %v3463_v12, %v3463_v12  ;;  %v3677_v12 = vld [vmem:[#allocation3 + $0xe2] sm:$0xff] }
 0x662   : > { %3404 = vst.msk [vmem:[#allocation5 + $0x4] sm:$0xf] %vm3402_vm4, %v3309_v60 }
 0x665   : > { %3555 = vrot.lane.b32.xlu1 %v3479_v57, %s5291_s6  ;;  %3551 = vrot.lane.b32.xlu2 %v3477_v61, %s5291_s6  ;;  %v3693_v57 = vpack.c.bf16 %v3661_v63, %v3661_v63  ;;  %v3498_v61 = vpack.c.bf16 %v3466_v6, %v3466_v6  ;;  %v3680_v63 = vld [vmem:[#allocation3 + $0x10a] sm:$0xff] }
 0x666   : > { %3559 = vrot.lane.b32.xlu0 %v3481_v22, %s5291_s6 }
 0x667   : > { %v3325_v44 = vpop.permute.xlu2 %3324  ;;  %v3311_v46 = vpop.permute.xlu1 %3310 }
 0x668   : > { %3412 = vst.msk [vmem:[#allocation5 + $0x24] sm:$0xf] %vm3402_vm4, %v3325_v44  ;;  %v3315_v51 = vpop.permute.xlu0 %3314 }
 0x669   : > { %3405 = vst.msk [vmem:[#allocation5 + $0x8] sm:$0xf] %vm3402_vm4, %v3311_v46  ;;  %v3664_v46 = vld [vmem:[#allocation3 + $0x4a] sm:$0xff] }
 0x66a   : > { %3407 = vst.msk [vmem:[#allocation5 + $0x10] sm:$0xf] %vm3402_vm4, %v3315_v51  ;;  %v3662_v51 = vld [vmem:[#allocation3 + $0x32] sm:$0xff]  ;;  %v7010_v42 = vpack.c.bf16 %v3664_v46, %v3664_v46 }
 0x66b   : > { %v7012_v7 = vpack.c.bf16 %v3662_v51, %v3662_v51 }
 0x66d   : > { %3561 = vrot.lane.b32.xlu1 %v3482_v48, %s5291_s6  ;;  %3557 = vrot.lane.b32.xlu2 %v3480_v32, %s5291_s6 }
 0x66e   : > { %3565 = vrot.lane.b32.xlu0 %v6682_v33, %s5291_s6 }
 0x66f   : > { %v3331_v62 = vpop.permute.xlu2 %3330  ;;  %v3317_v21 = vpop.permute.xlu1 %3316 }
 0x670   : > { %3415 = vst.msk [vmem:[#allocation5 + $0x30] sm:$0xf] %vm3402_vm4, %v3331_v62  ;;  %v3321_v10 = vpop.permute.xlu0 %3320  ;;  %v3667_v62 = vld [vmem:[#allocation3 + $0x6a] sm:$0xff] }
 0x671   : > { %3408 = vst.msk [vmem:[#allocation5 + $0x14] sm:$0xf] %vm3402_vm4, %v3317_v21  ;;  %v3665_v21 = vld [vmem:[#allocation3 + $0x52] sm:$0xff] }
 0x672   : > { %3410 = vst.msk [vmem:[#allocation5 + $0x1c] sm:$0xf] %vm3402_vm4, %v3321_v10  ;;  %v7023_v10 = vpack.c.bf16 %v3667_v62, %v3667_v62  ;;  %v7025_v29 = vpack.c.bf16 %v3665_v21, %v3665_v21  ;;  %v3686_v62 = vld [vmem:[#allocation3 + $0x152] sm:$0xff]  ;;  %v3690_v21 = vld [vmem:[#allocation3 + $0x182] sm:$0xff] }
 0x675   : > { %3567 = vrot.lane.b32.xlu1 %v6947_v43, %s5291_s6  ;;  %3563 = vrot.lane.b32.xlu2 %v3483_v50, %s5291_s6 }
 0x676   : > { %3571 = vrot.lane.b32.xlu0 %v6697_v17, %s5291_s6 }
 0x677   : > { %v3337_v33 = vpop.permute.xlu2 %3336  ;;  %v3323_v45 = vpop.permute.xlu1 %3322 }
 0x678   : > { %3418 = vst.msk [vmem:[#allocation5 + $0x3c] sm:$0xf] %vm3402_vm4, %v3337_v33  ;;  %v3327_v23 = vpop.permute.xlu0 %3326  ;;  %v3670_v33 = vld [vmem:[#allocation3 + $0x92] sm:$0xff] }
 0x679   : > { %3411 = vst.msk [vmem:[#allocation5 + $0x20] sm:$0xf] %vm3402_vm4, %v3323_v45  ;;  %v3668_v45 = vld [vmem:[#allocation3 + $0x7a] sm:$0xff] }
 0x67a   : > { %3413 = vst.msk [vmem:[#allocation5 + $0x28] sm:$0xf] %vm3402_vm4, %v3327_v23  ;;  %v7036_v23 = vpack.c.bf16 %v3670_v33, %v3670_v33  ;;  %v7038_v58 = vpack.c.bf16 %v3668_v45, %v3668_v45 }
 0x67d   : > { %3573 = vrot.lane.b32.xlu1 %v6957_v36, %s5291_s6  ;;  %3569 = vrot.lane.b32.xlu2 %v6959_v30, %s5291_s6 }
 0x67e   : > { %3577 = vrot.lane.b32.xlu0 %v6706_v34, %s5291_s6 }
 0x67f   : > { %v3343_v17 = vpop.permute.xlu2 %3342  ;;  %v3329_v54 = vpop.permute.xlu1 %3328 }
 0x680   : > { %3421 = vst.msk [vmem:[#allocation5 + $0x48] sm:$0xf] %vm3402_vm4, %v3343_v17  ;;  %v3333_v13 = vpop.permute.xlu0 %3332 }
 0x681   : > { %3414 = vst.msk [vmem:[#allocation5 + $0x2c] sm:$0xf] %vm3402_vm4, %v3329_v54  ;;  %v3673_v54 = vld [vmem:[#allocation3 + $0xb2] sm:$0xff] }
 0x682   : > { %3416 = vst.msk [vmem:[#allocation5 + $0x34] sm:$0xf] %vm3402_vm4, %v3333_v13  ;;  %v3671_v13 = vld [vmem:[#allocation3 + $0x9a] sm:$0xff]  ;;  %v3705_v4 = vpack.c.bf16 %v3673_v54, %v3673_v54 }
 0x683   : > { %v7049_v39 = vpack.c.bf16 %v3671_v13, %v3671_v13 }
 0x685   : > { %3579 = vrot.lane.b32.xlu1 %v6970_v49, %s5291_s6  ;;  %3575 = vrot.lane.b32.xlu2 %v6972_v59, %s5291_s6 }
 0x686   : > { %3583 = vrot.lane.b32.xlu0 %v6713_v37, %s5291_s6 }
 0x687   : > { %v3349_v34 = vpop.permute.xlu2 %3348  ;;  %v3335_v38 = vpop.permute.xlu1 %3334 }
 0x688   : > { %3424 = vst.msk [vmem:[#allocation5 + $0x54] sm:$0xf] %vm3402_vm4, %v3349_v34  ;;  %v3339_v41 = vpop.permute.xlu0 %3338 }
 0x689   : > { %3417 = vst.msk [vmem:[#allocation5 + $0x38] sm:$0xf] %vm3402_vm4, %v3335_v38 }
 0x68a   : > { %3419 = vst.msk [vmem:[#allocation5 + $0x40] sm:$0xf] %vm3402_vm4, %v3339_v41  ;;  %v3676_v41 = vld [vmem:[#allocation3 + $0xda] sm:$0xff] }
 0x68b   : > { %v3708_v40 = vpack.c.bf16 %v3676_v41, %v3676_v41  ;;  %v3888_v41 = vld [vmem:[#allocation3 + $0x48] sm:$0xff] }
 0x68d   : > { %3585 = vrot.lane.b32.xlu1 %v6983_v16, %s5291_s6  ;;  %3581 = vrot.lane.b32.xlu2 %v6985_v52, %s5291_s6 }
 0x68e   : > { %3589 = vrot.lane.b32.xlu0 %v6720_v18, %s5291_s6 }
 0x68f   : > { %v3355_v37 = vpop.permute.xlu2 %3354  ;;  %v3341_v20 = vpop.permute.xlu1 %3340 }
 0x690   : > { %3427 = vst.msk [vmem:[#allocation5 + $0x60] sm:$0xf] %vm3402_vm4, %v3355_v37  ;;  %v3345_v26 = vpop.permute.xlu0 %3344  ;;  %v3706_v37 = vpack.c.bf16 %v3674_v35, %v3674_v35  ;;  %v3886_v35 = vld [vmem:[#allocation3 + $0x30] sm:$0xff] }
 0x691   : > { %3420 = vst.msk [vmem:[#allocation5 + $0x44] sm:$0xf] %vm3402_vm4, %v3341_v20 }
 0x692   : > { %3422 = vst.msk [vmem:[#allocation5 + $0x4c] sm:$0xf] %vm3402_vm4, %v3345_v26 }
 0x695   : > { %3591 = vrot.lane.b32.xlu1 %v3497_v31, %s5291_s6  ;;  %3587 = vrot.lane.b32.xlu2 %v3495_v27, %s5291_s6  ;;  %v7066_v31 = vpack.c.bf16 %v3679_v8, %v3679_v8  ;;  %v3709_v27 = vpack.c.bf16 %v3677_v12, %v3677_v12 }
 0x696   : > { %3756 = vrot.lane.b32.xlu0 %v6727_v15, %s5292_s17 }
 0x697   : > { %v3361_v18 = vpop.permute.xlu2 %3360  ;;  %v3347_v60 = vpop.permute.xlu1 %3346 }
 0x698   : > { %3430 = vst.msk [vmem:[#allocation5 + $0x6c] sm:$0xf] %vm3402_vm4, %v3361_v18  ;;  %v3351_v1 = vpop.permute.xlu0 %3350 }
 0x699   : > { %3423 = vst.msk [vmem:[#allocation5 + $0x50] sm:$0xf] %vm3402_vm4, %v3347_v60 }
 0x69a   : > { %3425 = vst.msk [vmem:[#allocation5 + $0x58] sm:$0xf] %vm3402_vm4, %v3351_v1  ;;  %v3682_v1 = vld [vmem:[#allocation3 + $0x122] sm:$0xff] }
 0x69b   : > { %v7076_v6 = vpack.c.bf16 %v3682_v1, %v3682_v1 }
 0x69d   : > { %3758 = vrot.lane.b32.xlu1 %v3693_v57, %s5292_s17  ;;  %3593 = vrot.lane.b32.xlu2 %v3498_v61, %s5291_s6  ;;  %v7078_v57 = vpack.c.bf16 %v3680_v63, %v3680_v63 }
 0x69e   : > { %3762 = vrot.lane.b32.xlu0 %v6734_v2, %s5292_s17 }
 0x69f   : > { %v3353_v15 = vpop.permute.xlu1 %3352  ;;  %v3367_v22 = vpop.permute.xlu2 %3366 }
 0x6a0   : > { %3426 = vst.msk [vmem:[#allocation5 + $0x5c] sm:$0xf] %vm3402_vm4, %v3353_v15  ;;  %v3357_v44 = vpop.permute.xlu0 %3356 }
 0x6a1   : > { %3433 = vst.msk [vmem:[#allocation5 + $0x78] sm:$0xf] %vm3402_vm4, %v3367_v22  ;;  %v3685_v22 = vld [vmem:[#allocation3 + $0x142] sm:$0xff] }
 0x6a2   : > { %3428 = vst.msk [vmem:[#allocation5 + $0x64] sm:$0xf] %vm3402_vm4, %v3357_v44  ;;  %v3683_v44 = vld [vmem:[#allocation3 + $0x12a] sm:$0xff]  ;;  %v7089_v46 = vpack.c.bf16 %v3685_v22, %v3685_v22 }
 0x6a3   : > { %v7091_v51 = vpack.c.bf16 %v3683_v44, %v3683_v44  ;;  %v3894_v22 = vld [vmem:[#allocation3 + $0x90] sm:$0xff]  ;;  %v3892_v44 = vld [vmem:[#allocation3 + $0x78] sm:$0xff] }
 0x6a5   : > { %3764 = vrot.lane.b32.xlu1 %v7010_v42, %s5292_s17  ;;  %3760 = vrot.lane.b32.xlu2 %v7012_v7, %s5292_s17 }
 0x6a6   : > { %3768 = vrot.lane.b32.xlu0 %v6741_v14, %s5292_s17 }
 0x6a7   : > { %v3359_v2 = vpop.permute.xlu1 %3358  ;;  %v3534_v48 = vpop.permute.xlu2 %3533 }
 0x6a8   : > { %3429 = vst.msk [vmem:[#allocation5 + $0x68] sm:$0xf] %vm3402_vm4, %v3359_v2  ;;  %v3363_v32 = vpop.permute.xlu0 %3362 }
 0x6a9   : > { %3629 = vst.msk [vmem:[#allocation5 + $0x4] sm:$0xf] %vm3627_vm5, %v3534_v48 }
 0x6aa   : > { %3431 = vst.msk [vmem:[#allocation5 + $0x70] sm:$0xf] %vm3402_vm4, %v3363_v32  ;;  %v3688_v32 = vld [vmem:[#allocation3 + $0x16a] sm:$0xff] }
 0x6ad   : > { %3770 = vrot.lane.b32.xlu1 %v7023_v10, %s5292_s17  ;;  %3766 = vrot.lane.b32.xlu2 %v7025_v29, %s5292_s17 }
 0x6ae   : > { %3774 = vrot.lane.b32.xlu0 %v6748_v11, %s5292_s17 }
 0x6af   : > { %v3365_v14 = vpop.permute.xlu1 %3364  ;;  %v3540_v47 = vpop.permute.xlu2 %3539 }
 0x6b0   : > { %3432 = vst.msk [vmem:[#allocation5 + $0x74] sm:$0xf] %vm3402_vm4, %v3365_v14  ;;  %v3369_v50 = vpop.permute.xlu0 %3368  ;;  %v7102_v14 = vpack.c.bf16 %v3688_v32, %v3688_v32 }
 0x6b1   : > { %3632 = vst.msk [vmem:[#allocation5 + $0x10] sm:$0xf] %vm3627_vm5, %v3540_v47  ;;  %v7104_v47 = vpack.c.bf16 %v3686_v62, %v3686_v62 }
 0x6b2   : > { %3434 = vst.msk [vmem:[#allocation5 + $0x7c] sm:$0xf] %vm3402_vm4, %v3369_v50  ;;  %v7106_v50 = vpack.c.bf16 %v3690_v21, %v3690_v21 }
 0x6b5   : > { %3776 = vrot.lane.b32.xlu1 %v7036_v23, %s5292_s17  ;;  %3772 = vrot.lane.b32.xlu2 %v7038_v58, %s5292_s17 }
 0x6b6   : > { %3780 = vrot.lane.b32.xlu0 %v6755_v25, %s5292_s17 }
 0x6b7   : > { %v3532_v11 = vpop.permute.xlu1 %3531  ;;  %v3546_v19 = vpop.permute.xlu2 %3545 }
 0x6b8   : > { %3628 = vst.msk [vmem:[#allocation5] sm:$0xf] %vm3627_vm5, %v3532_v11  ;;  %v3536_v17 = vpop.permute.xlu0 %3535  ;;  %v3691_v11 = vld [vmem:[#allocation3 + $0x18a] sm:$0xff] }
 0x6b9   : > { %3635 = vst.msk [vmem:[#allocation5 + $0x1c] sm:$0xf] %vm3627_vm5, %v3546_v19  ;;  %v3689_v19 = vld [vmem:[#allocation3 + $0x172] sm:$0xff]  ;;  %v7117_v54 = vpack.c.bf16 %v3691_v11, %v3691_v11  ;;  %v3899_v11 = vld [vmem:[#allocation3 + $0xc8] sm:$0xff] }
 0x6ba   : > { %3630 = vst.msk [vmem:[#allocation5 + $0x8] sm:$0xf] %vm3627_vm5, %v3536_v17  ;;  %v3887_v17 = vld [vmem:[#allocation3 + $0x38] sm:$0xff]  ;;  %v7119_v13 = vpack.c.bf16 %v3689_v19, %v3689_v19 }
 0x6bd   : > { %3782 = vrot.lane.b32.xlu1 %v3705_v4, %s5292_s17  ;;  %3778 = vrot.lane.b32.xlu2 %v7049_v39, %s5292_s17  ;;  %v3919_v4 = vpack.c.bf16 %v3887_v17, %v3887_v17 }
 0x6be   : > { %3786 = vrot.lane.b32.xlu0 %v6762_v55, %s5292_s17 }
 0x6bf   : > { %v3538_v25 = vpop.permute.xlu1 %3537  ;;  %v3552_v34 = vpop.permute.xlu2 %3551 }
 0x6c0   : > { %3631 = vst.msk [vmem:[#allocation5 + $0xc] sm:$0xf] %vm3627_vm5, %v3538_v25  ;;  %v3542_v38 = vpop.permute.xlu0 %3541 }
 0x6c1   : > { %3638 = vst.msk [vmem:[#allocation5 + $0x28] sm:$0xf] %vm3627_vm5, %v3552_v34 }
 0x6c2   : > { %3633 = vst.msk [vmem:[#allocation5 + $0x14] sm:$0xf] %vm3627_vm5, %v3542_v38 }
 0x6c5   : > { %3788 = vrot.lane.b32.xlu1 %v3708_v40, %s5292_s17  ;;  %3784 = vrot.lane.b32.xlu2 %v3706_v37, %s5292_s17  ;;  %v3890_v40 = vld [vmem:[#allocation3 + $0x60] sm:$0xff]  ;;  %v3920_v37 = vpack.c.bf16 %v3888_v41, %v3888_v41  ;;  %v3900_v41 = vld [vmem:[#allocation3 + $0xd8] sm:$0xff] }
 0x6c6   : > { %3792 = vrot.lane.b32.xlu0 %v6769_v28, %s5292_s17 }
 0x6c7   : > { %v3544_v55 = vpop.permute.xlu1 %3543  ;;  %v3558_v20 = vpop.permute.xlu2 %3557 }
 0x6c8   : > { %3634 = vst.msk [vmem:[#allocation5 + $0x18] sm:$0xf] %vm3627_vm5, %v3544_v55  ;;  %v3548_v26 = vpop.permute.xlu0 %3547  ;;  %v3918_v55 = vpack.c.bf16 %v3886_v35, %v3886_v35  ;;  %v3898_v35 = vld [vmem:[#allocation3 + $0xc0] sm:$0xff] }
 0x6c9   : > { %3641 = vst.msk [vmem:[#allocation5 + $0x34] sm:$0xf] %vm3627_vm5, %v3558_v20  ;;  %v3922_v20 = vpack.c.bf16 %v3890_v40, %v3890_v40  ;;  %v3902_v40 = vld [vmem:[#allocation3 + $0xf0] sm:$0xff] }
 0x6ca   : > { %3636 = vst.msk [vmem:[#allocation5 + $0x20] sm:$0xf] %vm3627_vm5, %v3548_v26 }
 0x6cd   : > { %3794 = vrot.lane.b32.xlu1 %v7066_v31, %s5292_s17  ;;  %3790 = vrot.lane.b32.xlu2 %v3709_v27, %s5292_s17  ;;  %v3891_v27 = vld [vmem:[#allocation3 + $0x68] sm:$0xff] }
 0x6ce   : > { %3798 = vrot.lane.b32.xlu0 %v6776_v53, %s5292_s17 }
 0x6cf   : > { %v3550_v28 = vpop.permute.xlu1 %3549  ;;  %v3564_v18 = vpop.permute.xlu2 %3563 }
 0x6d0   : > { %3637 = vst.msk [vmem:[#allocation5 + $0x24] sm:$0xf] %vm3627_vm5, %v3550_v28  ;;  %v3554_v60 = vpop.permute.xlu0 %3553  ;;  %v3889_v28 = vld [vmem:[#allocation3 + $0x50] sm:$0xff] }
 0x6d1   : > { %3644 = vst.msk [vmem:[#allocation5 + $0x40] sm:$0xf] %vm3627_vm5, %v3564_v18  ;;  %v3893_v18 = vld [vmem:[#allocation3 + $0x80] sm:$0xff]  ;;  %v3921_v1 = vpack.c.bf16 %v3889_v28, %v3889_v28 }
 0x6d2   : > { %3639 = vst.msk [vmem:[#allocation5 + $0x2c] sm:$0xf] %vm3627_vm5, %v3554_v60  ;;  %v3923_v60 = vpack.c.bf16 %v3891_v27, %v3891_v27  ;;  %v3925_v63 = vpack.c.bf16 %v3893_v18, %v3893_v18  ;;  %v3903_v27 = vld [vmem:[#allocation3 + $0xf8] sm:$0xff]  ;;  %v3901_v28 = vld [vmem:[#allocation3 + $0xe0] sm:$0xff]  ;;  %v3905_v18 = vld [vmem:[#allocation3 + $0x110] sm:$0xff] }
 0x6d5   : > { %3800 = vrot.lane.b32.xlu1 %v7076_v6, %s5292_s17  ;;  %3796 = vrot.lane.b32.xlu2 %v7078_v57, %s5292_s17 }
 0x6d6   : > { %3804 = vrot.lane.b32.xlu0 %v6784_v9, %s5292_s17 }
 0x6d7   : > { %v3556_v53 = vpop.permute.xlu1 %3555  ;;  %v3570_v61 = vpop.permute.xlu2 %3569 }
 0x6d8   : > { %3640 = vst.msk [vmem:[#allocation5 + $0x30] sm:$0xf] %vm3627_vm5, %v3556_v53  ;;  %v3560_v15 = vpop.permute.xlu0 %3559 }
 0x6d9   : > { %3647 = vst.msk [vmem:[#allocation5 + $0x4c] sm:$0xf] %vm3627_vm5, %v3570_v61 }
 0x6da   : > { %3642 = vst.msk [vmem:[#allocation5 + $0x38] sm:$0xf] %vm3627_vm5, %v3560_v15 }
 0x6dd   : > { %3806 = vrot.lane.b32.xlu1 %v7089_v46, %s5292_s17  ;;  %3802 = vrot.lane.b32.xlu2 %v7091_v51, %s5292_s17 }
 0x6de   : > { %3810 = vrot.lane.b32.xlu0 %v6793_v24, %s5292_s17 }
 0x6df   : > { %v3562_v9 = vpop.permute.xlu1 %3561  ;;  %v3576_v2 = vpop.permute.xlu2 %3575 }
 0x6e0   : > { %3643 = vst.msk [vmem:[#allocation5 + $0x3c] sm:$0xf] %vm3627_vm5, %v3562_v9  ;;  %v3566_v48 = vpop.permute.xlu0 %3565  ;;  %v3896_v9 = vld [vmem:[#allocation3 + $0xa8] sm:$0xff] }
 0x6e1   : > { %3650 = vst.msk [vmem:[#allocation5 + $0x58] sm:$0xf] %vm3627_vm5, %v3576_v2  ;;  %v3926_v2 = vpack.c.bf16 %v3894_v22, %v3894_v22  ;;  %v3928_v32 = vpack.c.bf16 %v3896_v9, %v3896_v9  ;;  %v3906_v22 = vld [vmem:[#allocation3 + $0x120] sm:$0xff]  ;;  %v3908_v9 = vld [vmem:[#allocation3 + $0x138] sm:$0xff] }
 0x6e2   : > { %3645 = vst.msk [vmem:[#allocation5 + $0x44] sm:$0xf] %vm3627_vm5, %v3566_v48  ;;  %v3924_v48 = vpack.c.bf16 %v3892_v44, %v3892_v44  ;;  %v3904_v44 = vld [vmem:[#allocation3 + $0x108] sm:$0xff] }
 0x6e5   : > { %3812 = vrot.lane.b32.xlu1 %v7102_v14, %s5292_s17  ;;  %3808 = vrot.lane.b32.xlu2 %v7104_v47, %s5292_s17 }
 0x6e6   : > { %3816 = vrot.lane.b32.xlu0 %v7106_v50, %s5292_s17 }
 0x6e7   : > { %v3568_v24 = vpop.permute.xlu1 %3567  ;;  %v3582_v33 = vpop.permute.xlu2 %3581 }
 0x6e8   : > { %3646 = vst.msk [vmem:[#allocation5 + $0x48] sm:$0xf] %vm3627_vm5, %v3568_v24  ;;  %v3572_v45 = vpop.permute.xlu0 %3571 }
 0x6e9   : > { %3653 = vst.msk [vmem:[#allocation5 + $0x64] sm:$0xf] %vm3627_vm5, %v3582_v33  ;;  %v3897_v33 = vld [vmem:[#allocation3 + $0xb0] sm:$0xff] }
 0x6ea   : > { %3648 = vst.msk [vmem:[#allocation5 + $0x50] sm:$0xf] %vm3627_vm5, %v3572_v45  ;;  %v3895_v45 = vld [vmem:[#allocation3 + $0x98] sm:$0xff]  ;;  %v3929_v19 = vpack.c.bf16 %v3897_v33, %v3897_v33  ;;  %v3909_v33 = vld [vmem:[#allocation3 + $0x140] sm:$0xff] }
 0x6eb   : > { %v3927_v17 = vpack.c.bf16 %v3895_v45, %v3895_v45  ;;  %v3907_v45 = vld [vmem:[#allocation3 + $0x128] sm:$0xff] }
 0x6ed   : > { %3818 = vrot.lane.b32.xlu1 %v7117_v54, %s5292_s17  ;;  %3814 = vrot.lane.b32.xlu2 %v7119_v13, %s5292_s17 }
 0x6ee   : > { %3984 = vrot.lane.b32.xlu0 %v3919_v4, %s5293_s20  ;;  %v3931_v4 = vpack.c.bf16 %v3899_v11, %v3899_v11  ;;  %v3941_v11 = vpack.c.bf16 %v3909_v33, %v3909_v33 }
 0x6ef   : > { %v3574_v25 = vpop.permute.xlu1 %3573  ;;  %v3588_v34 = vpop.permute.xlu2 %3587 }
 0x6f0   : > { %3649 = vst.msk [vmem:[#allocation5 + $0x54] sm:$0xf] %vm3627_vm5, %v3574_v25  ;;  %v3578_v38 = vpop.permute.xlu0 %3577 }
 0x6f1   : > { %3656 = vst.msk [vmem:[#allocation5 + $0x70] sm:$0xf] %vm3627_vm5, %v3588_v34 }
 0x6f2   : > { %3651 = vst.msk [vmem:[#allocation5 + $0x5c] sm:$0xf] %vm3627_vm5, %v3578_v38 }
 0x6f5   : > { %3986 = vrot.lane.b32.xlu1 %v3920_v37, %s5293_s20  ;;  %3982 = vrot.lane.b32.xlu2 %v3918_v55, %s5293_s20  ;;  %v3932_v37 = vpack.c.bf16 %v3900_v41, %v3900_v41  ;;  %v3930_v55 = vpack.c.bf16 %v3898_v35, %v3898_v35 }
 0x6f6   : > { %3990 = vrot.lane.b32.xlu0 %v3922_v20, %s5293_s20  ;;  %v3934_v20 = vpack.c.bf16 %v3902_v40, %v3902_v40  ;;  %v4337_v40 = vld [vmem:[#allocation3 + $0x3a] sm:$0xff] }
 0x6f7   : > { %v3580_v26 = vpop.permute.xlu1 %3579  ;;  %v3594_v8 = vpop.permute.xlu2 %3593 }
 0x6f8   : > { %3652 = vst.msk [vmem:[#allocation5 + $0x60] sm:$0xf] %vm3627_vm5, %v3580_v26  ;;  %v3584_v12 = vpop.permute.xlu0 %3583 }
 0x6f9   : > { %3659 = vst.msk [vmem:[#allocation5 + $0x7c] sm:$0xf] %vm3627_vm5, %v3594_v8 }
 0x6fa   : > { %3654 = vst.msk [vmem:[#allocation5 + $0x68] sm:$0xf] %vm3627_vm5, %v3584_v12 }
 0x6fd   : > { %3992 = vrot.lane.b32.xlu1 %v3923_v60, %s5293_s20  ;;  %3988 = vrot.lane.b32.xlu2 %v3921_v1, %s5293_s20  ;;  %v3935_v60 = vpack.c.bf16 %v3903_v27, %v3903_v27  ;;  %v3933_v1 = vpack.c.bf16 %v3901_v28, %v3901_v28 }
 0x6fe   : > { %3996 = vrot.lane.b32.xlu0 %v3925_v63, %s5293_s20  ;;  %v3937_v63 = vpack.c.bf16 %v3905_v18, %v3905_v18 }
 0x6ff   : > { %v3586_v53 = vpop.permute.xlu1 %3585  ;;  %v3761_v61 = vpop.permute.xlu2 %3760 }
 0x700   : > { %3655 = vst.msk [vmem:[#allocation5 + $0x6c] sm:$0xf] %vm3627_vm5, %v3586_v53  ;;  %v3590_v15 = vpop.permute.xlu0 %3589 }
 0x701   : > { %3855 = vst.msk [vmem:[#allocation5 + $0x8] sm:$0xf] %vm3852_vm6, %v3761_v61 }
 0x702   : > { %3657 = vst.msk [vmem:[#allocation5 + $0x74] sm:$0xf] %vm3627_vm5, %v3590_v15 }
 0x705   : > { %3998 = vrot.lane.b32.xlu1 %v3926_v2, %s5293_s20  ;;  %3994 = vrot.lane.b32.xlu2 %v3924_v48, %s5293_s20  ;;  %v3938_v2 = vpack.c.bf16 %v3906_v22, %v3906_v22  ;;  %v3936_v48 = vpack.c.bf16 %v3904_v44, %v3904_v44  ;;  %v4116_v44 = vld [vmem:[#allocation3 + $0x69] sm:$0xff] }
 0x706   : > { %4002 = vrot.lane.b32.xlu0 %v3928_v32, %s5293_s20  ;;  %v3940_v32 = vpack.c.bf16 %v3908_v9, %v3908_v9  ;;  %v4148_v9 = vpack.c.bf16 %v4116_v44, %v4116_v44  ;;  %v4138_v44 = vld [vmem:[#allocation3 + $0x171] sm:$0xff] }
 0x707   : > { %v3592_v62 = vpop.permute.xlu1 %3591  ;;  %v3767_v21 = vpop.permute.xlu2 %3766 }
 0x708   : > { %3658 = vst.msk [vmem:[#allocation5 + $0x78] sm:$0xf] %vm3627_vm5, %v3592_v62  ;;  %v3757_v24 = vpop.permute.xlu0 %3756 }
 0x709   : > { %3858 = vst.msk [vmem:[#allocation5 + $0x14] sm:$0xf] %vm3852_vm6, %v3767_v21 }
 0x70a   : > { %3853 = vst.msk [vmem:[#allocation5] sm:$0xf] %vm3852_vm6, %v3757_v24 }
 0x70d   : > { %4004 = vrot.lane.b32.xlu1 %v3929_v19, %s5293_s20  ;;  %4000 = vrot.lane.b32.xlu2 %v3927_v17, %s5293_s20  ;;  %v3939_v19 = vpack.c.bf16 %v3907_v45, %v3907_v45  ;;  %v4118_v45 = vld [vmem:[#allocation3 + $0x81] sm:$0xff] }
 0x70e   : > { %4008 = vrot.lane.b32.xlu0 %v3931_v4, %s5293_s20 }
 0x70f   : > { %v3759_v25 = vpop.permute.xlu1 %3758  ;;  %v3773_v34 = vpop.permute.xlu2 %3772 }
 0x710   : > { %3854 = vst.msk [vmem:[#allocation5 + $0x4] sm:$0xf] %vm3852_vm6, %v3759_v25  ;;  %v3763_v38 = vpop.permute.xlu0 %3762 }
 0x711   : > { %3861 = vst.msk [vmem:[#allocation5 + $0x20] sm:$0xf] %vm3852_vm6, %v3773_v34  ;;  %v4352_v34 = vld [vmem:[#allocation3 + $0xf2] sm:$0xff] }
 0x712   : > { %3856 = vst.msk [vmem:[#allocation5 + $0xc] sm:$0xf] %vm3852_vm6, %v3763_v38  ;;  %v4384_v38 = vpack.c.bf16 %v4352_v34, %v4352_v34 }
 0x715   : > { %4010 = vrot.lane.b32.xlu1 %v3932_v37, %s5293_s20  ;;  %4006 = vrot.lane.b32.xlu2 %v3930_v55, %s5293_s20  ;;  %v4369_v37 = vpack.c.bf16 %v4337_v40, %v4337_v40 }
 0x716   : > { %4014 = vrot.lane.b32.xlu0 %v3934_v20, %s5293_s20  ;;  %v4129_v20 = vld [vmem:[#allocation3 + $0x109] sm:$0xff] }
 0x717   : > { %v3765_v26 = vpop.permute.xlu1 %3764  ;;  %v3779_v8 = vpop.permute.xlu2 %3778 }
 0x718   : > { %3857 = vst.msk [vmem:[#allocation5 + $0x10] sm:$0xf] %vm3852_vm6, %v3765_v26  ;;  %v3769_v12 = vpop.permute.xlu0 %3768  ;;  %v4161_v26 = vpack.c.bf16 %v4129_v20, %v4129_v20  ;;  %v5241_v20 = vld [vmem:[%s7464_s3 + $0x10] sm:$0xff] }
 0x719   : > { %3864 = vst.msk [vmem:[#allocation5 + $0x2c] sm:$0xf] %vm3852_vm6, %v3779_v8 }
 0x71a   : > { %3859 = vst.msk [vmem:[#allocation5 + $0x18] sm:$0xf] %vm3852_vm6, %v3769_v12  ;;  %v4355_v12 = vld [vmem:[#allocation3 + $0x112] sm:$0xff] }
 0x71b   : > { %v4387_v27 = vpack.c.bf16 %v4355_v12, %v4355_v12 }
 0x71d   : > { %4016 = vrot.lane.b32.xlu1 %v3935_v60, %s5293_s20  ;;  %4012 = vrot.lane.b32.xlu2 %v3933_v1, %s5293_s20  ;;  %v4132_v60 = vld [vmem:[#allocation3 + $0x129] sm:$0xff] }
 0x71e   : > { %4020 = vrot.lane.b32.xlu0 %v3937_v63, %s5293_s20  ;;  %v4164_v1 = vpack.c.bf16 %v4132_v60, %v4132_v60  ;;  %v4115_v63 = vld [vmem:[#allocation3 + $0x61] sm:$0xff] }
 0x71f   : > { %v3771_v53 = vpop.permute.xlu1 %3770  ;;  %v3785_v61 = vpop.permute.xlu2 %3784 }
 0x720   : > { %3860 = vst.msk [vmem:[#allocation5 + $0x1c] sm:$0xf] %vm3852_vm6, %v3771_v53  ;;  %v3775_v15 = vpop.permute.xlu0 %3774  ;;  %v4340_v53 = vld [vmem:[#allocation3 + $0x62] sm:$0xff] }
 0x721   : > { %3867 = vst.msk [vmem:[#allocation5 + $0x38] sm:$0xf] %vm3852_vm6, %v3785_v61  ;;  %v4147_v61 = vpack.c.bf16 %v4115_v63, %v4115_v63 }
 0x722   : > { %3862 = vst.msk [vmem:[#allocation5 + $0x24] sm:$0xf] %vm3852_vm6, %v3775_v15  ;;  %v4372_v15 = vpack.c.bf16 %v4340_v53, %v4340_v53  ;;  %v4137_v53 = vld [vmem:[#allocation3 + $0x169] sm:$0xff] }
 0x725   : > { %4022 = vrot.lane.b32.xlu1 %v3938_v2, %s5293_s20  ;;  %4018 = vrot.lane.b32.xlu2 %v3936_v48, %s5293_s20 }
 0x726   : > { %4026 = vrot.lane.b32.xlu0 %v3940_v32, %s5293_s20  ;;  %v4358_v32 = vld [vmem:[#allocation3 + $0x13a] sm:$0xff] }
 0x727   : > { %v3777_v62 = vpop.permute.xlu1 %3776  ;;  %v3791_v21 = vpop.permute.xlu2 %3790 }
 0x728   : > { %3863 = vst.msk [vmem:[#allocation5 + $0x28] sm:$0xf] %vm3852_vm6, %v3777_v62  ;;  %v3781_v24 = vpop.permute.xlu0 %3780  ;;  %v4117_v62 = vld [vmem:[#allocation3 + $0x79] sm:$0xff] }
 0x729   : > { %3870 = vst.msk [vmem:[#allocation5 + $0x44] sm:$0xf] %vm3852_vm6, %v3791_v21  ;;  %v4390_v21 = vpack.c.bf16 %v4358_v32, %v4358_v32 }
 0x72a   : > { %3865 = vst.msk [vmem:[#allocation5 + $0x30] sm:$0xf] %vm3852_vm6, %v3781_v24  ;;  %v4149_v24 = vpack.c.bf16 %v4117_v62, %v4117_v62 }
 0x72d   : > { %4028 = vrot.lane.b32.xlu1 %v3941_v11, %s5293_s20  ;;  %4024 = vrot.lane.b32.xlu2 %v3939_v19, %s5293_s20  ;;  %v4343_v11 = vld [vmem:[#allocation3 + $0x82] sm:$0xff]  ;;  %v4150_v19 = vpack.c.bf16 %v4118_v45, %v4118_v45 }
 0x72e   : > { %4241 = vrot.lane.b32.xlu0 %v6959_v30, %s5294_s21 }
 0x72f   : > { %v3783_v17 = vpop.permute.xlu1 %3782  ;;  %v3797_v4 = vpop.permute.xlu2 %3796 }
 0x730   : > { %3866 = vst.msk [vmem:[#allocation5 + $0x34] sm:$0xf] %vm3852_vm6, %v3783_v17  ;;  %v3787_v25 = vpop.permute.xlu0 %3786  ;;  %v4375_v17 = vpack.c.bf16 %v4343_v11, %v4343_v11 }
 0x731   : > { %3873 = vst.msk [vmem:[#allocation5 + $0x50] sm:$0xf] %vm3852_vm6, %v3797_v4 }
 0x732   : > { %3868 = vst.msk [vmem:[#allocation5 + $0x3c] sm:$0xf] %vm3852_vm6, %v3787_v25 }
 0x735   : > { %4464 = vrot.lane.b32.xlu1 %v4384_v38, %s5295_s22  ;;  %4239 = vrot.lane.b32.xlu2 %v6947_v43, %s5294_s21 }
 0x736   : > { %4207 = vrot.lane.b32.xlu0 %v6898_v0, %s5294_s21 }
 0x737   : > { %v3789_v30 = vpop.permute.xlu1 %3788  ;;  %v3803_v41 = vpop.permute.xlu2 %3802 }
 0x738   : > { %3869 = vst.msk [vmem:[#allocation5 + $0x40] sm:$0xf] %vm3852_vm6, %v3789_v30  ;;  %v3793_v35 = vpop.permute.xlu0 %3792  ;;  %v3910_v30 = vld [vmem:[#allocation3 + $0x150] sm:$0xff] }
 0x739   : > { %3876 = vst.msk [vmem:[#allocation5 + $0x5c] sm:$0xf] %vm3852_vm6, %v3803_v41  ;;  %v3942_v40 = vpack.c.bf16 %v3910_v30, %v3910_v30 }
 0x73a   : > { %3871 = vst.msk [vmem:[#allocation5 + $0x48] sm:$0xf] %vm3852_vm6, %v3793_v35  ;;  %v4135_v35 = vld [vmem:[#allocation3 + $0x151] sm:$0xff] }
 0x73d   : > { %4209 = vrot.lane.b32.xlu1 %v6907_v5, %s5294_s21  ;;  %4466 = vrot.lane.b32.xlu2 %v7066_v31, %s5295_s22 }
 0x73e   : > { %4434 = vrot.lane.b32.xlu0 %v4369_v37, %s5295_s22  ;;  %v5242_v37 = vld [vmem:[%s7464_s3 + $0x18] sm:$0xff] }
 0x73f   : > { %v3795_v0 = vpop.permute.xlu1 %3794  ;;  %v3809_v43 = vpop.permute.xlu2 %3808 }
 0x740   : > { %3872 = vst.msk [vmem:[#allocation5 + $0x4c] sm:$0xf] %vm3852_vm6, %v3795_v0  ;;  %v3799_v55 = vpop.permute.xlu0 %3798  ;;  %v4167_v0 = vpack.c.bf16 %v4135_v35, %v4135_v35 }
 0x741   : > { %3879 = vst.msk [vmem:[#allocation5 + $0x68] sm:$0xf] %vm3852_vm6, %v3809_v43 }
 0x742   : > { %3874 = vst.msk [vmem:[#allocation5 + $0x54] sm:$0xf] %vm3852_vm6, %v3799_v55 }
 0x745   : > { %4243 = vrot.lane.b32.xlu1 %v4161_v26, %s5294_s21  ;;  %4432 = vrot.lane.b32.xlu2 %v7012_v7, %s5295_s22 }
 0x746   : > { %4468 = vrot.lane.b32.xlu0 %v7078_v57, %s5295_s22 }
 0x747   : > { %v3801_v5 = vpop.permute.xlu1 %3800  ;;  %v3815_v31 = vpop.permute.xlu2 %3814 }
 0x748   : > { %3875 = vst.msk [vmem:[#allocation5 + $0x58] sm:$0xf] %vm3852_vm6, %v3801_v5  ;;  %v3805_v8 = vpop.permute.xlu0 %3804  ;;  %v3911_v5 = vld [vmem:[#allocation3 + $0x158] sm:$0xff] }
 0x749   : > { %3882 = vst.msk [vmem:[#allocation5 + $0x74] sm:$0xf] %vm3852_vm6, %v3815_v31  ;;  %v4361_v31 = vld [vmem:[#allocation3 + $0x15a] sm:$0xff] }
 0x74a   : > { %3877 = vst.msk [vmem:[#allocation5 + $0x60] sm:$0xf] %vm3852_vm6, %v3805_v8  ;;  %v5240_v8 = vld [vmem:[%s7464_s3 + $0x8] sm:$0xff]  ;;  %v4393_v12 = vpack.c.bf16 %v4361_v31, %v4361_v31 }
 0x74b   : > { %v4124_v31 = vld [vmem:[#allocation3 + $0xc9] sm:$0xff] }
 0x74d   : > { %4470 = vrot.lane.b32.xlu1 %v4387_v27, %s5295_s22  ;;  %4245 = vrot.lane.b32.xlu2 %v6957_v36, %s5294_s21 }
 0x74e   : > { %4213 = vrot.lane.b32.xlu0 %v6909_v56, %s5294_s21 }
 0x74f   : > { %v3807_v7 = vpop.permute.xlu1 %3806  ;;  %v3983_v57 = vpop.permute.xlu2 %3982 }
 0x750   : > { %3878 = vst.msk [vmem:[#allocation5 + $0x64] sm:$0xf] %vm3852_vm6, %v3807_v7  ;;  %v3811_v28 = vpop.permute.xlu0 %3810 }
 0x751   : > { %4079 = vst.msk [vmem:[#allocation5] sm:$0xf] %vm4078_vm7, %v3983_v57  ;;  %v5239_v57 = vld [vmem:[%s7464_s3] sm:$0xff] }
 0x752   : > { %3880 = vst.msk [vmem:[#allocation5 + $0x6c] sm:$0xf] %vm3852_vm6, %v3811_v28 }
 0x755   : > { %4436 = vrot.lane.b32.xlu1 %v7010_v42, %s5295_s22  ;;  %4211 = vrot.lane.b32.xlu2 %v6919_v3, %s5294_s21 }
 0x756   : > { %4247 = vrot.lane.b32.xlu0 %v6972_v59, %s5294_s21 }
 0x757   : > { %v3813_v56 = vpop.permute.xlu1 %3812  ;;  %v3989_v36 = vpop.permute.xlu2 %3988 }
 0x758   : > { %3881 = vst.msk [vmem:[#allocation5 + $0x70] sm:$0xf] %vm3852_vm6, %v3813_v56  ;;  %v3817_v18 = vpop.permute.xlu0 %3816  ;;  %v4119_v56 = vld [vmem:[#allocation3 + $0x91] sm:$0xff] }
 0x759   : > { %4082 = vst.msk [vmem:[#allocation5 + $0xc] sm:$0xf] %vm4078_vm7, %v3989_v36 }
 0x75a   : > { %3883 = vst.msk [vmem:[#allocation5 + $0x78] sm:$0xf] %vm3852_vm6, %v3817_v18 }
 0x75d   : > { %4249 = vrot.lane.b32.xlu1 %v4164_v1, %s5294_s21  ;;  %4438 = vrot.lane.b32.xlu2 %v7025_v29, %s5295_s22  ;;  %v4120_v1 = vld [vmem:[#allocation3 + $0x99] sm:$0xff] }
 0x75e   : > { %4474 = vrot.lane.b32.xlu0 %v7091_v51, %s5295_s22 }
 0x75f   : > { %v3819_v3 = vpop.permute.xlu1 %3818  ;;  %v3995_v59 = vpop.permute.xlu2 %3994 }
 0x760   : > { %3884 = vst.msk [vmem:[#allocation5 + $0x7c] sm:$0xf] %vm3852_vm6, %v3819_v3  ;;  %v3985_v42 = vpop.permute.xlu0 %3984  ;;  %v3913_v3 = vld [vmem:[#allocation3 + $0x170] sm:$0xff] }
 0x761   : > { %4085 = vst.msk [vmem:[#allocation5 + $0x18] sm:$0xf] %vm4078_vm7, %v3995_v59  ;;  %v4152_v59 = vpack.c.bf16 %v4120_v1, %v4120_v1  ;;  %v3917_v1 = vld [vmem:[#allocation3 + $0x1a0] sm:$0xff] }
 0x762   : > { %4080 = vst.msk [vmem:[#allocation5 + $0x4] sm:$0xf] %vm4078_vm7, %v3985_v42  ;;  %v3945_v42 = vpack.c.bf16 %v3913_v3, %v3913_v3 }
 0x765   : > { %4215 = vrot.lane.b32.xlu1 %v4147_v61, %s5294_s21  ;;  %4472 = vrot.lane.b32.xlu2 %v7076_v6, %s5295_s22  ;;  %v3912_v61 = vld [vmem:[#allocation3 + $0x168] sm:$0xff] }
 0x766   : > { %4440 = vrot.lane.b32.xlu0 %v4372_v15, %s5295_s22  ;;  %v4169_v15 = vpack.c.bf16 %v4137_v53, %v4137_v53  ;;  %v3949_v53 = vpack.c.bf16 %v3917_v1, %v3917_v1 }
 0x767   : > { %v3987_v29 = vpop.permute.xlu1 %3986  ;;  %v4001_v51 = vpop.permute.xlu2 %4000 }
 0x768   : > { %4081 = vst.msk [vmem:[#allocation5 + $0x8] sm:$0xf] %vm4078_vm7, %v3987_v29  ;;  %v3991_v22 = vpop.permute.xlu0 %3990  ;;  %v3944_v29 = vpack.c.bf16 %v3912_v61, %v3912_v61 }
 0x769   : > { %4088 = vst.msk [vmem:[#allocation5 + $0x24] sm:$0xf] %vm4078_vm7, %v4001_v51 }
 0x76a   : > { %4083 = vst.msk [vmem:[#allocation5 + $0x10] sm:$0xf] %vm4078_vm7, %v3991_v22 }
 0x76d   : > { %4442 = vrot.lane.b32.xlu1 %v7023_v10, %s5295_s22  ;;  %4217 = vrot.lane.b32.xlu2 %v4148_v9, %s5294_s21  ;;  %v4122_v9 = vld [vmem:[#allocation3 + $0xb1] sm:$0xff] }
 0x76e   : > { %4253 = vrot.lane.b32.xlu0 %v6985_v52, %s5294_s21 }
 0x76f   : > { %v3993_v6 = vpop.permute.xlu1 %3992  ;;  %v4007_v2 = vpop.permute.xlu2 %4006 }
 0x770   : > { %4084 = vst.msk [vmem:[#allocation5 + $0x14] sm:$0xf] %vm4078_vm7, %v3993_v6  ;;  %v3997_v48 = vpop.permute.xlu0 %3996  ;;  %v4170_v6 = vpack.c.bf16 %v4138_v44, %v4138_v44 }
 0x771   : > { %4091 = vst.msk [vmem:[#allocation5 + $0x30] sm:$0xf] %vm4078_vm7, %v4007_v2  ;;  %v4154_v2 = vpack.c.bf16 %v4122_v9, %v4122_v9  ;;  %v4350_v9 = vld [vmem:[#allocation3 + $0xda] sm:$0xff] }
 0x772   : > { %4086 = vst.msk [vmem:[#allocation5 + $0x1c] sm:$0xf] %vm4078_vm7, %v3997_v48 }
 0x775   : > { %4476 = vrot.lane.b32.xlu1 %v4390_v21, %s5295_s22  ;;  %4251 = vrot.lane.b32.xlu2 %v6970_v49, %s5294_s21  ;;  %v4601_v49 = vld [vmem:[%s7464_s3 + $0x20] sm:$0xf] }
 0x776   : > { %4219 = vrot.lane.b32.xlu0 %v4149_v24, %s5294_s21  ;;  %v4703_v4 = vunpack.c.l.b16 %v4601_v49  ;;  %v4346_v21 = vld [vmem:[#allocation3 + $0xaa] sm:$0xff]  ;;  %v4347_v49 = vld [vmem:[#allocation3 + $0xb2] sm:$0xff] }
 0x777   : > { %v3999_v52 = vpop.permute.xlu1 %3998  ;;  %v4013_v10 = vpop.permute.xlu2 %4012  ;;  %v4121_v24 = vld [vmem:[#allocation3 + $0xa9] sm:$0xff] }
 0x778   : > { %4087 = vst.msk [vmem:[#allocation5 + $0x20] sm:$0xf] %vm4078_vm7, %v3999_v52  ;;  %v4003_v33 = vpop.permute.xlu0 %4002  ;;  %v4708_v41 = vpack.c.b16 %v4703_v4, %v4703_v4  ;;  %v3914_v52 = vld [vmem:[#allocation3 + $0x180] sm:$0xff] }
 0x779   : > { %4094 = vst.msk [vmem:[#allocation5 + $0x3c] sm:$0xf] %vm4078_vm7, %v4013_v10  ;;  %v4153_v10 = vpack.c.bf16 %v4121_v24, %v4121_v24  ;;  %v4126_v24 = vld [vmem:[#allocation3 + $0xe1] sm:$0xff] }
 0x77a   : > { %4089 = vst.msk [vmem:[#allocation5 + $0x28] sm:$0xf] %vm4078_vm7, %v4003_v33  ;;  %v3946_v33 = vpack.c.bf16 %v3914_v52, %v3914_v52 }
 0x77d   : > { %4221 = vrot.lane.b32.xlu1 %v4150_v19, %s5294_s21  ;;  %4478 = vrot.lane.b32.xlu2 %v7089_v46, %s5295_s22  ;;  %v4764_v46 = vsel %vm4762_vm8, %v4708_v41, 0 }
 0x77e   : > { %4446 = vrot.lane.b32.xlu0 %v4375_v17, %s5295_s22  ;;  %5246 = vmatpush.bf16.msra.mxu2 %v4764_v46  ;;  %v3915_v17 = vld [vmem:[#allocation3 + $0x188] sm:$0xff] }
 0x77f   : > { %v4005_v25 = vpop.permute.xlu1 %4004  ;;  %v4019_v34 = vpop.permute.xlu2 %4018  ;;  %4769 = vmatpush.bf16.msra.mxu1 %v4764_v46 }
 0x780   : > { %4090 = vst.msk [vmem:[#allocation5 + $0x2c] sm:$0xf] %vm4078_vm7, %v4005_v25  ;;  %v4009_v38 = vpop.permute.xlu0 %4008  ;;  %v4140_v25 = vld [vmem:[#allocation3 + $0x189] sm:$0xff] }
 0x781   : > { %4097 = vst.msk [vmem:[#allocation5 + $0x48] sm:$0xf] %vm4078_vm7, %v4019_v34  ;;  %v3947_v34 = vpack.c.bf16 %v3915_v17, %v3915_v17  ;;  %v4172_v30 = vpack.c.bf16 %v4140_v25, %v4140_v25 }
 0x782   : > { %4092 = vst.msk [vmem:[#allocation5 + $0x34] sm:$0xf] %vm4078_vm7, %v4009_v38  ;;  %5247 = vmatpush.bf16.msra.mxu2 %v5242_v37  ;;  %v4379_v38 = vpack.c.bf16 %v4347_v49, %v4347_v49 }
 0x783   : > { %4770 = vmatpush.bf16.msra.mxu1 %v5242_v37  ;;  %v4123_v37 = vld [vmem:[#allocation3 + $0xc1] sm:$0xff] }
 0x785   : > { %4030 = vrot.lane.b32.xlu1 %v3942_v40, %s5293_s20  ;;  %4444 = vrot.lane.b32.xlu2 %v7038_v58, %s5295_s22  ;;  %v3943_v58 = vpack.c.bf16 %v3911_v5, %v3911_v5  ;;  %v4139_v40 = vld [vmem:[#allocation3 + $0x181] sm:$0xff] }
 0x786   : > { %4255 = vrot.lane.b32.xlu0 %v4167_v0, %s5294_s21  ;;  %5248 = vmatpush.bf16.msra.mxu2 %v5241_v20  ;;  %v4171_v0 = vpack.c.bf16 %v4139_v40, %v4139_v40 }
 0x787   : > { %v4011_v43 = vpop.permute.xlu1 %4010  ;;  %v4025_v55 = vpop.permute.xlu2 %4024  ;;  %4771 = vmatpush.bf16.msra.mxu1 %v5241_v20 }
 0x788   : > { %4093 = vst.msk [vmem:[#allocation5 + $0x38] sm:$0xf] %vm4078_vm7, %v4011_v43  ;;  %v4015_v26 = vpop.permute.xlu0 %4014  ;;  %v4155_v43 = vpack.c.bf16 %v4123_v37, %v4123_v37 }
 0x789   : > { %4100 = vst.msk [vmem:[#allocation5 + $0x54] sm:$0xf] %vm4078_vm7, %v4025_v55 }
 0x78a   : > { %4095 = vst.msk [vmem:[#allocation5 + $0x40] sm:$0xf] %vm4078_vm7, %v4015_v26  ;;  %5249 = vmatpush.bf16.msra.mxu2 %v5240_v8 }
 0x78b   : > { %4772 = vmatpush.bf16.msra.mxu1 %v5240_v8 }
 0x78d   : > { %4257 = vrot.lane.b32.xlu1 %v6983_v16, %s5294_s21  ;;  %4032 = vrot.lane.b32.xlu2 %v3943_v58, %s5293_s20  ;;  %v4151_v16 = vpack.c.bf16 %v4119_v56, %v4119_v56  ;;  %v4349_v58 = vld [vmem:[#allocation3 + $0xca] sm:$0xff] }
 0x78e   : > { %4482 = vrot.lane.b32.xlu0 %v4393_v12, %s5295_s22  ;;  %5250 = vmatpush.bf16.msra.mxu2 %v5239_v57  ;;  %v4381_v8 = vpack.c.bf16 %v4349_v58, %v4349_v58  ;;  %v3916_v12 = vld [vmem:[#allocation3 + $0x198] sm:$0xff] }
 0x78f   : > { %v4017_v27 = vpop.permute.xlu1 %4016  ;;  %v4240_v7 = vpop.permute.xlu2 %4239  ;;  %4773 = vmatpush.bf16.msra.mxu1 %v5239_v57 }
 0x790   : > { %4096 = vst.msk [vmem:[#allocation5 + $0x44] sm:$0xf] %vm4078_vm7, %v4017_v27  ;;  %v4021_v28 = vpop.permute.xlu0 %4020 }
 0x791   : > { %4320 = vst.msk [vmem:[#allocation5 + $0x40] sm:$0xf] %vm4303_vm9, %v4240_v7 }
 0x792   : > { %4098 = vst.msk [vmem:[#allocation5 + $0x4c] sm:$0xf] %vm4078_vm7, %v4021_v28  ;;  %v4141_v28 = vld [vmem:[#allocation3 + $0x199] sm:$0xff] }
 0x795   : > { %4223 = vrot.lane.b32.xlu1 %v4151_v16, %s5294_s21  ;;  %4480 = vrot.lane.b32.xlu2 %v7104_v47, %s5295_s22  ;;  %v4348_v16 = vld [vmem:[#allocation3 + $0xc2] sm:$0xff] }
 0x796   : > { %4448 = vrot.lane.b32.xlu0 %v7036_v23, %s5295_s22 }
 0x797   : > { %v4023_v36 = vpop.permute.xlu1 %4022  ;;  %v4467_v18 = vpop.permute.xlu2 %4466 }
 0x798   : > { %4099 = vst.msk [vmem:[#allocation5 + $0x50] sm:$0xf] %vm4078_vm7, %v4023_v36  ;;  %v4027_v60 = vpop.permute.xlu0 %4026  ;;  %v3948_v36 = vpack.c.bf16 %v3916_v12, %v3916_v12 }
 0x799   : > { %4101 = vst.msk [vmem:[#allocation5 + $0x58] sm:$0xf] %vm4078_vm7, %v4027_v60  ;;  %v4142_v60 = vld [vmem:[#allocation3 + $0x1a1] sm:$0xff] }
 0x79d   : > { %4450 = vrot.lane.b32.xlu1 %v7049_v39, %s5295_s22  ;;  %4225 = vrot.lane.b32.xlu2 %v4152_v59, %s5294_s21 }
 0x79e   : > { %4036 = vrot.lane.b32.xlu0 %v3945_v42, %s5293_s20  ;;  %v4367_v42 = vld [vmem:[#allocation3 + $0x1a2] sm:$0xff] }
 0x79f   : > { %v4029_v47 = vpop.permute.xlu1 %4028  ;;  %v4433_v23 = vpop.permute.xlu2 %4432  ;;  %v4399_v61 = vpack.c.bf16 %v4367_v42, %v4367_v42 }
 0x7a0   : > { %4102 = vst.msk [vmem:[#allocation5 + $0x5c] sm:$0xf] %vm4078_vm7, %v4029_v47  ;;  %v4242_v63 = vpop.permute.xlu0 %4241 }
 0x7a1   : > { %4321 = vst.msk [vmem:[#allocation5 + $0x44] sm:$0xf] %vm4303_vm9, %v4242_v63  ;;  %v4174_v63 = vpack.c.bf16 %v4142_v60, %v4142_v60 }
 0x7a2   : > { %4546 = vst.msk [vmem:[#allocation5 + $0x44] sm:$0xf] %vm4528_vm10, %v4467_v18  ;;  %v4173_v18 = vpack.c.bf16 %v4141_v28, %v4141_v28 }
 0x7a5   : > { %4259 = vrot.lane.b32.xlu1 %v4169_v15, %s5294_s21  ;;  %4034 = vrot.lane.b32.xlu2 %v3944_v29, %s5293_s20  ;;  %v4366_v15 = vld [vmem:[#allocation3 + $0x19a] sm:$0xff] }
 0x7a6   : > { %4484 = vrot.lane.b32.xlu0 %v7102_v14, %s5295_s22  ;;  %v4398_v44 = vpack.c.bf16 %v4366_v15, %v4366_v15 }
 0x7a7   : > { %v4465_v39 = vpop.permute.xlu1 %4464  ;;  %v4246_v51 = vpop.permute.xlu2 %4245 }
 0x7a8   : > { %4545 = vst.msk [vmem:[#allocation5 + $0x40] sm:$0xf] %vm4528_vm10, %v4465_v39  ;;  %v4208_v22 = vpop.permute.xlu0 %4207 }
 0x7a9   : > { %4323 = vst.msk [vmem:[#allocation5 + $0x4c] sm:$0xf] %vm4303_vm9, %v4246_v51 }
 0x7aa   : > { %4304 = vst.msk [vmem:[#allocation5] sm:$0xf] %vm4303_vm9, %v4208_v22  ;;  %v4125_v22 = vld [vmem:[#allocation3 + $0xd9] sm:$0xff] }
 0x7ab   : > { %4529 = vst.msk [vmem:[#allocation5] sm:$0xf] %vm4528_vm10, %v4433_v23 }
 0x7ad   : > { %4486 = vrot.lane.b32.xlu1 %v7119_v13, %s5295_s22  ;;  %4261 = vrot.lane.b32.xlu2 %v4170_v6, %s5294_s21  ;;  %v4378_v13 = vpack.c.bf16 %v4346_v21, %v4346_v21  ;;  %v4157_v6 = vpack.c.bf16 %v4125_v22, %v4125_v22  ;;  %v4351_v21 = vld [vmem:[#allocation3 + $0xe2] sm:$0xff] }
 0x7ae   : > { %4229 = vrot.lane.b32.xlu0 %v4154_v2, %s5294_s21  ;;  %v4382_v2 = vpack.c.bf16 %v4350_v9, %v4350_v9  ;;  %v4383_v52 = vpack.c.bf16 %v4351_v21, %v4351_v21 }
 0x7af   : > { %v4210_v14 = vpop.permute.xlu1 %4209  ;;  %v4212_v48 = vpop.permute.xlu2 %4211  ;;  %v5231_v32 = vld [vmem:[#allocation5 + $0x40] sm:$0xff] }
 0x7b0   : > { %4305 = vst.msk [vmem:[#allocation5 + $0x4] sm:$0xf] %vm4303_vm9, %v4210_v14  ;;  %v4435_v62 = vpop.permute.xlu0 %4434  ;;  %5193 = vmatmul.msk.bf16.vlgmr.msra.gmra.mxu2 %vm4713_vm11, %v5231_v32 }
 0x7b1   : > { %4306 = vst.msk [vmem:[#allocation5 + $0x8] sm:$0xf] %vm4303_vm9, %v4212_v48 }
 0x7b2   : > { %4530 = vst.msk [vmem:[#allocation5 + $0x4] sm:$0xf] %vm4528_vm10, %v4435_v62 }
 0x7b5   : > { %4452 = vrot.lane.b32.xlu1 %v4378_v13, %s5295_s22  ;;  %4227 = vrot.lane.b32.xlu2 %v4153_v10, %s5294_s21  ;;  %v4158_v13 = vpack.c.bf16 %v4126_v24, %v4126_v24 }
 0x7b6   : > { %4038 = vrot.lane.b32.xlu0 %v3946_v33, %s5293_s20 }
 0x7b7   : > { %v4244_v45 = vpop.permute.xlu1 %4243  ;;  %v4439_v11 = vpop.permute.xlu2 %4438 }
 0x7b8   : > { %4322 = vst.msk [vmem:[#allocation5 + $0x48] sm:$0xf] %vm4303_vm9, %v4244_v45  ;;  %v4469_v19 = vpop.permute.xlu0 %4468 }
 0x7b9   : > { %4547 = vst.msk [vmem:[#allocation5 + $0x48] sm:$0xf] %vm4528_vm10, %v4469_v19  ;;  %v5223_v4 = vld [vmem:[#allocation5] sm:$0xff] }
 0x7ba   : > { %5185 = vmatmul.msk.bf16.vlgmr.msra.gmra.mxu1 %vm4713_vm11, %v5223_v4 }
 0x7bd   : > { %4040 = vrot.lane.b32.xlu1 %v3947_v34, %s5293_s20  ;;  %4454 = vrot.lane.b32.xlu2 %v4379_v38, %s5295_s22 }
 0x7be   : > { %4265 = vrot.lane.b32.xlu0 %v4172_v30, %s5294_s21 }
 0x7bf   : > { %v4471_v41 = vpop.permute.xlu1 %4470  ;;  %v4473_v35 = vpop.permute.xlu2 %4472 }
 0x7c0   : > { %4548 = vst.msk [vmem:[#allocation5 + $0x4c] sm:$0xf] %vm4528_vm10, %v4471_v41  ;;  %v4214_v46 = vpop.permute.xlu0 %4213 }
 0x7c1   : > { %4307 = vst.msk [vmem:[#allocation5 + $0xc] sm:$0xf] %vm4303_vm9, %v4214_v46 }
 0x7c2   : > { %4532 = vst.msk [vmem:[#allocation5 + $0xc] sm:$0xf] %vm4528_vm10, %v4439_v11 }
 0x7c5   : > { %4488 = vrot.lane.b32.xlu1 %v7106_v50, %s5295_s22  ;;  %4263 = vrot.lane.b32.xlu2 %v4171_v0, %s5294_s21  ;;  %v4156_v50 = vpack.c.bf16 %v4124_v31, %v4124_v31 }
 0x7c6   : > { %4231 = vrot.lane.b32.xlu0 %v4155_v43, %s5294_s21 }
 0x7c7   : > { %v4437_v55 = vpop.permute.xlu1 %4436  ;;  %v4218_v20 = vpop.permute.xlu2 %4217  ;;  %v5232_v26 = vld [vmem:[#allocation5 + $0x48] sm:$0xff] }
 0x7c8   : > { %4531 = vst.msk [vmem:[#allocation5 + $0x8] sm:$0xf] %vm4528_vm10, %v4437_v55  ;;  %v4248_v5 = vpop.permute.xlu0 %4247  ;;  %5194 = vmatmul.msk.bf16.gmra.mxu2 %vm4713_vm11, %v5232_v26 }
 0x7c9   : > { %4309 = vst.msk [vmem:[#allocation5 + $0x14] sm:$0xf] %vm4303_vm9, %v4218_v20 }
 0x7ca   : > { %4324 = vst.msk [vmem:[#allocation5 + $0x50] sm:$0xf] %vm4303_vm9, %v4248_v5 }
 0x7cb   : > { %4549 = vst.msk [vmem:[#allocation5 + $0x50] sm:$0xf] %vm4528_vm10, %v4473_v35 }
 0x7cd   : > { %4233 = vrot.lane.b32.xlu1 %v4156_v50, %s5294_s21  ;;  %4490 = vrot.lane.b32.xlu2 %v7117_v54, %s5295_s22  ;;  %v4380_v54 = vpack.c.bf16 %v4348_v16, %v4348_v16  ;;  %v7400_v16 = vld [vmem:[%s7465_s4] ss:$0 sm:$0xff] }
 0x7ce   : > { %4458 = vrot.lane.b32.xlu0 %v4381_v8, %s5295_s22 }
 0x7cf   : > { %v4250_v27 = vpop.permute.xlu1 %4249  ;;  %v4252_v7 = vpop.permute.xlu2 %4251  ;;  %v5224_v57 = vld [vmem:[#allocation5 + $0x8] sm:$0xff] }
 0x7d0   : > { %4325 = vst.msk [vmem:[#allocation5 + $0x54] sm:$0xf] %vm4303_vm9, %v4250_v27  ;;  %v4475_v56 = vpop.permute.xlu0 %4474  ;;  %5186 = vmatmul.msk.bf16.gmra.mxu1 %vm4713_vm11, %v5224_v57 }
 0x7d1   : > { %4326 = vst.msk [vmem:[#allocation5 + $0x58] sm:$0xf] %vm4303_vm9, %v4252_v7 }
 0x7d2   : > { %4550 = vst.msk [vmem:[#allocation5 + $0x54] sm:$0xf] %vm4528_vm10, %v4475_v56 }
 0x7d5   : > { %4042 = vrot.lane.b32.xlu1 %v3948_v36, %s5293_s20  ;;  %4456 = vrot.lane.b32.xlu2 %v4380_v54, %s5295_s22 }
 0x7d6   : > { %4267 = vrot.lane.b32.xlu0 %v4173_v18, %s5294_s21 }
 0x7d7   : > { %v4216_v3 = vpop.permute.xlu1 %4215  ;;  %v4479_v59 = vpop.permute.xlu2 %4478 }
 0x7d8   : > { %4308 = vst.msk [vmem:[#allocation5 + $0x10] sm:$0xf] %vm4303_vm9, %v4216_v3  ;;  %v4441_v47 = vpop.permute.xlu0 %4440 }
 0x7d9   : > { %4533 = vst.msk [vmem:[#allocation5 + $0x10] sm:$0xf] %vm4528_vm10, %v4441_v47  ;;  %v5233_v23 = vld [vmem:[#allocation5 + $0x50] sm:$0xff] }
 0x7da   : > { %5195 = vmatmul.msk.bf16.gmra.mxu2 %vm4713_vm11, %v5233_v23 }
 0x7dd   : > { %4269 = vrot.lane.b32.xlu1 %v4174_v63, %s5294_s21  ;;  %4044 = vrot.lane.b32.xlu2 %v3949_v53, %s5293_s20 }
 0x7de   : > { %4494 = vrot.lane.b32.xlu0 %v4399_v61, %s5295_s22 }
 0x7df   : > { %v4443_v29 = vpop.permute.xlu1 %4442  ;;  %v4445_v39 = vpop.permute.xlu2 %4444 }
 0x7e0   : > { %4534 = vst.msk [vmem:[#allocation5 + $0x14] sm:$0xf] %vm4528_vm10, %v4443_v29  ;;  %v4254_v51 = vpop.permute.xlu0 %4253 }
 0x7e1   : > { %4327 = vst.msk [vmem:[#allocation5 + $0x5c] sm:$0xf] %vm4303_vm9, %v4254_v51 }
 0x7e2   : > { %4552 = vst.msk [vmem:[#allocation5 + $0x5c] sm:$0xf] %vm4528_vm10, %v4479_v59 }
 0x7e5   : > { %4235 = vrot.lane.b32.xlu1 %v4157_v6, %s5294_s21  ;;  %4492 = vrot.lane.b32.xlu2 %v4398_v44, %s5295_s22 }
 0x7e6   : > { %4460 = vrot.lane.b32.xlu0 %v4382_v2, %s5295_s22 }
 0x7e7   : > { %v4477_v14 = vpop.permute.xlu1 %4476  ;;  %v4033_v48 = vpop.permute.xlu2 %4032  ;;  %v5225_v32 = vld [vmem:[#allocation5 + $0x10] sm:$0xff] }
 0x7e8   : > { %4551 = vst.msk [vmem:[#allocation5 + $0x58] sm:$0xf] %vm4528_vm10, %v4477_v14  ;;  %v4220_v62 = vpop.permute.xlu0 %4219  ;;  %5187 = vmatmul.msk.bf16.gmra.mxu1 %vm4713_vm11, %v5225_v32 }
 0x7e9   : > { %4104 = vst.msk [vmem:[#allocation5 + $0x64] sm:$0xf] %vm4078_vm7, %v4033_v48 }
 0x7ea   : > { %4310 = vst.msk [vmem:[#allocation5 + $0x18] sm:$0xf] %vm4303_vm9, %v4220_v62 }
 0x7eb   : > { %4535 = vst.msk [vmem:[#allocation5 + $0x18] sm:$0xf] %vm4528_vm10, %v4445_v39 }
 0x7ed   : > { %4462 = vrot.lane.b32.xlu1 %v4383_v52, %s5295_s22  ;;  %4237 = vrot.lane.b32.xlu2 %v4158_v13, %s5294_s21 }
 0x7ef   : > { %v4222_v10 = vpop.permute.xlu1 %4221  ;;  %v4481_v33 = vpop.permute.xlu2 %4480  ;;  %v5234_v45 = vld [vmem:[#allocation5 + $0x58] sm:$0xff] }
 0x7f0   : > { %4311 = vst.msk [vmem:[#allocation5 + $0x1c] sm:$0xf] %vm4303_vm9, %v4222_v10  ;;  %v4447_v11 = vpop.permute.xlu0 %4446  ;;  %5196 = vmatmul.msk.bf16.gmra.mxu2 %vm4713_vm11, %v5234_v45 }
 0x7f1   : > { %4536 = vst.msk [vmem:[#allocation5 + $0x1c] sm:$0xf] %vm4528_vm10, %v4447_v11 }
 0x7f7   : > { %v4031_v19 = vpop.permute.xlu1 %4030  ;;  %v4226_v17 = vpop.permute.xlu2 %4225 }
 0x7f8   : > { %4103 = vst.msk [vmem:[#allocation5 + $0x60] sm:$0xf] %vm4078_vm7, %v4031_v19  ;;  %v4256_v49 = vpop.permute.xlu0 %4255  ;;  %v5226_v4 = vld [vmem:[#allocation5 + $0x18] sm:$0xff] }
 0x7f9   : > { %4313 = vst.msk [vmem:[#allocation5 + $0x24] sm:$0xf] %vm4303_vm9, %v4226_v17  ;;  %5188 = vmatmul.msk.bf16.gmra.mxu1 %vm4713_vm11, %v5226_v4 }
 0x7fa   : > { %4328 = vst.msk [vmem:[#allocation5 + $0x60] sm:$0xf] %vm4303_vm9, %v4256_v49 }
 0x7fb   : > { %4553 = vst.msk [vmem:[#allocation5 + $0x60] sm:$0xf] %vm4528_vm10, %v4481_v33 }
 0x7ff   : > { %v4258_v25 = vpop.permute.xlu1 %4257  ;;  %v4035_v34 = vpop.permute.xlu2 %4034 }
 0x800   : > { %4329 = vst.msk [vmem:[#allocation5 + $0x64] sm:$0xf] %vm4303_vm9, %v4258_v25  ;;  %v4483_v38 = vpop.permute.xlu0 %4482 }
 0x801   : > { %4105 = vst.msk [vmem:[#allocation5 + $0x68] sm:$0xf] %vm4078_vm7, %v4035_v34 }
 0x802   : > { %4554 = vst.msk [vmem:[#allocation5 + $0x64] sm:$0xf] %vm4528_vm10, %v4483_v38 }
 0x807   : > { %v4224_v30 = vpop.permute.xlu1 %4223  ;;  %v4262_v41 = vpop.permute.xlu2 %4261 }
 0x808   : > { %4312 = vst.msk [vmem:[#allocation5 + $0x20] sm:$0xf] %vm4303_vm9, %v4224_v30  ;;  %v4449_v35 = vpop.permute.xlu0 %4448 }
 0x809   : > { %4537 = vst.msk [vmem:[#allocation5 + $0x20] sm:$0xf] %vm4528_vm10, %v4449_v35  ;;  %v5235_v46 = vld [vmem:[#allocation5 + $0x60] sm:$0xff] }
 0x80a   : > { %5197 = vmatmul.msk.bf16.gmra.mxu2 %vm4713_vm11, %v5235_v46 }
 0x80f   : > { %v4451_v40 = vpop.permute.xlu1 %4450  ;;  %v4228_v37 = vpop.permute.xlu2 %4227 }
 0x810   : > { %4538 = vst.msk [vmem:[#allocation5 + $0x24] sm:$0xf] %vm4528_vm10, %v4451_v40  ;;  %v4037_v0 = vpop.permute.xlu0 %4036 }
 0x811   : > { %4314 = vst.msk [vmem:[#allocation5 + $0x28] sm:$0xf] %vm4303_vm9, %v4228_v37 }
 0x812   : > { %4106 = vst.msk [vmem:[#allocation5 + $0x6c] sm:$0xf] %vm4078_vm7, %v4037_v0 }
 0x813   : > { %4331 = vst.msk [vmem:[#allocation5 + $0x6c] sm:$0xf] %vm4303_vm9, %v4262_v41 }
 0x817   : > { %v4260_v43 = vpop.permute.xlu1 %4259  ;;  %v4455_v55 = vpop.permute.xlu2 %4454  ;;  %v5227_v20 = vld [vmem:[#allocation5 + $0x20] sm:$0xff] }
 0x818   : > { %4330 = vst.msk [vmem:[#allocation5 + $0x68] sm:$0xf] %vm4303_vm9, %v4260_v43  ;;  %v4485_v26 = vpop.permute.xlu0 %4484  ;;  %5189 = vmatmul.msk.bf16.gmra.mxu1 %vm4713_vm11, %v5227_v20 }
 0x819   : > { %4555 = vst.msk [vmem:[#allocation5 + $0x68] sm:$0xf] %vm4528_vm10, %v4485_v26 }
 0x81f   : > { %v4487_v5 = vpop.permute.xlu1 %4486  ;;  %v4264_v31 = vpop.permute.xlu2 %4263 }
 0x820   : > { %4556 = vst.msk [vmem:[#allocation5 + $0x6c] sm:$0xf] %vm4528_vm10, %v4487_v5  ;;  %v4230_v58 = vpop.permute.xlu0 %4229 }
 0x821   : > { %4315 = vst.msk [vmem:[#allocation5 + $0x2c] sm:$0xf] %vm4303_vm9, %v4230_v58 }
 0x822   : > { %4540 = vst.msk [vmem:[#allocation5 + $0x2c] sm:$0xf] %vm4528_vm10, %v4455_v55 }
 0x827   : > { %v4453_v50 = vpop.permute.xlu1 %4452  ;;  %v4491_v8 = vpop.permute.xlu2 %4490  ;;  %v5236_v12 = vld [vmem:[#allocation5 + $0x68] sm:$0xff] }
 0x828   : > { %4539 = vst.msk [vmem:[#allocation5 + $0x28] sm:$0xf] %vm4528_vm10, %v4453_v50  ;;  %v4039_v27 = vpop.permute.xlu0 %4038  ;;  %5198 = vmatmul.msk.bf16.gmra.mxu2 %vm4713_vm11, %v5236_v12 }
 0x829   : > { %4107 = vst.msk [vmem:[#allocation5 + $0x70] sm:$0xf] %vm4078_vm7, %v4039_v27 }
 0x82a   : > { %4332 = vst.msk [vmem:[#allocation5 + $0x70] sm:$0xf] %vm4303_vm9, %v4264_v31 }
 0x82f   : > { %v4041_v7 = vpop.permute.xlu1 %4040  ;;  %v4457_v57 = vpop.permute.xlu2 %4456  ;;  %v5228_v28 = vld [vmem:[#allocation5 + $0x28] sm:$0xff] }
 0x830   : > { %4108 = vst.msk [vmem:[#allocation5 + $0x74] sm:$0xf] %vm4078_vm7, %v4041_v7  ;;  %v4266_v56 = vpop.permute.xlu0 %4265  ;;  %5190 = vmatmul.msk.bf16.gmra.mxu1 %vm4713_vm11, %v5228_v28 }
 0x831   : > { %4333 = vst.msk [vmem:[#allocation5 + $0x74] sm:$0xf] %vm4303_vm9, %v4266_v56 }
 0x832   : > { %4558 = vst.msk [vmem:[#allocation5 + $0x74] sm:$0xf] %vm4528_vm10, %v4491_v8 }
 0x833   : > { %v4815_v36 = vpop.f32.mrf.mxu2 }
 0x834   : > { %v4816_v18 = vadd.f32 %v7400_v16, %v4815_v36 }
 0x836   : > { %v4871_v54 = vmax.f32 %v4816_v18, 0.0 }
 0x837   : > { %v4489_v60 = vpop.permute.xlu1 %4488  ;;  %v4045_v1 = vpop.permute.xlu2 %4044 }
 0x838   : > { %4557 = vst.msk [vmem:[#allocation5 + $0x70] sm:$0xf] %vm4528_vm10, %v4489_v60  ;;  %v4232_v3 = vpop.permute.xlu0 %4231  ;;  %v4775_v59 = vpop.f32.mrf.mxu1  ;;  %4919 = vxpose.xlu0.b32.start [1/16] (narrow) %v4871_v54, 8 }
 0x839   : > { %4110 = vst.msk [vmem:[#allocation5 + $0x7c] sm:$0xf] %vm4078_vm7, %v4045_v1  ;;  %v4776_v42 = vadd.f32 %v7400_v16, %v4775_v59 }
 0x83a   : > { %4316 = vst.msk [vmem:[#allocation5 + $0x30] sm:$0xf] %vm4303_vm9, %v4232_v3 }
 0x83b   : > { %4541 = vst.msk [vmem:[#allocation5 + $0x30] sm:$0xf] %vm4528_vm10, %v4457_v57  ;;  %v4855_v47 = vmax.f32 %v4776_v42, 0.0  ;;  %v4817_v23 = vpop.f32.mrf.mxu2 }
 0x83c   : > { %v4818_v63 = vadd.f32 %v7400_v16, %v4817_v23 }
 0x83d   : > { %4887 = vxpose.xlu2.b32.start [1/16] (narrow) %v4855_v47, 8 }
 0x83e   : > { %v4872_v53 = vmax.f32 %v4818_v63, 0.0 }
 0x83f   : > { %v4234_v61 = vpop.permute.xlu1 %4233  ;;  %v4493_v15 = vpop.permute.xlu2 %4492  ;;  %v5237_v29 = vld [vmem:[#allocation5 + $0x70] sm:$0xff] }
 0x840   : > { %4317 = vst.msk [vmem:[#allocation5 + $0x34] sm:$0xf] %vm4303_vm9, %v4234_v61  ;;  %v4459_v39 = vpop.permute.xlu0 %4458  ;;  %v4777_v51 = vpop.f32.mrf.mxu1  ;;  %4920 = vxpose.xlu0.b32.cont [2/16] (narrow) %v4872_v53, 8  ;;  %5199 = vmatmul.msk.bf16.gmra.mxu2 %vm4713_vm11, %v5237_v29 }
 0x841   : > { %4542 = vst.msk [vmem:[#allocation5 + $0x34] sm:$0xf] %vm4528_vm10, %v4459_v39  ;;  %v4778_v22 = vadd.f32 %v7400_v16, %v4777_v51 }
 0x843   : > { %v4856_v44 = vmax.f32 %v4778_v22, 0.0 }
 0x845   : > { %4888 = vxpose.xlu2.b32.cont [2/16] (narrow) %v4856_v44, 8 }
 0x847   : > { %v4043_v9 = vpop.permute.xlu1 %4042  ;;  %v4238_v6 = vpop.permute.xlu2 %4237 }
 0x848   : > { %4109 = vst.msk [vmem:[#allocation5 + $0x78] sm:$0xf] %vm4078_vm7, %v4043_v9  ;;  %v4268_v2 = vpop.permute.xlu0 %4267  ;;  %v5229_v14 = vld [vmem:[#allocation5 + $0x30] sm:$0xff] }
 0x849   : > { %4319 = vst.msk [vmem:[#allocation5 + $0x3c] sm:$0xf] %vm4303_vm9, %v4238_v6  ;;  %5191 = vmatmul.msk.bf16.gmra.mxu1 %vm4713_vm11, %v5229_v14 }
 0x84a   : > { %4334 = vst.msk [vmem:[#allocation5 + $0x78] sm:$0xf] %vm4303_vm9, %v4268_v2 }
 0x84b   : > { %4559 = vst.msk [vmem:[#allocation5 + $0x78] sm:$0xf] %vm4528_vm10, %v4493_v15  ;;  %v4820_v48 = vpop.f32.mrf.mxu2 }
 0x84c   : > { %v4821_v32 = vadd.f32 %v7400_v16, %v4820_v48 }
 0x84d   : > { %v4780_v62 = vpop.f32.mrf.mxu1 }
 0x84e   : > { %v4873_v21 = vmax.f32 %v4821_v32, 0.0  ;;  %v4781_v52 = vadd.f32 %v7400_v16, %v4780_v62 }
 0x84f   : > { %v4270_v24 = vpop.permute.xlu1 %4269 }
 0x850   : > { %4335 = vst.msk [vmem:[#allocation5 + $0x7c] sm:$0xf] %vm4303_vm9, %v4270_v24  ;;  %v4495_v13 = vpop.permute.xlu0 %4494  ;;  %v4857_v10 = vmax.f32 %v4781_v52, 0.0  ;;  %4921 = vxpose.xlu0.b32.cont [3/16] (narrow) %v4873_v21, 8 }
 0x851   : > { %4560 = vst.msk [vmem:[#allocation5 + $0x7c] sm:$0xf] %vm4528_vm10, %v4495_v13 }
 0x852   : > { %4889 = vxpose.xlu2.b32.cont [3/16] (narrow) %v4857_v10, 8 }
 0x853   : > { %v4822_v33 = vpop.f32.mrf.mxu2 }
 0x854   : > { %v4823_v45 = vadd.f32 %v7400_v16, %v4822_v33 }
 0x855   : > { %v4782_v11 = vpop.f32.mrf.mxu1 }
 0x856   : > { %v4874_v19 = vmax.f32 %v4823_v45, 0.0  ;;  %v4783_v49 = vadd.f32 %v7400_v16, %v4782_v11 }
 0x857   : > { %v4236_v17 = vpop.permute.xlu1 %4235 }
 0x858   : > { %4318 = vst.msk [vmem:[#allocation5 + $0x38] sm:$0xf] %vm4303_vm9, %v4236_v17  ;;  %v4461_v4 = vpop.permute.xlu0 %4460  ;;  %v5238_v25 = vld [vmem:[#allocation5 + $0x78] sm:$0xff]  ;;  %v4858_v34 = vmax.f32 %v4783_v49, 0.0  ;;  %4922 = vxpose.xlu0.b32.cont [4/16] (narrow) %v4874_v19, 8 }
 0x859   : > { %4543 = vst.msk [vmem:[#allocation5 + $0x38] sm:$0xf] %vm4528_vm10, %v4461_v4  ;;  %5200 = vmatmul.msk.bf16.gmra.mxu2 %vm4713_vm11, %v5238_v25 }
 0x85a   : > { %4890 = vxpose.xlu2.b32.cont [4/16] (narrow) %v4858_v34, 8 }
 0x85d   : > { %v4825_v38 = vpop.f32.mrf.mxu2 }
 0x85e   : > { %v4826_v30 = vadd.f32 %v7400_v16, %v4825_v38 }
 0x85f   : > { %v4463_v41 = vpop.permute.xlu1 %4462 }
 0x860   : > { %4544 = vst.msk [vmem:[#allocation5 + $0x3c] sm:$0xf] %vm4528_vm10, %v4463_v41  ;;  %v4875_v35 = vmax.f32 %v4826_v30, 0.0 }
 0x862   : > { %4923 = vxpose.xlu0.b32.cont [5/16] (narrow) %v4875_v35, 8 }
 0x865   : > { %v4827_v46 = vpop.f32.mrf.mxu2  ;;  %v4785_v40 = vpop.f32.mrf.mxu1 }
 0x866   : > { %v4828_v37 = vadd.f32 %v7400_v16, %v4827_v46  ;;  %v4786_v0 = vadd.f32 %v7400_v16, %v4785_v40 }
 0x867   : > { %v5230_v43 = vld [vmem:[#allocation5 + $0x38] sm:$0xff] }
 0x868   : > { %v4876_v55 = vmax.f32 %v4828_v37, 0.0  ;;  %v4859_v20 = vmax.f32 %v4786_v0, 0.0  ;;  %5192 = vmatmul.msk.bf16.gmra.mxu1 %vm4713_vm11, %v5230_v43 }
 0x86a   : > { %4924 = vxpose.xlu0.b32.cont [6/16] (narrow) %v4876_v55, 8  ;;  %4891 = vxpose.xlu2.b32.cont [5/16] (narrow) %v4859_v20, 8 }
 0x86d   : > { %v4787_v26 = vpop.f32.mrf.mxu1 }
 0x86e   : > { %v4788_v5 = vadd.f32 %v7400_v16, %v4787_v26 }
 0x870   : > { %v4860_v31 = vmax.f32 %v4788_v5, 0.0 }
 0x872   : > { %4892 = vxpose.xlu2.b32.cont [6/16] (narrow) %v4860_v31, 8 }
 0x873   : > { %v4830_v58 = vpop.f32.mrf.mxu2 }
 0x874   : > { %v4831_v50 = vadd.f32 %v7400_v16, %v4830_v58 }
 0x876   : > { %v4877_v8 = vmax.f32 %v4831_v50, 0.0  ;;  %v4790_v12 = vpop.f32.mrf.mxu1 }
 0x877   : > { %v4791_v27 = vadd.f32 %v7400_v16, %v4790_v12 }
 0x878   : > { %4925 = vxpose.xlu0.b32.cont [7/16] (narrow) %v4877_v8, 8 }
 0x879   : > { %v4861_v7 = vmax.f32 %v4791_v27, 0.0 }
 0x87b   : > { %v4832_v57 = vpop.f32.mrf.mxu2  ;;  %4893 = vxpose.xlu2.b32.cont [7/16] (narrow) %v4861_v7, 8 }
 0x87c   : > { %v4833_v28 = vadd.f32 %v7400_v16, %v4832_v57 }
 0x87e   : > { %v4878_v56 = vmax.f32 %v4833_v28, 0.0  ;;  %v4792_v36 = vpop.f32.mrf.mxu1 }
 0x87f   : > { %v4793_v18 = vadd.f32 %v7400_v16, %v4792_v36 }
 0x880   : > { %4926 = vxpose.xlu0.b32.cont [8/16] (narrow) %v4878_v56, 8 }
 0x881   : > { %v4862_v54 = vmax.f32 %v4793_v18, 0.0 }
 0x883   : > { %4894 = vxpose.xlu2.b32.cont [8/16] (narrow) %v4862_v54, 8 }
 0x88d   : > { %v4835_v60 = vpop.f32.mrf.mxu2 }
 0x88e   : > { %v4836_v1 = vadd.f32 %v7400_v16, %v4835_v60 }
 0x890   : > { %v4879_v3 = vmax.f32 %v4836_v1, 0.0 }
 0x892   : > { %4927 = vxpose.xlu0.b32.cont [9/16] (narrow) %v4879_v3, 8 }
 0x895   : > { %v4837_v59 = vpop.f32.mrf.mxu2  ;;  %v4795_v42 = vpop.f32.mrf.mxu1 }
 0x896   : > { %v4838_v47 = vadd.f32 %v7400_v16, %v4837_v59  ;;  %v4796_v23 = vadd.f32 %v7400_v16, %v4795_v42 }
 0x898   : > { %v4880_v63 = vmax.f32 %v4838_v47, 0.0  ;;  %v4863_v53 = vmax.f32 %v4796_v23, 0.0 }
 0x89a   : > { %4928 = vxpose.xlu0.b32.cont [10/16] (narrow) %v4880_v63, 8  ;;  %4895 = vxpose.xlu2.b32.cont [9/16] (narrow) %v4863_v53, 8 }
 0x89d   : > { %v4797_v61 = vpop.f32.mrf.mxu1 }
 0x89e   : > { %v4798_v15 = vadd.f32 %v7400_v16, %v4797_v61 }
 0x8a0   : > { %v4864_v29 = vmax.f32 %v4798_v15, 0.0 }
 0x8a2   : > { %4896 = vxpose.xlu2.b32.cont [10/16] (narrow) %v4864_v29, 8 }
 0x8ab   : > { %v4840_v39 = vpop.f32.mrf.mxu2 }
 0x8ac   : > { %v4841_v51 = vadd.f32 %v7400_v16, %v4840_v39 }
 0x8ad   : > { %v4800_v22 = vpop.f32.mrf.mxu1 }
 0x8ae   : > { %v4881_v44 = vmax.f32 %v4841_v51, 0.0  ;;  %v4801_v9 = vadd.f32 %v7400_v16, %v4800_v22 }
 0x8b0   : > { %v4865_v6 = vmax.f32 %v4801_v9, 0.0  ;;  %4929 = vxpose.xlu0.b32.cont [11/16] (narrow) %v4881_v44, 8 }
 0x8b2   : > { %4897 = vxpose.xlu2.b32.cont [11/16] (narrow) %v4865_v6, 8 }
 0x8b3   : > { %v4842_v2 = vpop.f32.mrf.mxu2 }
 0x8b4   : > { %v4843_v14 = vadd.f32 %v7400_v16, %v4842_v2 }
 0x8b5   : > { %v4802_v48 = vpop.f32.mrf.mxu1 }
 0x8b6   : > { %v4882_v32 = vmax.f32 %v4843_v14, 0.0  ;;  %v4803_v62 = vadd.f32 %v7400_v16, %v4802_v48 }
 0x8b8   : > { %v4866_v21 = vmax.f32 %v4803_v62, 0.0  ;;  %4930 = vxpose.xlu0.b32.cont [12/16] (narrow) %v4882_v32, 8 }
 0x8ba   : > { %4898 = vxpose.xlu2.b32.cont [12/16] (narrow) %v4866_v21, 8 }
 0x8c3   : > { %v4845_v24 = vpop.f32.mrf.mxu2 }
 0x8c4   : > { %v4846_v52 = vadd.f32 %v7400_v16, %v4845_v24 }
 0x8c6   : > { %v4883_v13 = vmax.f32 %v4846_v52, 0.0  ;;  %v4805_v10 = vpop.f32.mrf.mxu1 }
 0x8c7   : > { %v4806_v33 = vadd.f32 %v7400_v16, %v4805_v10 }
 0x8c8   : > { %4931 = vxpose.xlu0.b32.cont [13/16] (narrow) %v4883_v13, 8 }
 0x8c9   : > { %v4867_v45 = vmax.f32 %v4806_v33, 0.0 }
 0x8cb   : > { %v4847_v11 = vpop.f32.mrf.mxu2  ;;  %4899 = vxpose.xlu2.b32.cont [13/16] (narrow) %v4867_v45, 8 }
 0x8cc   : > { %v4848_v19 = vadd.f32 %v7400_v16, %v4847_v11 }
 0x8ce   : > { %v4884_v17 = vmax.f32 %v4848_v19, 0.0  ;;  %v4807_v49 = vpop.f32.mrf.mxu1 }
 0x8cf   : > { %v4808_v4 = vadd.f32 %v7400_v16, %v4807_v49 }
 0x8d0   : > { %4932 = vxpose.xlu0.b32.cont [14/16] (narrow) %v4884_v17, 8 }
 0x8d1   : > { %v4868_v25 = vmax.f32 %v4808_v4, 0.0 }
 0x8d3   : > { %4900 = vxpose.xlu2.b32.cont [14/16] (narrow) %v4868_v25, 8 }
 0x8dc   : > { %v4850_v34 = vpop.f32.mrf.mxu2 }
 0x8dd   : > { %v4851_v38 = vadd.f32 %v7400_v16, %v4850_v34 }
 0x8df   : > { %v4885_v30 = vmax.f32 %v4851_v38, 0.0 }
 0x8e1   : > { %4933 = vxpose.xlu0.b32.cont [15/16] (narrow) %v4885_v30, 8 }
 0x8e4   : > { %v4852_v41 = vpop.f32.mrf.mxu2 }
 0x8e5   : > { %v4853_v35 = vadd.f32 %v7400_v16, %v4852_v41  ;;  %v4810_v46 = vpop.f32.mrf.mxu1 }
 0x8e6   : > { %v4811_v40 = vadd.f32 %v7400_v16, %v4810_v46 }
 0x8e7   : > { %v4886_v37 = vmax.f32 %v4853_v35, 0.0 }
 0x8e8   : > { %v4869_v0 = vmax.f32 %v4811_v40, 0.0 }
 0x8e9   : > { %4934 = vxpose.xlu0.b32.end [16/16] (narrow) %v4886_v37, 8 }
 0x8ea   : > { %4901 = vxpose.xlu2.b32.cont [15/16] (narrow) %v4869_v0, 8 }
 0x8ed   : > { %v4812_v43 = vpop.f32.mrf.mxu1 }
 0x8ee   : > { %v4813_v55 = vadd.f32 %v7400_v16, %v4812_v43 }
 0x8f0   : > { %v4870_v20 = vmax.f32 %v4813_v55, 0.0 }
 0x8f2   : > { %4902 = vxpose.xlu2.b32.end [16/16] (narrow) %v4870_v20, 8 }
 0x913   : > { %v4903_v26 = vpop.trf.xlu2 }
 0x914   : > { %4951 = vst [vmem:[%s224_s13] sm:$0xff] %v4903_v26 }
 0x915   : > { %v4935_v5 = vpop.trf.xlu0 }
 0x916   : > { %4952 = vst [vmem:[%s224_s13 + $0x8] sm:$0xff] %v4935_v5 }
 0x917 PF: > { %s15_s18 = sadd.s32 1, %s5281_s18  }
 0x918   : > { %p12_p4 = scmp.ge.s32.totalorder %s15_s18, 4  }
 0x91a   :  { %14 = sbr.rel (!%p12_p4) target bundleno = 1 (0x1), region = 76 }

</bundles_post_ra>
